<compile_context>
chip_gen: v5e
topology: v5e:2x2
jax: 0.10.0
libtpu: 0.0.40
codegen_flags: <defaults>
</compile_context>

<pallas_src>
import functools

import jax
import jax.numpy as jnp
from jax.experimental import pallas as pl
from jax.experimental.pallas import tpu as pltpu


# ----------------------------------------------------------------------------
# Fused kernel: 3 LSTM layers + regression head, single invocation (no grid)
# ----------------------------------------------------------------------------
def _fused_lstm_kernel(T, B,
                       x_ref,
                       w_ih0_ref, w_hh0_ref, b0_ref,
                       w_ih1_ref, w_hh1_ref, b1_ref,
                       w_ih2_ref, w_hh2_ref, b2_ref,
                       w1_ref, bb1_ref, w2_ref, bb2_ref,
                       out_ref,
                       h_seq_ref):
    H = w_hh0_ref.shape[0]

    def run_layer(x_seq, w_ih_ref, w_hh_ref, b_ref):
        # One big batched input-projection matmul for all T steps; combined bias
        # folded in once (hoisted out of the recurrence -> no per-step broadcast).
        gx = (jnp.dot(x_seq, w_ih_ref[...], preferred_element_type=jnp.float32)
              + b_ref[...])                                    # (T*B, 4H)
        w_hh = w_hh_ref[...]                                   # hoisted load (H, 4H)

        h = jnp.zeros((B, H), jnp.float32)
        c = jnp.zeros((B, H), jnp.float32)
        # Static unroll over the (small) serial time axis; only h @ W_hh and the
        # gate nonlinearities remain on the recurrent critical path. h/c stay in
        # vregs across steps.
        for t in range(T):
            g = gx[t * B:(t + 1) * B, :] + jnp.dot(
                h, w_hh, preferred_element_type=jnp.float32)   # (B, 4H)
            i_g = jax.nn.sigmoid(g[:, 0 * H:1 * H])
            f_g = jax.nn.sigmoid(g[:, 1 * H:2 * H])
            g_g = jnp.tanh(g[:, 2 * H:3 * H])
            o_g = jax.nn.sigmoid(g[:, 3 * H:4 * H])
            c = f_g * c + i_g * g_g
            h = o_g * jnp.tanh(c)
            # Stage the layer's hidden sequence in VMEM scratch (static slice
            # offsets; consumed in-kernel by the next layer / the head, never
            # goes to HBM).
            h_seq_ref[t * B:(t + 1) * B, :] = h
        return h_seq_ref[...]                                   # (T*B, H)

    h = run_layer(x_ref[...], w_ih0_ref, w_hh0_ref, b0_ref)
    h = run_layer(h, w_ih1_ref, w_hh1_ref, b1_ref)
    h = run_layer(h, w_ih2_ref, w_hh2_ref, b2_ref)

    # Regression head over all T*B rows at once: tanh(h @ W1 + b1) @ W2 + b2
    z = jnp.tanh(jnp.dot(h, w1_ref[...], preferred_element_type=jnp.float32)
                 + bb1_ref[...])
    out_ref[...] = (jnp.dot(z, w2_ref[...], preferred_element_type=jnp.float32)
                    + bb2_ref[...]).astype(out_ref.dtype)


# ----------------------------------------------------------------------------
# Model wrapper (glue in plain JAX)
# ----------------------------------------------------------------------------
@jax.jit
def lstm_model_same_forward(x_bti, params):
    x = x_bti.astype(jnp.float32)
    B, T, I = x.shape
    H = params["lstm"][0][1].shape[0]

    # Row index of the flattened sequence = t*B + b  (time-major flattening).
    x_flat = jnp.transpose(x, (1, 0, 2)).reshape(T * B, I)

    flat_args = [x_flat]
    for (w_ih, w_hh, b) in params["lstm"]:
        flat_args += [w_ih, w_hh, b]
    flat_args += [params["w1"], params["b1"], params["w2"], params["b2"]]

    out = pl.pallas_call(
        functools.partial(_fused_lstm_kernel, T, B),
        out_shape=jax.ShapeDtypeStruct((T * B, 1), jnp.float32),
        scratch_shapes=[pltpu.VMEM((T * B, H), jnp.float32)],   # hidden-sequence buffer
    )(*flat_args)

    return out.reshape(T, B).T   # (B, T) == squeeze(-1) of (B, T, 1)


# ----------------------------------------------------------------------------
# Parameter init (weights stored pre-transposed: (in_dim, 4H) / (H, 4H))
# ----------------------------------------------------------------------------
def init_params(key, input_size, hidden_size, num_layers):
    k = 1.0 / jnp.sqrt(hidden_size)
    params = {"lstm": []}
    for layer in range(num_layers):
        in_dim = input_size if layer == 0 else hidden_size
        key, k1, k2, k3, k4 = jax.random.split(key, 5)
        w_ih = jax.random.uniform(k1, (in_dim, 4 * hidden_size), jnp.float32, -k, k)
        w_hh = jax.random.uniform(k2, (hidden_size, 4 * hidden_size), jnp.float32, -k, k)
        b_ih = jax.random.uniform(k3, (4 * hidden_size,), jnp.float32, -k, k)
        b_hh = jax.random.uniform(k4, (4 * hidden_size,), jnp.float32, -k, k)
        params["lstm"].append((w_ih, w_hh, (b_ih + b_hh)[None, :]))
    h2 = hidden_size // 2
    key, k1, k2, k3, k4 = jax.random.split(key, 5)
    kr1 = 1.0 / jnp.sqrt(hidden_size)
    kr2 = 1.0 / jnp.sqrt(h2)
    params["w1"] = jax.random.uniform(k1, (hidden_size, h2), jnp.float32, -kr1, kr1)
    params["b1"] = jax.random.uniform(k2, (1, h2), jnp.float32, -kr1, kr1)
    params["w2"] = jax.random.uniform(k3, (h2, 1), jnp.float32, -kr2, kr2)
    params["b2"] = jax.random.uniform(k4, (1, 1), jnp.float32, -kr2, kr2)
    return params


# ----------------------------------------------------------------------------
# Pure-JAX reference for correctness check
# ----------------------------------------------------------------------------
def ref_forward(x_bti, params):
    h = jnp.transpose(x_bti.astype(jnp.float32), (1, 0, 2))     # (T, B, I)
    for (w_ih, w_hh, b) in params["lstm"]:
        T, B, _ = h.shape
        H = w_hh.shape[0]

        def step(carry, x_t):
            hp, cp = carry
            g = x_t @ w_ih + hp @ w_hh + b[0]
            i = jax.nn.sigmoid(g[:, :H])
            f = jax.nn.sigmoid(g[:, H:2 * H])
            gg = jnp.tanh(g[:, 2 * H:3 * H])
            o = jax.nn.sigmoid(g[:, 3 * H:])
            c = f * cp + i * gg
            hn = o * jnp.tanh(c)
            return (hn, c), hn

        (_, _), hs = jax.lax.scan(step, (jnp.zeros((B, H)), jnp.zeros((B, H))), h)
        h = hs
    T, B, H = h.shape
    flat = h.reshape(T * B, H)
    r = jnp.tanh(flat @ params["w1"] + params["b1"]) @ params["w2"] + params["b2"]
    return r.reshape(T, B).T


if __name__ == "__main__":
    # Small shapes consistent with the module: batch=2, seq=8, input_size=15
    # (module default), hidden_size=32, num_layers=3, output_size=1.
    B, T = 2, 8
    INPUT_SIZE, HIDDEN_SIZE, NUM_LAYERS = 15, 32, 3

    key = jax.random.PRNGKey(0)
    key, xkey = jax.random.split(key)
    x = jax.random.normal(xkey, (B, T, INPUT_SIZE), jnp.float32)

    params = init_params(key, INPUT_SIZE, HIDDEN_SIZE, NUM_LAYERS)

    out = jax.block_until_ready(lstm_model_same_forward(x, params))
    ref = jax.block_until_ready(ref_forward(x, params))

    assert out.shape == (B, T), out.shape
    assert jnp.allclose(out, ref, atol=1e-3, rtol=1e-3), (out, ref)

    print("KERNEL_OK")
</pallas_src>

<mosaic_0001>
module attributes {stable_mosaic.version = 11 : i64} {
  func.func @_fused_lstm_kernel(%arg0: memref<16x15xf32, #tpu.memory_space<vmem>>, %arg1: memref<15x128xf32, #tpu.memory_space<vmem>>, %arg2: memref<32x128xf32, #tpu.memory_space<vmem>>, %arg3: memref<1x128xf32, #tpu.memory_space<vmem>>, %arg4: memref<32x128xf32, #tpu.memory_space<vmem>>, %arg5: memref<32x128xf32, #tpu.memory_space<vmem>>, %arg6: memref<1x128xf32, #tpu.memory_space<vmem>>, %arg7: memref<32x128xf32, #tpu.memory_space<vmem>>, %arg8: memref<32x128xf32, #tpu.memory_space<vmem>>, %arg9: memref<1x128xf32, #tpu.memory_space<vmem>>, %arg10: memref<32x16xf32, #tpu.memory_space<vmem>>, %arg11: memref<1x16xf32, #tpu.memory_space<vmem>>, %arg12: memref<16x1xf32, #tpu.memory_space<vmem>>, %arg13: memref<1x1xf32, #tpu.memory_space<vmem>>, %arg14: memref<16x1xf32, #tpu.memory_space<vmem>>, %arg15: memref<16x32xf32, #tpu.memory_space<vmem>>) attributes {dimension_semantics = [], scalar_prefetch = 0 : i64, scratch_operands = 1 : i64, tpu.core_type = #tpu.core_type<tc>} {
    %c0 = arith.constant 0 : index
    %c0_0 = arith.constant 0 : index
    %0 = vector.load %arg0[%c0, %c0_0] : memref<16x15xf32, #tpu.memory_space<vmem>>, vector<16x15xf32>
    %c0_1 = arith.constant 0 : index
    %c0_2 = arith.constant 0 : index
    %1 = vector.load %arg1[%c0_1, %c0_2] : memref<15x128xf32, #tpu.memory_space<vmem>>, vector<15x128xf32>
    %cst = arith.constant dense<0.000000e+00> : vector<16x128xf32>
    %2 = tpu.matmul %0, %1, %cst {dimension_numbers = #tpu.dot_dimension_numbers<[1], [0], [0], [1], [0, 0, 1, 1], [], []>} : vector<16x15xf32>, vector<15x128xf32>, vector<16x128xf32> -> vector<16x128xf32>
    %c0_3 = arith.constant 0 : index
    %c0_4 = arith.constant 0 : index
    %3 = vector.load %arg3[%c0_3, %c0_4] : memref<1x128xf32, #tpu.memory_space<vmem>>, vector<1x128xf32>
    %4 = vector.broadcast %3 : vector<1x128xf32> to vector<16x128xf32>
    %5 = arith.addf %2, %4 : vector<16x128xf32>
    %c0_5 = arith.constant 0 : index
    %c0_6 = arith.constant 0 : index
    %6 = vector.load %arg2[%c0_5, %c0_6] : memref<32x128xf32, #tpu.memory_space<vmem>>, vector<32x128xf32>
    %cst_7 = arith.constant 0.000000e+00 : f32
    %7 = vector.broadcast %cst_7 : f32 to vector<2x32xf32>
    %cst_8 = arith.constant 0.000000e+00 : f32
    %8 = vector.broadcast %cst_8 : f32 to vector<2x32xf32>
    %9 = vector.extract_strided_slice %5 {offsets = [0, 0], sizes = [2, 128], strides = [1, 1]} : vector<16x128xf32> to vector<2x128xf32>
    %cst_9 = arith.constant dense<0.000000e+00> : vector<2x128xf32>
    %10 = tpu.matmul %7, %6, %cst_9 {dimension_numbers = #tpu.dot_dimension_numbers<[1], [0], [0], [1], [0, 0, 1, 1], [], []>} : vector<2x32xf32>, vector<32x128xf32>, vector<2x128xf32> -> vector<2x128xf32>
    %11 = arith.addf %9, %10 : vector<2x128xf32>
    %12 = vector.extract_strided_slice %11 {offsets = [0, 0], sizes = [2, 32], strides = [1, 1]} : vector<2x128xf32> to vector<2x32xf32>
    %13 = arith.negf %12 : vector<2x32xf32>
    %14 = math.exp %13 : vector<2x32xf32>
    %cst_10 = arith.constant 1.000000e+00 : f32
    %15 = vector.broadcast %cst_10 : f32 to vector<2x32xf32>
    %16 = arith.addf %15, %14 : vector<2x32xf32>
    %17 = arith.divf %15, %16 : vector<2x32xf32>
    %18 = vector.extract_strided_slice %11 {offsets = [0, 32], sizes = [2, 32], strides = [1, 1]} : vector<2x128xf32> to vector<2x32xf32>
    %19 = arith.negf %18 : vector<2x32xf32>
    %20 = math.exp %19 : vector<2x32xf32>
    %cst_11 = arith.constant 1.000000e+00 : f32
    %21 = vector.broadcast %cst_11 : f32 to vector<2x32xf32>
    %22 = arith.addf %21, %20 : vector<2x32xf32>
    %23 = arith.divf %21, %22 : vector<2x32xf32>
    %24 = vector.extract_strided_slice %11 {offsets = [0, 64], sizes = [2, 32], strides = [1, 1]} : vector<2x128xf32> to vector<2x32xf32>
    %25 = math.tanh %24 : vector<2x32xf32>
    %26 = vector.extract_strided_slice %11 {offsets = [0, 96], sizes = [2, 32], strides = [1, 1]} : vector<2x128xf32> to vector<2x32xf32>
    %27 = arith.negf %26 : vector<2x32xf32>
    %28 = math.exp %27 : vector<2x32xf32>
    %cst_12 = arith.constant 1.000000e+00 : f32
    %29 = vector.broadcast %cst_12 : f32 to vector<2x32xf32>
    %30 = arith.addf %29, %28 : vector<2x32xf32>
    %31 = arith.divf %29, %30 : vector<2x32xf32>
    %32 = arith.mulf %23, %8 : vector<2x32xf32>
    %33 = arith.mulf %17, %25 : vector<2x32xf32>
    %34 = arith.addf %32, %33 : vector<2x32xf32>
    %35 = math.tanh %34 : vector<2x32xf32>
    %36 = arith.mulf %31, %35 : vector<2x32xf32>
    %c0_13 = arith.constant 0 : index
    %c0_14 = arith.constant 0 : index
    %37 = vector.load %arg15[%c0_13, %c0_14] : memref<16x32xf32, #tpu.memory_space<vmem>>, vector<2x32xf32>
    tpu.vector_store %arg15[%c0_13, %c0_14], %36 {strides = array<i32>} : memref<16x32xf32, #tpu.memory_space<vmem>>, vector<2x32xf32>,
    %38 = vector.extract_strided_slice %5 {offsets = [2, 0], sizes = [2, 128], strides = [1, 1]} : vector<16x128xf32> to vector<2x128xf32>
    %cst_15 = arith.constant dense<0.000000e+00> : vector<2x128xf32>
    %39 = tpu.matmul %36, %6, %cst_15 {dimension_numbers = #tpu.dot_dimension_numbers<[1], [0], [0], [1], [0, 0, 1, 1], [], []>} : vector<2x32xf32>, vector<32x128xf32>, vector<2x128xf32> -> vector<2x128xf32>
    %40 = arith.addf %38, %39 : vector<2x128xf32>
    %41 = vector.extract_strided_slice %40 {offsets = [0, 0], sizes = [2, 32], strides = [1, 1]} : vector<2x128xf32> to vector<2x32xf32>
    %42 = arith.negf %41 : vector<2x32xf32>
    %43 = math.exp %42 : vector<2x32xf32>
    %cst_16 = arith.constant 1.000000e+00 : f32
    %44 = vector.broadcast %cst_16 : f32 to vector<2x32xf32>
    %45 = arith.addf %44, %43 : vector<2x32xf32>
    %46 = arith.divf %44, %45 : vector<2x32xf32>
    %47 = vector.extract_strided_slice %40 {offsets = [0, 32], sizes = [2, 32], strides = [1, 1]} : vector<2x128xf32> to vector<2x32xf32>
    %48 = arith.negf %47 : vector<2x32xf32>
    %49 = math.exp %48 : vector<2x32xf32>
    %cst_17 = arith.constant 1.000000e+00 : f32
    %50 = vector.broadcast %cst_17 : f32 to vector<2x32xf32>
    %51 = arith.addf %50, %49 : vector<2x32xf32>
    %52 = arith.divf %50, %51 : vector<2x32xf32>
    %53 = vector.extract_strided_slice %40 {offsets = [0, 64], sizes = [2, 32], strides = [1, 1]} : vector<2x128xf32> to vector<2x32xf32>
    %54 = math.tanh %53 : vector<2x32xf32>
    %55 = vector.extract_strided_slice %40 {offsets = [0, 96], sizes = [2, 32], strides = [1, 1]} : vector<2x128xf32> to vector<2x32xf32>
    %56 = arith.negf %55 : vector<2x32xf32>
    %57 = math.exp %56 : vector<2x32xf32>
    %cst_18 = arith.constant 1.000000e+00 : f32
    %58 = vector.broadcast %cst_18 : f32 to vector<2x32xf32>
    %59 = arith.addf %58, %57 : vector<2x32xf32>
    %60 = arith.divf %58, %59 : vector<2x32xf32>
    %61 = arith.mulf %52, %34 : vector<2x32xf32>
    %62 = arith.mulf %46, %54 : vector<2x32xf32>
    %63 = arith.addf %61, %62 : vector<2x32xf32>
    %64 = math.tanh %63 : vector<2x32xf32>
    %65 = arith.mulf %60, %64 : vector<2x32xf32>
    %c2 = arith.constant 2 : index
    %c0_19 = arith.constant 0 : index
    %66 = vector.load %arg15[%c2, %c0_19] : memref<16x32xf32, #tpu.memory_space<vmem>>, vector<2x32xf32>
    tpu.vector_store %arg15[%c2, %c0_19], %65 {strides = array<i32>} : memref<16x32xf32, #tpu.memory_space<vmem>>, vector<2x32xf32>,
    %67 = vector.extract_strided_slice %5 {offsets = [4, 0], sizes = [2, 128], strides = [1, 1]} : vector<16x128xf32> to vector<2x128xf32>
    %cst_20 = arith.constant dense<0.000000e+00> : vector<2x128xf32>
    %68 = tpu.matmul %65, %6, %cst_20 {dimension_numbers = #tpu.dot_dimension_numbers<[1], [0], [0], [1], [0, 0, 1, 1], [], []>} : vector<2x32xf32>, vector<32x128xf32>, vector<2x128xf32> -> vector<2x128xf32>
    %69 = arith.addf %67, %68 : vector<2x128xf32>
    %70 = vector.extract_strided_slice %69 {offsets = [0, 0], sizes = [2, 32], strides = [1, 1]} : vector<2x128xf32> to vector<2x32xf32>
    %71 = arith.negf %70 : vector<2x32xf32>
    %72 = math.exp %71 : vector<2x32xf32>
    %cst_21 = arith.constant 1.000000e+00 : f32
    %73 = vector.broadcast %cst_21 : f32 to vector<2x32xf32>
    %74 = arith.addf %73, %72 : vector<2x32xf32>
    %75 = arith.divf %73, %74 : vector<2x32xf32>
    %76 = vector.extract_strided_slice %69 {offsets = [0, 32], sizes = [2, 32], strides = [1, 1]} : vector<2x128xf32> to vector<2x32xf32>
    %77 = arith.negf %76 : vector<2x32xf32>
    %78 = math.exp %77 : vector<2x32xf32>
    %cst_22 = arith.constant 1.000000e+00 : f32
    %79 = vector.broadcast %cst_22 : f32 to vector<2x32xf32>
    %80 = arith.addf %79, %78 : vector<2x32xf32>
    %81 = arith.divf %79, %80 : vector<2x32xf32>
    %82 = vector.extract_strided_slice %69 {offsets = [0, 64], sizes = [2, 32], strides = [1, 1]} : vector<2x128xf32> to vector<2x32xf32>
    %83 = math.tanh %82 : vector<2x32xf32>
    %84 = vector.extract_strided_slice %69 {offsets = [0, 96], sizes = [2, 32], strides = [1, 1]} : vector<2x128xf32> to vector<2x32xf32>
    %85 = arith.negf %84 : vector<2x32xf32>
    %86 = math.exp %85 : vector<2x32xf32>
    %cst_23 = arith.constant 1.000000e+00 : f32
    %87 = vector.broadcast %cst_23 : f32 to vector<2x32xf32>
    %88 = arith.addf %87, %86 : vector<2x32xf32>
    %89 = arith.divf %87, %88 : vector<2x32xf32>
    %90 = arith.mulf %81, %63 : vector<2x32xf32>
    %91 = arith.mulf %75, %83 : vector<2x32xf32>
    %92 = arith.addf %90, %91 : vector<2x32xf32>
    %93 = math.tanh %92 : vector<2x32xf32>
    %94 = arith.mulf %89, %93 : vector<2x32xf32>
    %c4 = arith.constant 4 : index
    %c0_24 = arith.constant 0 : index
    %95 = vector.load %arg15[%c4, %c0_24] : memref<16x32xf32, #tpu.memory_space<vmem>>, vector<2x32xf32>
    tpu.vector_store %arg15[%c4, %c0_24], %94 {strides = array<i32>} : memref<16x32xf32, #tpu.memory_space<vmem>>, vector<2x32xf32>,
    %96 = vector.extract_strided_slice %5 {offsets = [6, 0], sizes = [2, 128], strides = [1, 1]} : vector<16x128xf32> to vector<2x128xf32>
    %cst_25 = arith.constant dense<0.000000e+00> : vector<2x128xf32>
    %97 = tpu.matmul %94, %6, %cst_25 {dimension_numbers = #tpu.dot_dimension_numbers<[1], [0], [0], [1], [0, 0, 1, 1], [], []>} : vector<2x32xf32>, vector<32x128xf32>, vector<2x128xf32> -> vector<2x128xf32>
    %98 = arith.addf %96, %97 : vector<2x128xf32>
    %99 = vector.extract_strided_slice %98 {offsets = [0, 0], sizes = [2, 32], strides = [1, 1]} : vector<2x128xf32> to vector<2x32xf32>
    %100 = arith.negf %99 : vector<2x32xf32>
    %101 = math.exp %100 : vector<2x32xf32>
    %cst_26 = arith.constant 1.000000e+00 : f32
    %102 = vector.broadcast %cst_26 : f32 to vector<2x32xf32>
    %103 = arith.addf %102, %101 : vector<2x32xf32>
    %104 = arith.divf %102, %103 : vector<2x32xf32>
    %105 = vector.extract_strided_slice %98 {offsets = [0, 32], sizes = [2, 32], strides = [1, 1]} : vector<2x128xf32> to vector<2x32xf32>
    %106 = arith.negf %105 : vector<2x32xf32>
    %107 = math.exp %106 : vector<2x32xf32>
    %cst_27 = arith.constant 1.000000e+00 : f32
    %108 = vector.broadcast %cst_27 : f32 to vector<2x32xf32>
    %109 = arith.addf %108, %107 : vector<2x32xf32>
    %110 = arith.divf %108, %109 : vector<2x32xf32>
    %111 = vector.extract_strided_slice %98 {offsets = [0, 64], sizes = [2, 32], strides = [1, 1]} : vector<2x128xf32> to vector<2x32xf32>
    %112 = math.tanh %111 : vector<2x32xf32>
    %113 = vector.extract_strided_slice %98 {offsets = [0, 96], sizes = [2, 32], strides = [1, 1]} : vector<2x128xf32> to vector<2x32xf32>
    %114 = arith.negf %113 : vector<2x32xf32>
    %115 = math.exp %114 : vector<2x32xf32>
    %cst_28 = arith.constant 1.000000e+00 : f32
    %116 = vector.broadcast %cst_28 : f32 to vector<2x32xf32>
    %117 = arith.addf %116, %115 : vector<2x32xf32>
    %118 = arith.divf %116, %117 : vector<2x32xf32>
    %119 = arith.mulf %110, %92 : vector<2x32xf32>
    %120 = arith.mulf %104, %112 : vector<2x32xf32>
    %121 = arith.addf %119, %120 : vector<2x32xf32>
    %122 = math.tanh %121 : vector<2x32xf32>
    %123 = arith.mulf %118, %122 : vector<2x32xf32>
    %c6 = arith.constant 6 : index
    %c0_29 = arith.constant 0 : index
    %124 = vector.load %arg15[%c6, %c0_29] : memref<16x32xf32, #tpu.memory_space<vmem>>, vector<2x32xf32>
    tpu.vector_store %arg15[%c6, %c0_29], %123 {strides = array<i32>} : memref<16x32xf32, #tpu.memory_space<vmem>>, vector<2x32xf32>,
    %125 = vector.extract_strided_slice %5 {offsets = [8, 0], sizes = [2, 128], strides = [1, 1]} : vector<16x128xf32> to vector<2x128xf32>
    %cst_30 = arith.constant dense<0.000000e+00> : vector<2x128xf32>
    %126 = tpu.matmul %123, %6, %cst_30 {dimension_numbers = #tpu.dot_dimension_numbers<[1], [0], [0], [1], [0, 0, 1, 1], [], []>} : vector<2x32xf32>, vector<32x128xf32>, vector<2x128xf32> -> vector<2x128xf32>
    %127 = arith.addf %125, %126 : vector<2x128xf32>
    %128 = vector.extract_strided_slice %127 {offsets = [0, 0], sizes = [2, 32], strides = [1, 1]} : vector<2x128xf32> to vector<2x32xf32>
    %129 = arith.negf %128 : vector<2x32xf32>
    %130 = math.exp %129 : vector<2x32xf32>
    %cst_31 = arith.constant 1.000000e+00 : f32
    %131 = vector.broadcast %cst_31 : f32 to vector<2x32xf32>
    %132 = arith.addf %131, %130 : vector<2x32xf32>
    %133 = arith.divf %131, %132 : vector<2x32xf32>
    %134 = vector.extract_strided_slice %127 {offsets = [0, 32], sizes = [2, 32], strides = [1, 1]} : vector<2x128xf32> to vector<2x32xf32>
    %135 = arith.negf %134 : vector<2x32xf32>
    %136 = math.exp %135 : vector<2x32xf32>
    %cst_32 = arith.constant 1.000000e+00 : f32
    %137 = vector.broadcast %cst_32 : f32 to vector<2x32xf32>
    %138 = arith.addf %137, %136 : vector<2x32xf32>
    %139 = arith.divf %137, %138 : vector<2x32xf32>
    %140 = vector.extract_strided_slice %127 {offsets = [0, 64], sizes = [2, 32], strides = [1, 1]} : vector<2x128xf32> to vector<2x32xf32>
    %141 = math.tanh %140 : vector<2x32xf32>
    %142 = vector.extract_strided_slice %127 {offsets = [0, 96], sizes = [2, 32], strides = [1, 1]} : vector<2x128xf32> to vector<2x32xf32>
    %143 = arith.negf %142 : vector<2x32xf32>
    %144 = math.exp %143 : vector<2x32xf32>
    %cst_33 = arith.constant 1.000000e+00 : f32
    %145 = vector.broadcast %cst_33 : f32 to vector<2x32xf32>
    %146 = arith.addf %145, %144 : vector<2x32xf32>
    %147 = arith.divf %145, %146 : vector<2x32xf32>
    %148 = arith.mulf %139, %121 : vector<2x32xf32>
    %149 = arith.mulf %133, %141 : vector<2x32xf32>
    %150 = arith.addf %148, %149 : vector<2x32xf32>
    %151 = math.tanh %150 : vector<2x32xf32>
    %152 = arith.mulf %147, %151 : vector<2x32xf32>
    %c8 = arith.constant 8 : index
    %c0_34 = arith.constant 0 : index
    %153 = vector.load %arg15[%c8, %c0_34] : memref<16x32xf32, #tpu.memory_space<vmem>>, vector<2x32xf32>
    tpu.vector_store %arg15[%c8, %c0_34], %152 {strides = array<i32>} : memref<16x32xf32, #tpu.memory_space<vmem>>, vector<2x32xf32>,
    %154 = vector.extract_strided_slice %5 {offsets = [10, 0], sizes = [2, 128], strides = [1, 1]} : vector<16x128xf32> to vector<2x128xf32>
    %cst_35 = arith.constant dense<0.000000e+00> : vector<2x128xf32>
    %155 = tpu.matmul %152, %6, %cst_35 {dimension_numbers = #tpu.dot_dimension_numbers<[1], [0], [0], [1], [0, 0, 1, 1], [], []>} : vector<2x32xf32>, vector<32x128xf32>, vector<2x128xf32> -> vector<2x128xf32>
    %156 = arith.addf %154, %155 : vector<2x128xf32>
    %157 = vector.extract_strided_slice %156 {offsets = [0, 0], sizes = [2, 32], strides = [1, 1]} : vector<2x128xf32> to vector<2x32xf32>
    %158 = arith.negf %157 : vector<2x32xf32>
    %159 = math.exp %158 : vector<2x32xf32>
    %cst_36 = arith.constant 1.000000e+00 : f32
    %160 = vector.broadcast %cst_36 : f32 to vector<2x32xf32>
    %161 = arith.addf %160, %159 : vector<2x32xf32>
    %162 = arith.divf %160, %161 : vector<2x32xf32>
    %163 = vector.extract_strided_slice %156 {offsets = [0, 32], sizes = [2, 32], strides = [1, 1]} : vector<2x128xf32> to vector<2x32xf32>
    %164 = arith.negf %163 : vector<2x32xf32>
    %165 = math.exp %164 : vector<2x32xf32>
    %cst_37 = arith.constant 1.000000e+00 : f32
    %166 = vector.broadcast %cst_37 : f32 to vector<2x32xf32>
    %167 = arith.addf %166, %165 : vector<2x32xf32>
    %168 = arith.divf %166, %167 : vector<2x32xf32>
    %169 = vector.extract_strided_slice %156 {offsets = [0, 64], sizes = [2, 32], strides = [1, 1]} : vector<2x128xf32> to vector<2x32xf32>
    %170 = math.tanh %169 : vector<2x32xf32>
    %171 = vector.extract_strided_slice %156 {offsets = [0, 96], sizes = [2, 32], strides = [1, 1]} : vector<2x128xf32> to vector<2x32xf32>
    %172 = arith.negf %171 : vector<2x32xf32>
    %173 = math.exp %172 : vector<2x32xf32>
    %cst_38 = arith.constant 1.000000e+00 : f32
    %174 = vector.broadcast %cst_38 : f32 to vector<2x32xf32>
    %175 = arith.addf %174, %173 : vector<2x32xf32>
    %176 = arith.divf %174, %175 : vector<2x32xf32>
    %177 = arith.mulf %168, %150 : vector<2x32xf32>
    %178 = arith.mulf %162, %170 : vector<2x32xf32>
    %179 = arith.addf %177, %178 : vector<2x32xf32>
    %180 = math.tanh %179 : vector<2x32xf32>
    %181 = arith.mulf %176, %180 : vector<2x32xf32>
    %c10 = arith.constant 10 : index
    %c0_39 = arith.constant 0 : index
    %182 = vector.load %arg15[%c10, %c0_39] : memref<16x32xf32, #tpu.memory_space<vmem>>, vector<2x32xf32>
    tpu.vector_store %arg15[%c10, %c0_39], %181 {strides = array<i32>} : memref<16x32xf32, #tpu.memory_space<vmem>>, vector<2x32xf32>,
    %183 = vector.extract_strided_slice %5 {offsets = [12, 0], sizes = [2, 128], strides = [1, 1]} : vector<16x128xf32> to vector<2x128xf32>
    %cst_40 = arith.constant dense<0.000000e+00> : vector<2x128xf32>
    %184 = tpu.matmul %181, %6, %cst_40 {dimension_numbers = #tpu.dot_dimension_numbers<[1], [0], [0], [1], [0, 0, 1, 1], [], []>} : vector<2x32xf32>, vector<32x128xf32>, vector<2x128xf32> -> vector<2x128xf32>
    %185 = arith.addf %183, %184 : vector<2x128xf32>
    %186 = vector.extract_strided_slice %185 {offsets = [0, 0], sizes = [2, 32], strides = [1, 1]} : vector<2x128xf32> to vector<2x32xf32>
    %187 = arith.negf %186 : vector<2x32xf32>
    %188 = math.exp %187 : vector<2x32xf32>
    %cst_41 = arith.constant 1.000000e+00 : f32
    %189 = vector.broadcast %cst_41 : f32 to vector<2x32xf32>
    %190 = arith.addf %189, %188 : vector<2x32xf32>
    %191 = arith.divf %189, %190 : vector<2x32xf32>
    %192 = vector.extract_strided_slice %185 {offsets = [0, 32], sizes = [2, 32], strides = [1, 1]} : vector<2x128xf32> to vector<2x32xf32>
    %193 = arith.negf %192 : vector<2x32xf32>
    %194 = math.exp %193 : vector<2x32xf32>
    %cst_42 = arith.constant 1.000000e+00 : f32
    %195 = vector.broadcast %cst_42 : f32 to vector<2x32xf32>
    %196 = arith.addf %195, %194 : vector<2x32xf32>
    %197 = arith.divf %195, %196 : vector<2x32xf32>
    %198 = vector.extract_strided_slice %185 {offsets = [0, 64], sizes = [2, 32], strides = [1, 1]} : vector<2x128xf32> to vector<2x32xf32>
    %199 = math.tanh %198 : vector<2x32xf32>
    %200 = vector.extract_strided_slice %185 {offsets = [0, 96], sizes = [2, 32], strides = [1, 1]} : vector<2x128xf32> to vector<2x32xf32>
    %201 = arith.negf %200 : vector<2x32xf32>
    %202 = math.exp %201 : vector<2x32xf32>
    %cst_43 = arith.constant 1.000000e+00 : f32
    %203 = vector.broadcast %cst_43 : f32 to vector<2x32xf32>
    %204 = arith.addf %203, %202 : vector<2x32xf32>
    %205 = arith.divf %203, %204 : vector<2x32xf32>
    %206 = arith.mulf %197, %179 : vector<2x32xf32>
    %207 = arith.mulf %191, %199 : vector<2x32xf32>
    %208 = arith.addf %206, %207 : vector<2x32xf32>
    %209 = math.tanh %208 : vector<2x32xf32>
    %210 = arith.mulf %205, %209 : vector<2x32xf32>
    %c12 = arith.constant 12 : index
    %c0_44 = arith.constant 0 : index
    %211 = vector.load %arg15[%c12, %c0_44] : memref<16x32xf32, #tpu.memory_space<vmem>>, vector<2x32xf32>
    tpu.vector_store %arg15[%c12, %c0_44], %210 {strides = array<i32>} : memref<16x32xf32, #tpu.memory_space<vmem>>, vector<2x32xf32>,
    %212 = vector.extract_strided_slice %5 {offsets = [14, 0], sizes = [2, 128], strides = [1, 1]} : vector<16x128xf32> to vector<2x128xf32>
    %cst_45 = arith.constant dense<0.000000e+00> : vector<2x128xf32>
    %213 = tpu.matmul %210, %6, %cst_45 {dimension_numbers = #tpu.dot_dimension_numbers<[1], [0], [0], [1], [0, 0, 1, 1], [], []>} : vector<2x32xf32>, vector<32x128xf32>, vector<2x128xf32> -> vector<2x128xf32>
    %214 = arith.addf %212, %213 : vector<2x128xf32>
    %215 = vector.extract_strided_slice %214 {offsets = [0, 0], sizes = [2, 32], strides = [1, 1]} : vector<2x128xf32> to vector<2x32xf32>
    %216 = arith.negf %215 : vector<2x32xf32>
    %217 = math.exp %216 : vector<2x32xf32>
    %cst_46 = arith.constant 1.000000e+00 : f32
    %218 = vector.broadcast %cst_46 : f32 to vector<2x32xf32>
    %219 = arith.addf %218, %217 : vector<2x32xf32>
    %220 = arith.divf %218, %219 : vector<2x32xf32>
    %221 = vector.extract_strided_slice %214 {offsets = [0, 32], sizes = [2, 32], strides = [1, 1]} : vector<2x128xf32> to vector<2x32xf32>
    %222 = arith.negf %221 : vector<2x32xf32>
    %223 = math.exp %222 : vector<2x32xf32>
    %cst_47 = arith.constant 1.000000e+00 : f32
    %224 = vector.broadcast %cst_47 : f32 to vector<2x32xf32>
    %225 = arith.addf %224, %223 : vector<2x32xf32>
    %226 = arith.divf %224, %225 : vector<2x32xf32>
    %227 = vector.extract_strided_slice %214 {offsets = [0, 64], sizes = [2, 32], strides = [1, 1]} : vector<2x128xf32> to vector<2x32xf32>
    %228 = math.tanh %227 : vector<2x32xf32>
    %229 = vector.extract_strided_slice %214 {offsets = [0, 96], sizes = [2, 32], strides = [1, 1]} : vector<2x128xf32> to vector<2x32xf32>
    %230 = arith.negf %229 : vector<2x32xf32>
    %231 = math.exp %230 : vector<2x32xf32>
    %cst_48 = arith.constant 1.000000e+00 : f32
    %232 = vector.broadcast %cst_48 : f32 to vector<2x32xf32>
    %233 = arith.addf %232, %231 : vector<2x32xf32>
    %234 = arith.divf %232, %233 : vector<2x32xf32>
    %235 = arith.mulf %226, %208 : vector<2x32xf32>
    %236 = arith.mulf %220, %228 : vector<2x32xf32>
    %237 = arith.addf %235, %236 : vector<2x32xf32>
    %238 = math.tanh %237 : vector<2x32xf32>
    %239 = arith.mulf %234, %238 : vector<2x32xf32>
    %c14 = arith.constant 14 : index
    %c0_49 = arith.constant 0 : index
    %240 = vector.load %arg15[%c14, %c0_49] : memref<16x32xf32, #tpu.memory_space<vmem>>, vector<2x32xf32>
    tpu.vector_store %arg15[%c14, %c0_49], %239 {strides = array<i32>} : memref<16x32xf32, #tpu.memory_space<vmem>>, vector<2x32xf32>,
    %c0_50 = arith.constant 0 : index
    %c0_51 = arith.constant 0 : index
    %241 = vector.load %arg15[%c0_50, %c0_51] : memref<16x32xf32, #tpu.memory_space<vmem>>, vector<16x32xf32>
    %c0_52 = arith.constant 0 : index
    %c0_53 = arith.constant 0 : index
    %242 = vector.load %arg4[%c0_52, %c0_53] : memref<32x128xf32, #tpu.memory_space<vmem>>, vector<32x128xf32>
    %cst_54 = arith.constant dense<0.000000e+00> : vector<16x128xf32>
    %243 = tpu.matmul %241, %242, %cst_54 {dimension_numbers = #tpu.dot_dimension_numbers<[1], [0], [0], [1], [0, 0, 1, 1], [], []>} : vector<16x32xf32>, vector<32x128xf32>, vector<16x128xf32> -> vector<16x128xf32>
    %c0_55 = arith.constant 0 : index
    %c0_56 = arith.constant 0 : index
    %244 = vector.load %arg6[%c0_55, %c0_56] : memref<1x128xf32, #tpu.memory_space<vmem>>, vector<1x128xf32>
    %245 = vector.broadcast %244 : vector<1x128xf32> to vector<16x128xf32>
    %246 = arith.addf %243, %245 : vector<16x128xf32>
    %c0_57 = arith.constant 0 : index
    %c0_58 = arith.constant 0 : index
    %247 = vector.load %arg5[%c0_57, %c0_58] : memref<32x128xf32, #tpu.memory_space<vmem>>, vector<32x128xf32>
    %cst_59 = arith.constant 0.000000e+00 : f32
    %248 = vector.broadcast %cst_59 : f32 to vector<2x32xf32>
    %cst_60 = arith.constant 0.000000e+00 : f32
    %249 = vector.broadcast %cst_60 : f32 to vector<2x32xf32>
    %250 = vector.extract_strided_slice %246 {offsets = [0, 0], sizes = [2, 128], strides = [1, 1]} : vector<16x128xf32> to vector<2x128xf32>
    %cst_61 = arith.constant dense<0.000000e+00> : vector<2x128xf32>
    %251 = tpu.matmul %248, %247, %cst_61 {dimension_numbers = #tpu.dot_dimension_numbers<[1], [0], [0], [1], [0, 0, 1, 1], [], []>} : vector<2x32xf32>, vector<32x128xf32>, vector<2x128xf32> -> vector<2x128xf32>
    %252 = arith.addf %250, %251 : vector<2x128xf32>
    %253 = vector.extract_strided_slice %252 {offsets = [0, 0], sizes = [2, 32], strides = [1, 1]} : vector<2x128xf32> to vector<2x32xf32>
    %254 = arith.negf %253 : vector<2x32xf32>
    %255 = math.exp %254 : vector<2x32xf32>
    %cst_62 = arith.constant 1.000000e+00 : f32
    %256 = vector.broadcast %cst_62 : f32 to vector<2x32xf32>
    %257 = arith.addf %256, %255 : vector<2x32xf32>
    %258 = arith.divf %256, %257 : vector<2x32xf32>
    %259 = vector.extract_strided_slice %252 {offsets = [0, 32], sizes = [2, 32], strides = [1, 1]} : vector<2x128xf32> to vector<2x32xf32>
    %260 = arith.negf %259 : vector<2x32xf32>
    %261 = math.exp %260 : vector<2x32xf32>
    %cst_63 = arith.constant 1.000000e+00 : f32
    %262 = vector.broadcast %cst_63 : f32 to vector<2x32xf32>
    %263 = arith.addf %262, %261 : vector<2x32xf32>
    %264 = arith.divf %262, %263 : vector<2x32xf32>
    %265 = vector.extract_strided_slice %252 {offsets = [0, 64], sizes = [2, 32], strides = [1, 1]} : vector<2x128xf32> to vector<2x32xf32>
    %266 = math.tanh %265 : vector<2x32xf32>
    %267 = vector.extract_strided_slice %252 {offsets = [0, 96], sizes = [2, 32], strides = [1, 1]} : vector<2x128xf32> to vector<2x32xf32>
    %268 = arith.negf %267 : vector<2x32xf32>
    %269 = math.exp %268 : vector<2x32xf32>
    %cst_64 = arith.constant 1.000000e+00 : f32
    %270 = vector.broadcast %cst_64 : f32 to vector<2x32xf32>
    %271 = arith.addf %270, %269 : vector<2x32xf32>
    %272 = arith.divf %270, %271 : vector<2x32xf32>
    %273 = arith.mulf %264, %249 : vector<2x32xf32>
    %274 = arith.mulf %258, %266 : vector<2x32xf32>
    %275 = arith.addf %273, %274 : vector<2x32xf32>
    %276 = math.tanh %275 : vector<2x32xf32>
    %277 = arith.mulf %272, %276 : vector<2x32xf32>
    %c0_65 = arith.constant 0 : index
    %c0_66 = arith.constant 0 : index
    %278 = vector.load %arg15[%c0_65, %c0_66] : memref<16x32xf32, #tpu.memory_space<vmem>>, vector<2x32xf32>
    tpu.vector_store %arg15[%c0_65, %c0_66], %277 {strides = array<i32>} : memref<16x32xf32, #tpu.memory_space<vmem>>, vector<2x32xf32>,
    %279 = vector.extract_strided_slice %246 {offsets = [2, 0], sizes = [2, 128], strides = [1, 1]} : vector<16x128xf32> to vector<2x128xf32>
    %cst_67 = arith.constant dense<0.000000e+00> : vector<2x128xf32>
    %280 = tpu.matmul %277, %247, %cst_67 {dimension_numbers = #tpu.dot_dimension_numbers<[1], [0], [0], [1], [0, 0, 1, 1], [], []>} : vector<2x32xf32>, vector<32x128xf32>, vector<2x128xf32> -> vector<2x128xf32>
    %281 = arith.addf %279, %280 : vector<2x128xf32>
    %282 = vector.extract_strided_slice %281 {offsets = [0, 0], sizes = [2, 32], strides = [1, 1]} : vector<2x128xf32> to vector<2x32xf32>
    %283 = arith.negf %282 : vector<2x32xf32>
    %284 = math.exp %283 : vector<2x32xf32>
    %cst_68 = arith.constant 1.000000e+00 : f32
    %285 = vector.broadcast %cst_68 : f32 to vector<2x32xf32>
    %286 = arith.addf %285, %284 : vector<2x32xf32>
    %287 = arith.divf %285, %286 : vector<2x32xf32>
    %288 = vector.extract_strided_slice %281 {offsets = [0, 32], sizes = [2, 32], strides = [1, 1]} : vector<2x128xf32> to vector<2x32xf32>
    %289 = arith.negf %288 : vector<2x32xf32>
    %290 = math.exp %289 : vector<2x32xf32>
    %cst_69 = arith.constant 1.000000e+00 : f32
    %291 = vector.broadcast %cst_69 : f32 to vector<2x32xf32>
    %292 = arith.addf %291, %290 : vector<2x32xf32>
    %293 = arith.divf %291, %292 : vector<2x32xf32>
    %294 = vector.extract_strided_slice %281 {offsets = [0, 64], sizes = [2, 32], strides = [1, 1]} : vector<2x128xf32> to vector<2x32xf32>
    %295 = math.tanh %294 : vector<2x32xf32>
    %296 = vector.extract_strided_slice %281 {offsets = [0, 96], sizes = [2, 32], strides = [1, 1]} : vector<2x128xf32> to vector<2x32xf32>
    %297 = arith.negf %296 : vector<2x32xf32>
    %298 = math.exp %297 : vector<2x32xf32>
    %cst_70 = arith.constant 1.000000e+00 : f32
    %299 = vector.broadcast %cst_70 : f32 to vector<2x32xf32>
    %300 = arith.addf %299, %298 : vector<2x32xf32>
    %301 = arith.divf %299, %300 : vector<2x32xf32>
    %302 = arith.mulf %293, %275 : vector<2x32xf32>
    %303 = arith.mulf %287, %295 : vector<2x32xf32>
    %304 = arith.addf %302, %303 : vector<2x32xf32>
    %305 = math.tanh %304 : vector<2x32xf32>
    %306 = arith.mulf %301, %305 : vector<2x32xf32>
    %c2_71 = arith.constant 2 : index
    %c0_72 = arith.constant 0 : index
    %307 = vector.load %arg15[%c2_71, %c0_72] : memref<16x32xf32, #tpu.memory_space<vmem>>, vector<2x32xf32>
    tpu.vector_store %arg15[%c2_71, %c0_72], %306 {strides = array<i32>} : memref<16x32xf32, #tpu.memory_space<vmem>>, vector<2x32xf32>,
    %308 = vector.extract_strided_slice %246 {offsets = [4, 0], sizes = [2, 128], strides = [1, 1]} : vector<16x128xf32> to vector<2x128xf32>
    %cst_73 = arith.constant dense<0.000000e+00> : vector<2x128xf32>
    %309 = tpu.matmul %306, %247, %cst_73 {dimension_numbers = #tpu.dot_dimension_numbers<[1], [0], [0], [1], [0, 0, 1, 1], [], []>} : vector<2x32xf32>, vector<32x128xf32>, vector<2x128xf32> -> vector<2x128xf32>
    %310 = arith.addf %308, %309 : vector<2x128xf32>
    %311 = vector.extract_strided_slice %310 {offsets = [0, 0], sizes = [2, 32], strides = [1, 1]} : vector<2x128xf32> to vector<2x32xf32>
    %312 = arith.negf %311 : vector<2x32xf32>
    %313 = math.exp %312 : vector<2x32xf32>
    %cst_74 = arith.constant 1.000000e+00 : f32
    %314 = vector.broadcast %cst_74 : f32 to vector<2x32xf32>
    %315 = arith.addf %314, %313 : vector<2x32xf32>
    %316 = arith.divf %314, %315 : vector<2x32xf32>
    %317 = vector.extract_strided_slice %310 {offsets = [0, 32], sizes = [2, 32], strides = [1, 1]} : vector<2x128xf32> to vector<2x32xf32>
    %318 = arith.negf %317 : vector<2x32xf32>
    %319 = math.exp %318 : vector<2x32xf32>
    %cst_75 = arith.constant 1.000000e+00 : f32
    %320 = vector.broadcast %cst_75 : f32 to vector<2x32xf32>
    %321 = arith.addf %320, %319 : vector<2x32xf32>
    %322 = arith.divf %320, %321 : vector<2x32xf32>
    %323 = vector.extract_strided_slice %310 {offsets = [0, 64], sizes = [2, 32], strides = [1, 1]} : vector<2x128xf32> to vector<2x32xf32>
    %324 = math.tanh %323 : vector<2x32xf32>
    %325 = vector.extract_strided_slice %310 {offsets = [0, 96], sizes = [2, 32], strides = [1, 1]} : vector<2x128xf32> to vector<2x32xf32>
    %326 = arith.negf %325 : vector<2x32xf32>
    %327 = math.exp %326 : vector<2x32xf32>
    %cst_76 = arith.constant 1.000000e+00 : f32
    %328 = vector.broadcast %cst_76 : f32 to vector<2x32xf32>
    %329 = arith.addf %328, %327 : vector<2x32xf32>
    %330 = arith.divf %328, %329 : vector<2x32xf32>
    %331 = arith.mulf %322, %304 : vector<2x32xf32>
    %332 = arith.mulf %316, %324 : vector<2x32xf32>
    %333 = arith.addf %331, %332 : vector<2x32xf32>
    %334 = math.tanh %333 : vector<2x32xf32>
    %335 = arith.mulf %330, %334 : vector<2x32xf32>
    %c4_77 = arith.constant 4 : index
    %c0_78 = arith.constant 0 : index
    %336 = vector.load %arg15[%c4_77, %c0_78] : memref<16x32xf32, #tpu.memory_space<vmem>>, vector<2x32xf32>
    tpu.vector_store %arg15[%c4_77, %c0_78], %335 {strides = array<i32>} : memref<16x32xf32, #tpu.memory_space<vmem>>, vector<2x32xf32>,
    %337 = vector.extract_strided_slice %246 {offsets = [6, 0], sizes = [2, 128], strides = [1, 1]} : vector<16x128xf32> to vector<2x128xf32>
    %cst_79 = arith.constant dense<0.000000e+00> : vector<2x128xf32>
    %338 = tpu.matmul %335, %247, %cst_79 {dimension_numbers = #tpu.dot_dimension_numbers<[1], [0], [0], [1], [0, 0, 1, 1], [], []>} : vector<2x32xf32>, vector<32x128xf32>, vector<2x128xf32> -> vector<2x128xf32>
    %339 = arith.addf %337, %338 : vector<2x128xf32>
    %340 = vector.extract_strided_slice %339 {offsets = [0, 0], sizes = [2, 32], strides = [1, 1]} : vector<2x128xf32> to vector<2x32xf32>
    %341 = arith.negf %340 : vector<2x32xf32>
    %342 = math.exp %341 : vector<2x32xf32>
    %cst_80 = arith.constant 1.000000e+00 : f32
    %343 = vector.broadcast %cst_80 : f32 to vector<2x32xf32>
    %344 = arith.addf %343, %342 : vector<2x32xf32>
    %345 = arith.divf %343, %344 : vector<2x32xf32>
    %346 = vector.extract_strided_slice %339 {offsets = [0, 32], sizes = [2, 32], strides = [1, 1]} : vector<2x128xf32> to vector<2x32xf32>
    %347 = arith.negf %346 : vector<2x32xf32>
    %348 = math.exp %347 : vector<2x32xf32>
    %cst_81 = arith.constant 1.000000e+00 : f32
    %349 = vector.broadcast %cst_81 : f32 to vector<2x32xf32>
    %350 = arith.addf %349, %348 : vector<2x32xf32>
    %351 = arith.divf %349, %350 : vector<2x32xf32>
    %352 = vector.extract_strided_slice %339 {offsets = [0, 64], sizes = [2, 32], strides = [1, 1]} : vector<2x128xf32> to vector<2x32xf32>
    %353 = math.tanh %352 : vector<2x32xf32>
    %354 = vector.extract_strided_slice %339 {offsets = [0, 96], sizes = [2, 32], strides = [1, 1]} : vector<2x128xf32> to vector<2x32xf32>
    %355 = arith.negf %354 : vector<2x32xf32>
    %356 = math.exp %355 : vector<2x32xf32>
    %cst_82 = arith.constant 1.000000e+00 : f32
    %357 = vector.broadcast %cst_82 : f32 to vector<2x32xf32>
    %358 = arith.addf %357, %356 : vector<2x32xf32>
    %359 = arith.divf %357, %358 : vector<2x32xf32>
    %360 = arith.mulf %351, %333 : vector<2x32xf32>
    %361 = arith.mulf %345, %353 : vector<2x32xf32>
    %362 = arith.addf %360, %361 : vector<2x32xf32>
    %363 = math.tanh %362 : vector<2x32xf32>
    %364 = arith.mulf %359, %363 : vector<2x32xf32>
    %c6_83 = arith.constant 6 : index
    %c0_84 = arith.constant 0 : index
    %365 = vector.load %arg15[%c6_83, %c0_84] : memref<16x32xf32, #tpu.memory_space<vmem>>, vector<2x32xf32>
    tpu.vector_store %arg15[%c6_83, %c0_84], %364 {strides = array<i32>} : memref<16x32xf32, #tpu.memory_space<vmem>>, vector<2x32xf32>,
    %366 = vector.extract_strided_slice %246 {offsets = [8, 0], sizes = [2, 128], strides = [1, 1]} : vector<16x128xf32> to vector<2x128xf32>
    %cst_85 = arith.constant dense<0.000000e+00> : vector<2x128xf32>
    %367 = tpu.matmul %364, %247, %cst_85 {dimension_numbers = #tpu.dot_dimension_numbers<[1], [0], [0], [1], [0, 0, 1, 1], [], []>} : vector<2x32xf32>, vector<32x128xf32>, vector<2x128xf32> -> vector<2x128xf32>
    %368 = arith.addf %366, %367 : vector<2x128xf32>
    %369 = vector.extract_strided_slice %368 {offsets = [0, 0], sizes = [2, 32], strides = [1, 1]} : vector<2x128xf32> to vector<2x32xf32>
    %370 = arith.negf %369 : vector<2x32xf32>
    %371 = math.exp %370 : vector<2x32xf32>
    %cst_86 = arith.constant 1.000000e+00 : f32
    %372 = vector.broadcast %cst_86 : f32 to vector<2x32xf32>
    %373 = arith.addf %372, %371 : vector<2x32xf32>
    %374 = arith.divf %372, %373 : vector<2x32xf32>
    %375 = vector.extract_strided_slice %368 {offsets = [0, 32], sizes = [2, 32], strides = [1, 1]} : vector<2x128xf32> to vector<2x32xf32>
    %376 = arith.negf %375 : vector<2x32xf32>
    %377 = math.exp %376 : vector<2x32xf32>
    %cst_87 = arith.constant 1.000000e+00 : f32
    %378 = vector.broadcast %cst_87 : f32 to vector<2x32xf32>
    %379 = arith.addf %378, %377 : vector<2x32xf32>
    %380 = arith.divf %378, %379 : vector<2x32xf32>
    %381 = vector.extract_strided_slice %368 {offsets = [0, 64], sizes = [2, 32], strides = [1, 1]} : vector<2x128xf32> to vector<2x32xf32>
    %382 = math.tanh %381 : vector<2x32xf32>
    %383 = vector.extract_strided_slice %368 {offsets = [0, 96], sizes = [2, 32], strides = [1, 1]} : vector<2x128xf32> to vector<2x32xf32>
    %384 = arith.negf %383 : vector<2x32xf32>
    %385 = math.exp %384 : vector<2x32xf32>
    %cst_88 = arith.constant 1.000000e+00 : f32
    %386 = vector.broadcast %cst_88 : f32 to vector<2x32xf32>
    %387 = arith.addf %386, %385 : vector<2x32xf32>
    %388 = arith.divf %386, %387 : vector<2x32xf32>
    %389 = arith.mulf %380, %362 : vector<2x32xf32>
    %390 = arith.mulf %374, %382 : vector<2x32xf32>
    %391 = arith.addf %389, %390 : vector<2x32xf32>
    %392 = math.tanh %391 : vector<2x32xf32>
    %393 = arith.mulf %388, %392 : vector<2x32xf32>
    %c8_89 = arith.constant 8 : index
    %c0_90 = arith.constant 0 : index
    %394 = vector.load %arg15[%c8_89, %c0_90] : memref<16x32xf32, #tpu.memory_space<vmem>>, vector<2x32xf32>
    tpu.vector_store %arg15[%c8_89, %c0_90], %393 {strides = array<i32>} : memref<16x32xf32, #tpu.memory_space<vmem>>, vector<2x32xf32>,
    %395 = vector.extract_strided_slice %246 {offsets = [10, 0], sizes = [2, 128], strides = [1, 1]} : vector<16x128xf32> to vector<2x128xf32>
    %cst_91 = arith.constant dense<0.000000e+00> : vector<2x128xf32>
    %396 = tpu.matmul %393, %247, %cst_91 {dimension_numbers = #tpu.dot_dimension_numbers<[1], [0], [0], [1], [0, 0, 1, 1], [], []>} : vector<2x32xf32>, vector<32x128xf32>, vector<2x128xf32> -> vector<2x128xf32>
    %397 = arith.addf %395, %396 : vector<2x128xf32>
    %398 = vector.extract_strided_slice %397 {offsets = [0, 0], sizes = [2, 32], strides = [1, 1]} : vector<2x128xf32> to vector<2x32xf32>
    %399 = arith.negf %398 : vector<2x32xf32>
    %400 = math.exp %399 : vector<2x32xf32>
    %cst_92 = arith.constant 1.000000e+00 : f32
    %401 = vector.broadcast %cst_92 : f32 to vector<2x32xf32>
    %402 = arith.addf %401, %400 : vector<2x32xf32>
    %403 = arith.divf %401, %402 : vector<2x32xf32>
    %404 = vector.extract_strided_slice %397 {offsets = [0, 32], sizes = [2, 32], strides = [1, 1]} : vector<2x128xf32> to vector<2x32xf32>
    %405 = arith.negf %404 : vector<2x32xf32>
    %406 = math.exp %405 : vector<2x32xf32>
    %cst_93 = arith.constant 1.000000e+00 : f32
    %407 = vector.broadcast %cst_93 : f32 to vector<2x32xf32>
    %408 = arith.addf %407, %406 : vector<2x32xf32>
    %409 = arith.divf %407, %408 : vector<2x32xf32>
    %410 = vector.extract_strided_slice %397 {offsets = [0, 64], sizes = [2, 32], strides = [1, 1]} : vector<2x128xf32> to vector<2x32xf32>
    %411 = math.tanh %410 : vector<2x32xf32>
    %412 = vector.extract_strided_slice %397 {offsets = [0, 96], sizes = [2, 32], strides = [1, 1]} : vector<2x128xf32> to vector<2x32xf32>
    %413 = arith.negf %412 : vector<2x32xf32>
    %414 = math.exp %413 : vector<2x32xf32>
    %cst_94 = arith.constant 1.000000e+00 : f32
    %415 = vector.broadcast %cst_94 : f32 to vector<2x32xf32>
    %416 = arith.addf %415, %414 : vector<2x32xf32>
    %417 = arith.divf %415, %416 : vector<2x32xf32>
    %418 = arith.mulf %409, %391 : vector<2x32xf32>
    %419 = arith.mulf %403, %411 : vector<2x32xf32>
    %420 = arith.addf %418, %419 : vector<2x32xf32>
    %421 = math.tanh %420 : vector<2x32xf32>
    %422 = arith.mulf %417, %421 : vector<2x32xf32>
    %c10_95 = arith.constant 10 : index
    %c0_96 = arith.constant 0 : index
    %423 = vector.load %arg15[%c10_95, %c0_96] : memref<16x32xf32, #tpu.memory_space<vmem>>, vector<2x32xf32>
    tpu.vector_store %arg15[%c10_95, %c0_96], %422 {strides = array<i32>} : memref<16x32xf32, #tpu.memory_space<vmem>>, vector<2x32xf32>,
    %424 = vector.extract_strided_slice %246 {offsets = [12, 0], sizes = [2, 128], strides = [1, 1]} : vector<16x128xf32> to vector<2x128xf32>
    %cst_97 = arith.constant dense<0.000000e+00> : vector<2x128xf32>
    %425 = tpu.matmul %422, %247, %cst_97 {dimension_numbers = #tpu.dot_dimension_numbers<[1], [0], [0], [1], [0, 0, 1, 1], [], []>} : vector<2x32xf32>, vector<32x128xf32>, vector<2x128xf32> -> vector<2x128xf32>
    %426 = arith.addf %424, %425 : vector<2x128xf32>
    %427 = vector.extract_strided_slice %426 {offsets = [0, 0], sizes = [2, 32], strides = [1, 1]} : vector<2x128xf32> to vector<2x32xf32>
    %428 = arith.negf %427 : vector<2x32xf32>
    %429 = math.exp %428 : vector<2x32xf32>
    %cst_98 = arith.constant 1.000000e+00 : f32
    %430 = vector.broadcast %cst_98 : f32 to vector<2x32xf32>
    %431 = arith.addf %430, %429 : vector<2x32xf32>
    %432 = arith.divf %430, %431 : vector<2x32xf32>
    %433 = vector.extract_strided_slice %426 {offsets = [0, 32], sizes = [2, 32], strides = [1, 1]} : vector<2x128xf32> to vector<2x32xf32>
    %434 = arith.negf %433 : vector<2x32xf32>
    %435 = math.exp %434 : vector<2x32xf32>
    %cst_99 = arith.constant 1.000000e+00 : f32
    %436 = vector.broadcast %cst_99 : f32 to vector<2x32xf32>
    %437 = arith.addf %436, %435 : vector<2x32xf32>
    %438 = arith.divf %436, %437 : vector<2x32xf32>
    %439 = vector.extract_strided_slice %426 {offsets = [0, 64], sizes = [2, 32], strides = [1, 1]} : vector<2x128xf32> to vector<2x32xf32>
    %440 = math.tanh %439 : vector<2x32xf32>
    %441 = vector.extract_strided_slice %426 {offsets = [0, 96], sizes = [2, 32], strides = [1, 1]} : vector<2x128xf32> to vector<2x32xf32>
    %442 = arith.negf %441 : vector<2x32xf32>
    %443 = math.exp %442 : vector<2x32xf32>
    %cst_100 = arith.constant 1.000000e+00 : f32
    %444 = vector.broadcast %cst_100 : f32 to vector<2x32xf32>
    %445 = arith.addf %444, %443 : vector<2x32xf32>
    %446 = arith.divf %444, %445 : vector<2x32xf32>
    %447 = arith.mulf %438, %420 : vector<2x32xf32>
    %448 = arith.mulf %432, %440 : vector<2x32xf32>
    %449 = arith.addf %447, %448 : vector<2x32xf32>
    %450 = math.tanh %449 : vector<2x32xf32>
    %451 = arith.mulf %446, %450 : vector<2x32xf32>
    %c12_101 = arith.constant 12 : index
    %c0_102 = arith.constant 0 : index
    %452 = vector.load %arg15[%c12_101, %c0_102] : memref<16x32xf32, #tpu.memory_space<vmem>>, vector<2x32xf32>
    tpu.vector_store %arg15[%c12_101, %c0_102], %451 {strides = array<i32>} : memref<16x32xf32, #tpu.memory_space<vmem>>, vector<2x32xf32>,
    %453 = vector.extract_strided_slice %246 {offsets = [14, 0], sizes = [2, 128], strides = [1, 1]} : vector<16x128xf32> to vector<2x128xf32>
    %cst_103 = arith.constant dense<0.000000e+00> : vector<2x128xf32>
    %454 = tpu.matmul %451, %247, %cst_103 {dimension_numbers = #tpu.dot_dimension_numbers<[1], [0], [0], [1], [0, 0, 1, 1], [], []>} : vector<2x32xf32>, vector<32x128xf32>, vector<2x128xf32> -> vector<2x128xf32>
    %455 = arith.addf %453, %454 : vector<2x128xf32>
    %456 = vector.extract_strided_slice %455 {offsets = [0, 0], sizes = [2, 32], strides = [1, 1]} : vector<2x128xf32> to vector<2x32xf32>
    %457 = arith.negf %456 : vector<2x32xf32>
    %458 = math.exp %457 : vector<2x32xf32>
    %cst_104 = arith.constant 1.000000e+00 : f32
    %459 = vector.broadcast %cst_104 : f32 to vector<2x32xf32>
    %460 = arith.addf %459, %458 : vector<2x32xf32>
    %461 = arith.divf %459, %460 : vector<2x32xf32>
    %462 = vector.extract_strided_slice %455 {offsets = [0, 32], sizes = [2, 32], strides = [1, 1]} : vector<2x128xf32> to vector<2x32xf32>
    %463 = arith.negf %462 : vector<2x32xf32>
    %464 = math.exp %463 : vector<2x32xf32>
    %cst_105 = arith.constant 1.000000e+00 : f32
    %465 = vector.broadcast %cst_105 : f32 to vector<2x32xf32>
    %466 = arith.addf %465, %464 : vector<2x32xf32>
    %467 = arith.divf %465, %466 : vector<2x32xf32>
    %468 = vector.extract_strided_slice %455 {offsets = [0, 64], sizes = [2, 32], strides = [1, 1]} : vector<2x128xf32> to vector<2x32xf32>
    %469 = math.tanh %468 : vector<2x32xf32>
    %470 = vector.extract_strided_slice %455 {offsets = [0, 96], sizes = [2, 32], strides = [1, 1]} : vector<2x128xf32> to vector<2x32xf32>
    %471 = arith.negf %470 : vector<2x32xf32>
    %472 = math.exp %471 : vector<2x32xf32>
    %cst_106 = arith.constant 1.000000e+00 : f32
    %473 = vector.broadcast %cst_106 : f32 to vector<2x32xf32>
    %474 = arith.addf %473, %472 : vector<2x32xf32>
    %475 = arith.divf %473, %474 : vector<2x32xf32>
    %476 = arith.mulf %467, %449 : vector<2x32xf32>
    %477 = arith.mulf %461, %469 : vector<2x32xf32>
    %478 = arith.addf %476, %477 : vector<2x32xf32>
    %479 = math.tanh %478 : vector<2x32xf32>
    %480 = arith.mulf %475, %479 : vector<2x32xf32>
    %c14_107 = arith.constant 14 : index
    %c0_108 = arith.constant 0 : index
    %481 = vector.load %arg15[%c14_107, %c0_108] : memref<16x32xf32, #tpu.memory_space<vmem>>, vector<2x32xf32>
    tpu.vector_store %arg15[%c14_107, %c0_108], %480 {strides = array<i32>} : memref<16x32xf32, #tpu.memory_space<vmem>>, vector<2x32xf32>,
    %c0_109 = arith.constant 0 : index
    %c0_110 = arith.constant 0 : index
    %482 = vector.load %arg15[%c0_109, %c0_110] : memref<16x32xf32, #tpu.memory_space<vmem>>, vector<16x32xf32>
    %c0_111 = arith.constant 0 : index
    %c0_112 = arith.constant 0 : index
    %483 = vector.load %arg7[%c0_111, %c0_112] : memref<32x128xf32, #tpu.memory_space<vmem>>, vector<32x128xf32>
    %cst_113 = arith.constant dense<0.000000e+00> : vector<16x128xf32>
    %484 = tpu.matmul %482, %483, %cst_113 {dimension_numbers = #tpu.dot_dimension_numbers<[1], [0], [0], [1], [0, 0, 1, 1], [], []>} : vector<16x32xf32>, vector<32x128xf32>, vector<16x128xf32> -> vector<16x128xf32>
    %c0_114 = arith.constant 0 : index
    %c0_115 = arith.constant 0 : index
    %485 = vector.load %arg9[%c0_114, %c0_115] : memref<1x128xf32, #tpu.memory_space<vmem>>, vector<1x128xf32>
    %486 = vector.broadcast %485 : vector<1x128xf32> to vector<16x128xf32>
    %487 = arith.addf %484, %486 : vector<16x128xf32>
    %c0_116 = arith.constant 0 : index
    %c0_117 = arith.constant 0 : index
    %488 = vector.load %arg8[%c0_116, %c0_117] : memref<32x128xf32, #tpu.memory_space<vmem>>, vector<32x128xf32>
    %cst_118 = arith.constant 0.000000e+00 : f32
    %489 = vector.broadcast %cst_118 : f32 to vector<2x32xf32>
    %cst_119 = arith.constant 0.000000e+00 : f32
    %490 = vector.broadcast %cst_119 : f32 to vector<2x32xf32>
    %491 = vector.extract_strided_slice %487 {offsets = [0, 0], sizes = [2, 128], strides = [1, 1]} : vector<16x128xf32> to vector<2x128xf32>
    %cst_120 = arith.constant dense<0.000000e+00> : vector<2x128xf32>
    %492 = tpu.matmul %489, %488, %cst_120 {dimension_numbers = #tpu.dot_dimension_numbers<[1], [0], [0], [1], [0, 0, 1, 1], [], []>} : vector<2x32xf32>, vector<32x128xf32>, vector<2x128xf32> -> vector<2x128xf32>
    %493 = arith.addf %491, %492 : vector<2x128xf32>
    %494 = vector.extract_strided_slice %493 {offsets = [0, 0], sizes = [2, 32], strides = [1, 1]} : vector<2x128xf32> to vector<2x32xf32>
    %495 = arith.negf %494 : vector<2x32xf32>
    %496 = math.exp %495 : vector<2x32xf32>
    %cst_121 = arith.constant 1.000000e+00 : f32
    %497 = vector.broadcast %cst_121 : f32 to vector<2x32xf32>
    %498 = arith.addf %497, %496 : vector<2x32xf32>
    %499 = arith.divf %497, %498 : vector<2x32xf32>
    %500 = vector.extract_strided_slice %493 {offsets = [0, 32], sizes = [2, 32], strides = [1, 1]} : vector<2x128xf32> to vector<2x32xf32>
    %501 = arith.negf %500 : vector<2x32xf32>
    %502 = math.exp %501 : vector<2x32xf32>
    %cst_122 = arith.constant 1.000000e+00 : f32
    %503 = vector.broadcast %cst_122 : f32 to vector<2x32xf32>
    %504 = arith.addf %503, %502 : vector<2x32xf32>
    %505 = arith.divf %503, %504 : vector<2x32xf32>
    %506 = vector.extract_strided_slice %493 {offsets = [0, 64], sizes = [2, 32], strides = [1, 1]} : vector<2x128xf32> to vector<2x32xf32>
    %507 = math.tanh %506 : vector<2x32xf32>
    %508 = vector.extract_strided_slice %493 {offsets = [0, 96], sizes = [2, 32], strides = [1, 1]} : vector<2x128xf32> to vector<2x32xf32>
    %509 = arith.negf %508 : vector<2x32xf32>
    %510 = math.exp %509 : vector<2x32xf32>
    %cst_123 = arith.constant 1.000000e+00 : f32
    %511 = vector.broadcast %cst_123 : f32 to vector<2x32xf32>
    %512 = arith.addf %511, %510 : vector<2x32xf32>
    %513 = arith.divf %511, %512 : vector<2x32xf32>
    %514 = arith.mulf %505, %490 : vector<2x32xf32>
    %515 = arith.mulf %499, %507 : vector<2x32xf32>
    %516 = arith.addf %514, %515 : vector<2x32xf32>
    %517 = math.tanh %516 : vector<2x32xf32>
    %518 = arith.mulf %513, %517 : vector<2x32xf32>
    %c0_124 = arith.constant 0 : index
    %c0_125 = arith.constant 0 : index
    %519 = vector.load %arg15[%c0_124, %c0_125] : memref<16x32xf32, #tpu.memory_space<vmem>>, vector<2x32xf32>
    tpu.vector_store %arg15[%c0_124, %c0_125], %518 {strides = array<i32>} : memref<16x32xf32, #tpu.memory_space<vmem>>, vector<2x32xf32>,
    %520 = vector.extract_strided_slice %487 {offsets = [2, 0], sizes = [2, 128], strides = [1, 1]} : vector<16x128xf32> to vector<2x128xf32>
    %cst_126 = arith.constant dense<0.000000e+00> : vector<2x128xf32>
    %521 = tpu.matmul %518, %488, %cst_126 {dimension_numbers = #tpu.dot_dimension_numbers<[1], [0], [0], [1], [0, 0, 1, 1], [], []>} : vector<2x32xf32>, vector<32x128xf32>, vector<2x128xf32> -> vector<2x128xf32>
    %522 = arith.addf %520, %521 : vector<2x128xf32>
    %523 = vector.extract_strided_slice %522 {offsets = [0, 0], sizes = [2, 32], strides = [1, 1]} : vector<2x128xf32> to vector<2x32xf32>
    %524 = arith.negf %523 : vector<2x32xf32>
    %525 = math.exp %524 : vector<2x32xf32>
    %cst_127 = arith.constant 1.000000e+00 : f32
    %526 = vector.broadcast %cst_127 : f32 to vector<2x32xf32>
    %527 = arith.addf %526, %525 : vector<2x32xf32>
    %528 = arith.divf %526, %527 : vector<2x32xf32>
    %529 = vector.extract_strided_slice %522 {offsets = [0, 32], sizes = [2, 32], strides = [1, 1]} : vector<2x128xf32> to vector<2x32xf32>
    %530 = arith.negf %529 : vector<2x32xf32>
    %531 = math.exp %530 : vector<2x32xf32>
    %cst_128 = arith.constant 1.000000e+00 : f32
    %532 = vector.broadcast %cst_128 : f32 to vector<2x32xf32>
    %533 = arith.addf %532, %531 : vector<2x32xf32>
    %534 = arith.divf %532, %533 : vector<2x32xf32>
    %535 = vector.extract_strided_slice %522 {offsets = [0, 64], sizes = [2, 32], strides = [1, 1]} : vector<2x128xf32> to vector<2x32xf32>
    %536 = math.tanh %535 : vector<2x32xf32>
    %537 = vector.extract_strided_slice %522 {offsets = [0, 96], sizes = [2, 32], strides = [1, 1]} : vector<2x128xf32> to vector<2x32xf32>
    %538 = arith.negf %537 : vector<2x32xf32>
    %539 = math.exp %538 : vector<2x32xf32>
    %cst_129 = arith.constant 1.000000e+00 : f32
    %540 = vector.broadcast %cst_129 : f32 to vector<2x32xf32>
    %541 = arith.addf %540, %539 : vector<2x32xf32>
    %542 = arith.divf %540, %541 : vector<2x32xf32>
    %543 = arith.mulf %534, %516 : vector<2x32xf32>
    %544 = arith.mulf %528, %536 : vector<2x32xf32>
    %545 = arith.addf %543, %544 : vector<2x32xf32>
    %546 = math.tanh %545 : vector<2x32xf32>
    %547 = arith.mulf %542, %546 : vector<2x32xf32>
    %c2_130 = arith.constant 2 : index
    %c0_131 = arith.constant 0 : index
    %548 = vector.load %arg15[%c2_130, %c0_131] : memref<16x32xf32, #tpu.memory_space<vmem>>, vector<2x32xf32>
    tpu.vector_store %arg15[%c2_130, %c0_131], %547 {strides = array<i32>} : memref<16x32xf32, #tpu.memory_space<vmem>>, vector<2x32xf32>,
    %549 = vector.extract_strided_slice %487 {offsets = [4, 0], sizes = [2, 128], strides = [1, 1]} : vector<16x128xf32> to vector<2x128xf32>
    %cst_132 = arith.constant dense<0.000000e+00> : vector<2x128xf32>
    %550 = tpu.matmul %547, %488, %cst_132 {dimension_numbers = #tpu.dot_dimension_numbers<[1], [0], [0], [1], [0, 0, 1, 1], [], []>} : vector<2x32xf32>, vector<32x128xf32>, vector<2x128xf32> -> vector<2x128xf32>
    %551 = arith.addf %549, %550 : vector<2x128xf32>
    %552 = vector.extract_strided_slice %551 {offsets = [0, 0], sizes = [2, 32], strides = [1, 1]} : vector<2x128xf32> to vector<2x32xf32>
    %553 = arith.negf %552 : vector<2x32xf32>
    %554 = math.exp %553 : vector<2x32xf32>
    %cst_133 = arith.constant 1.000000e+00 : f32
    %555 = vector.broadcast %cst_133 : f32 to vector<2x32xf32>
    %556 = arith.addf %555, %554 : vector<2x32xf32>
    %557 = arith.divf %555, %556 : vector<2x32xf32>
    %558 = vector.extract_strided_slice %551 {offsets = [0, 32], sizes = [2, 32], strides = [1, 1]} : vector<2x128xf32> to vector<2x32xf32>
    %559 = arith.negf %558 : vector<2x32xf32>
    %560 = math.exp %559 : vector<2x32xf32>
    %cst_134 = arith.constant 1.000000e+00 : f32
    %561 = vector.broadcast %cst_134 : f32 to vector<2x32xf32>
    %562 = arith.addf %561, %560 : vector<2x32xf32>
    %563 = arith.divf %561, %562 : vector<2x32xf32>
    %564 = vector.extract_strided_slice %551 {offsets = [0, 64], sizes = [2, 32], strides = [1, 1]} : vector<2x128xf32> to vector<2x32xf32>
    %565 = math.tanh %564 : vector<2x32xf32>
    %566 = vector.extract_strided_slice %551 {offsets = [0, 96], sizes = [2, 32], strides = [1, 1]} : vector<2x128xf32> to vector<2x32xf32>
    %567 = arith.negf %566 : vector<2x32xf32>
    %568 = math.exp %567 : vector<2x32xf32>
    %cst_135 = arith.constant 1.000000e+00 : f32
    %569 = vector.broadcast %cst_135 : f32 to vector<2x32xf32>
    %570 = arith.addf %569, %568 : vector<2x32xf32>
    %571 = arith.divf %569, %570 : vector<2x32xf32>
    %572 = arith.mulf %563, %545 : vector<2x32xf32>
    %573 = arith.mulf %557, %565 : vector<2x32xf32>
    %574 = arith.addf %572, %573 : vector<2x32xf32>
    %575 = math.tanh %574 : vector<2x32xf32>
    %576 = arith.mulf %571, %575 : vector<2x32xf32>
    %c4_136 = arith.constant 4 : index
    %c0_137 = arith.constant 0 : index
    %577 = vector.load %arg15[%c4_136, %c0_137] : memref<16x32xf32, #tpu.memory_space<vmem>>, vector<2x32xf32>
    tpu.vector_store %arg15[%c4_136, %c0_137], %576 {strides = array<i32>} : memref<16x32xf32, #tpu.memory_space<vmem>>, vector<2x32xf32>,
    %578 = vector.extract_strided_slice %487 {offsets = [6, 0], sizes = [2, 128], strides = [1, 1]} : vector<16x128xf32> to vector<2x128xf32>
    %cst_138 = arith.constant dense<0.000000e+00> : vector<2x128xf32>
    %579 = tpu.matmul %576, %488, %cst_138 {dimension_numbers = #tpu.dot_dimension_numbers<[1], [0], [0], [1], [0, 0, 1, 1], [], []>} : vector<2x32xf32>, vector<32x128xf32>, vector<2x128xf32> -> vector<2x128xf32>
    %580 = arith.addf %578, %579 : vector<2x128xf32>
    %581 = vector.extract_strided_slice %580 {offsets = [0, 0], sizes = [2, 32], strides = [1, 1]} : vector<2x128xf32> to vector<2x32xf32>
    %582 = arith.negf %581 : vector<2x32xf32>
    %583 = math.exp %582 : vector<2x32xf32>
    %cst_139 = arith.constant 1.000000e+00 : f32
    %584 = vector.broadcast %cst_139 : f32 to vector<2x32xf32>
    %585 = arith.addf %584, %583 : vector<2x32xf32>
    %586 = arith.divf %584, %585 : vector<2x32xf32>
    %587 = vector.extract_strided_slice %580 {offsets = [0, 32], sizes = [2, 32], strides = [1, 1]} : vector<2x128xf32> to vector<2x32xf32>
    %588 = arith.negf %587 : vector<2x32xf32>
    %589 = math.exp %588 : vector<2x32xf32>
    %cst_140 = arith.constant 1.000000e+00 : f32
    %590 = vector.broadcast %cst_140 : f32 to vector<2x32xf32>
    %591 = arith.addf %590, %589 : vector<2x32xf32>
    %592 = arith.divf %590, %591 : vector<2x32xf32>
    %593 = vector.extract_strided_slice %580 {offsets = [0, 64], sizes = [2, 32], strides = [1, 1]} : vector<2x128xf32> to vector<2x32xf32>
    %594 = math.tanh %593 : vector<2x32xf32>
    %595 = vector.extract_strided_slice %580 {offsets = [0, 96], sizes = [2, 32], strides = [1, 1]} : vector<2x128xf32> to vector<2x32xf32>
    %596 = arith.negf %595 : vector<2x32xf32>
    %597 = math.exp %596 : vector<2x32xf32>
    %cst_141 = arith.constant 1.000000e+00 : f32
    %598 = vector.broadcast %cst_141 : f32 to vector<2x32xf32>
    %599 = arith.addf %598, %597 : vector<2x32xf32>
    %600 = arith.divf %598, %599 : vector<2x32xf32>
    %601 = arith.mulf %592, %574 : vector<2x32xf32>
    %602 = arith.mulf %586, %594 : vector<2x32xf32>
    %603 = arith.addf %601, %602 : vector<2x32xf32>
    %604 = math.tanh %603 : vector<2x32xf32>
    %605 = arith.mulf %600, %604 : vector<2x32xf32>
    %c6_142 = arith.constant 6 : index
    %c0_143 = arith.constant 0 : index
    %606 = vector.load %arg15[%c6_142, %c0_143] : memref<16x32xf32, #tpu.memory_space<vmem>>, vector<2x32xf32>
    tpu.vector_store %arg15[%c6_142, %c0_143], %605 {strides = array<i32>} : memref<16x32xf32, #tpu.memory_space<vmem>>, vector<2x32xf32>,
    %607 = vector.extract_strided_slice %487 {offsets = [8, 0], sizes = [2, 128], strides = [1, 1]} : vector<16x128xf32> to vector<2x128xf32>
    %cst_144 = arith.constant dense<0.000000e+00> : vector<2x128xf32>
    %608 = tpu.matmul %605, %488, %cst_144 {dimension_numbers = #tpu.dot_dimension_numbers<[1], [0], [0], [1], [0, 0, 1, 1], [], []>} : vector<2x32xf32>, vector<32x128xf32>, vector<2x128xf32> -> vector<2x128xf32>
    %609 = arith.addf %607, %608 : vector<2x128xf32>
    %610 = vector.extract_strided_slice %609 {offsets = [0, 0], sizes = [2, 32], strides = [1, 1]} : vector<2x128xf32> to vector<2x32xf32>
    %611 = arith.negf %610 : vector<2x32xf32>
    %612 = math.exp %611 : vector<2x32xf32>
    %cst_145 = arith.constant 1.000000e+00 : f32
    %613 = vector.broadcast %cst_145 : f32 to vector<2x32xf32>
    %614 = arith.addf %613, %612 : vector<2x32xf32>
    %615 = arith.divf %613, %614 : vector<2x32xf32>
    %616 = vector.extract_strided_slice %609 {offsets = [0, 32], sizes = [2, 32], strides = [1, 1]} : vector<2x128xf32> to vector<2x32xf32>
    %617 = arith.negf %616 : vector<2x32xf32>
    %618 = math.exp %617 : vector<2x32xf32>
    %cst_146 = arith.constant 1.000000e+00 : f32
    %619 = vector.broadcast %cst_146 : f32 to vector<2x32xf32>
    %620 = arith.addf %619, %618 : vector<2x32xf32>
    %621 = arith.divf %619, %620 : vector<2x32xf32>
    %622 = vector.extract_strided_slice %609 {offsets = [0, 64], sizes = [2, 32], strides = [1, 1]} : vector<2x128xf32> to vector<2x32xf32>
    %623 = math.tanh %622 : vector<2x32xf32>
    %624 = vector.extract_strided_slice %609 {offsets = [0, 96], sizes = [2, 32], strides = [1, 1]} : vector<2x128xf32> to vector<2x32xf32>
    %625 = arith.negf %624 : vector<2x32xf32>
    %626 = math.exp %625 : vector<2x32xf32>
    %cst_147 = arith.constant 1.000000e+00 : f32
    %627 = vector.broadcast %cst_147 : f32 to vector<2x32xf32>
    %628 = arith.addf %627, %626 : vector<2x32xf32>
    %629 = arith.divf %627, %628 : vector<2x32xf32>
    %630 = arith.mulf %621, %603 : vector<2x32xf32>
    %631 = arith.mulf %615, %623 : vector<2x32xf32>
    %632 = arith.addf %630, %631 : vector<2x32xf32>
    %633 = math.tanh %632 : vector<2x32xf32>
    %634 = arith.mulf %629, %633 : vector<2x32xf32>
    %c8_148 = arith.constant 8 : index
    %c0_149 = arith.constant 0 : index
    %635 = vector.load %arg15[%c8_148, %c0_149] : memref<16x32xf32, #tpu.memory_space<vmem>>, vector<2x32xf32>
    tpu.vector_store %arg15[%c8_148, %c0_149], %634 {strides = array<i32>} : memref<16x32xf32, #tpu.memory_space<vmem>>, vector<2x32xf32>,
    %636 = vector.extract_strided_slice %487 {offsets = [10, 0], sizes = [2, 128], strides = [1, 1]} : vector<16x128xf32> to vector<2x128xf32>
    %cst_150 = arith.constant dense<0.000000e+00> : vector<2x128xf32>
    %637 = tpu.matmul %634, %488, %cst_150 {dimension_numbers = #tpu.dot_dimension_numbers<[1], [0], [0], [1], [0, 0, 1, 1], [], []>} : vector<2x32xf32>, vector<32x128xf32>, vector<2x128xf32> -> vector<2x128xf32>
    %638 = arith.addf %636, %637 : vector<2x128xf32>
    %639 = vector.extract_strided_slice %638 {offsets = [0, 0], sizes = [2, 32], strides = [1, 1]} : vector<2x128xf32> to vector<2x32xf32>
    %640 = arith.negf %639 : vector<2x32xf32>
    %641 = math.exp %640 : vector<2x32xf32>
    %cst_151 = arith.constant 1.000000e+00 : f32
    %642 = vector.broadcast %cst_151 : f32 to vector<2x32xf32>
    %643 = arith.addf %642, %641 : vector<2x32xf32>
    %644 = arith.divf %642, %643 : vector<2x32xf32>
    %645 = vector.extract_strided_slice %638 {offsets = [0, 32], sizes = [2, 32], strides = [1, 1]} : vector<2x128xf32> to vector<2x32xf32>
    %646 = arith.negf %645 : vector<2x32xf32>
    %647 = math.exp %646 : vector<2x32xf32>
    %cst_152 = arith.constant 1.000000e+00 : f32
    %648 = vector.broadcast %cst_152 : f32 to vector<2x32xf32>
    %649 = arith.addf %648, %647 : vector<2x32xf32>
    %650 = arith.divf %648, %649 : vector<2x32xf32>
    %651 = vector.extract_strided_slice %638 {offsets = [0, 64], sizes = [2, 32], strides = [1, 1]} : vector<2x128xf32> to vector<2x32xf32>
    %652 = math.tanh %651 : vector<2x32xf32>
    %653 = vector.extract_strided_slice %638 {offsets = [0, 96], sizes = [2, 32], strides = [1, 1]} : vector<2x128xf32> to vector<2x32xf32>
    %654 = arith.negf %653 : vector<2x32xf32>
    %655 = math.exp %654 : vector<2x32xf32>
    %cst_153 = arith.constant 1.000000e+00 : f32
    %656 = vector.broadcast %cst_153 : f32 to vector<2x32xf32>
    %657 = arith.addf %656, %655 : vector<2x32xf32>
    %658 = arith.divf %656, %657 : vector<2x32xf32>
    %659 = arith.mulf %650, %632 : vector<2x32xf32>
    %660 = arith.mulf %644, %652 : vector<2x32xf32>
    %661 = arith.addf %659, %660 : vector<2x32xf32>
    %662 = math.tanh %661 : vector<2x32xf32>
    %663 = arith.mulf %658, %662 : vector<2x32xf32>
    %c10_154 = arith.constant 10 : index
    %c0_155 = arith.constant 0 : index
    %664 = vector.load %arg15[%c10_154, %c0_155] : memref<16x32xf32, #tpu.memory_space<vmem>>, vector<2x32xf32>
    tpu.vector_store %arg15[%c10_154, %c0_155], %663 {strides = array<i32>} : memref<16x32xf32, #tpu.memory_space<vmem>>, vector<2x32xf32>,
    %665 = vector.extract_strided_slice %487 {offsets = [12, 0], sizes = [2, 128], strides = [1, 1]} : vector<16x128xf32> to vector<2x128xf32>
    %cst_156 = arith.constant dense<0.000000e+00> : vector<2x128xf32>
    %666 = tpu.matmul %663, %488, %cst_156 {dimension_numbers = #tpu.dot_dimension_numbers<[1], [0], [0], [1], [0, 0, 1, 1], [], []>} : vector<2x32xf32>, vector<32x128xf32>, vector<2x128xf32> -> vector<2x128xf32>
    %667 = arith.addf %665, %666 : vector<2x128xf32>
    %668 = vector.extract_strided_slice %667 {offsets = [0, 0], sizes = [2, 32], strides = [1, 1]} : vector<2x128xf32> to vector<2x32xf32>
    %669 = arith.negf %668 : vector<2x32xf32>
    %670 = math.exp %669 : vector<2x32xf32>
    %cst_157 = arith.constant 1.000000e+00 : f32
    %671 = vector.broadcast %cst_157 : f32 to vector<2x32xf32>
    %672 = arith.addf %671, %670 : vector<2x32xf32>
    %673 = arith.divf %671, %672 : vector<2x32xf32>
    %674 = vector.extract_strided_slice %667 {offsets = [0, 32], sizes = [2, 32], strides = [1, 1]} : vector<2x128xf32> to vector<2x32xf32>
    %675 = arith.negf %674 : vector<2x32xf32>
    %676 = math.exp %675 : vector<2x32xf32>
    %cst_158 = arith.constant 1.000000e+00 : f32
    %677 = vector.broadcast %cst_158 : f32 to vector<2x32xf32>
    %678 = arith.addf %677, %676 : vector<2x32xf32>
    %679 = arith.divf %677, %678 : vector<2x32xf32>
    %680 = vector.extract_strided_slice %667 {offsets = [0, 64], sizes = [2, 32], strides = [1, 1]} : vector<2x128xf32> to vector<2x32xf32>
    %681 = math.tanh %680 : vector<2x32xf32>
    %682 = vector.extract_strided_slice %667 {offsets = [0, 96], sizes = [2, 32], strides = [1, 1]} : vector<2x128xf32> to vector<2x32xf32>
    %683 = arith.negf %682 : vector<2x32xf32>
    %684 = math.exp %683 : vector<2x32xf32>
    %cst_159 = arith.constant 1.000000e+00 : f32
    %685 = vector.broadcast %cst_159 : f32 to vector<2x32xf32>
    %686 = arith.addf %685, %684 : vector<2x32xf32>
    %687 = arith.divf %685, %686 : vector<2x32xf32>
    %688 = arith.mulf %679, %661 : vector<2x32xf32>
    %689 = arith.mulf %673, %681 : vector<2x32xf32>
    %690 = arith.addf %688, %689 : vector<2x32xf32>
    %691 = math.tanh %690 : vector<2x32xf32>
    %692 = arith.mulf %687, %691 : vector<2x32xf32>
    %c12_160 = arith.constant 12 : index
    %c0_161 = arith.constant 0 : index
    %693 = vector.load %arg15[%c12_160, %c0_161] : memref<16x32xf32, #tpu.memory_space<vmem>>, vector<2x32xf32>
    tpu.vector_store %arg15[%c12_160, %c0_161], %692 {strides = array<i32>} : memref<16x32xf32, #tpu.memory_space<vmem>>, vector<2x32xf32>,
    %694 = vector.extract_strided_slice %487 {offsets = [14, 0], sizes = [2, 128], strides = [1, 1]} : vector<16x128xf32> to vector<2x128xf32>
    %cst_162 = arith.constant dense<0.000000e+00> : vector<2x128xf32>
    %695 = tpu.matmul %692, %488, %cst_162 {dimension_numbers = #tpu.dot_dimension_numbers<[1], [0], [0], [1], [0, 0, 1, 1], [], []>} : vector<2x32xf32>, vector<32x128xf32>, vector<2x128xf32> -> vector<2x128xf32>
    %696 = arith.addf %694, %695 : vector<2x128xf32>
    %697 = vector.extract_strided_slice %696 {offsets = [0, 0], sizes = [2, 32], strides = [1, 1]} : vector<2x128xf32> to vector<2x32xf32>
    %698 = arith.negf %697 : vector<2x32xf32>
    %699 = math.exp %698 : vector<2x32xf32>
    %cst_163 = arith.constant 1.000000e+00 : f32
    %700 = vector.broadcast %cst_163 : f32 to vector<2x32xf32>
    %701 = arith.addf %700, %699 : vector<2x32xf32>
    %702 = arith.divf %700, %701 : vector<2x32xf32>
    %703 = vector.extract_strided_slice %696 {offsets = [0, 32], sizes = [2, 32], strides = [1, 1]} : vector<2x128xf32> to vector<2x32xf32>
    %704 = arith.negf %703 : vector<2x32xf32>
    %705 = math.exp %704 : vector<2x32xf32>
    %cst_164 = arith.constant 1.000000e+00 : f32
    %706 = vector.broadcast %cst_164 : f32 to vector<2x32xf32>
    %707 = arith.addf %706, %705 : vector<2x32xf32>
    %708 = arith.divf %706, %707 : vector<2x32xf32>
    %709 = vector.extract_strided_slice %696 {offsets = [0, 64], sizes = [2, 32], strides = [1, 1]} : vector<2x128xf32> to vector<2x32xf32>
    %710 = math.tanh %709 : vector<2x32xf32>
    %711 = vector.extract_strided_slice %696 {offsets = [0, 96], sizes = [2, 32], strides = [1, 1]} : vector<2x128xf32> to vector<2x32xf32>
    %712 = arith.negf %711 : vector<2x32xf32>
    %713 = math.exp %712 : vector<2x32xf32>
    %cst_165 = arith.constant 1.000000e+00 : f32
    %714 = vector.broadcast %cst_165 : f32 to vector<2x32xf32>
    %715 = arith.addf %714, %713 : vector<2x32xf32>
    %716 = arith.divf %714, %715 : vector<2x32xf32>
    %717 = arith.mulf %708, %690 : vector<2x32xf32>
    %718 = arith.mulf %702, %710 : vector<2x32xf32>
    %719 = arith.addf %717, %718 : vector<2x32xf32>
    %720 = math.tanh %719 : vector<2x32xf32>
    %721 = arith.mulf %716, %720 : vector<2x32xf32>
    %c14_166 = arith.constant 14 : index
    %c0_167 = arith.constant 0 : index
    %722 = vector.load %arg15[%c14_166, %c0_167] : memref<16x32xf32, #tpu.memory_space<vmem>>, vector<2x32xf32>
    tpu.vector_store %arg15[%c14_166, %c0_167], %721 {strides = array<i32>} : memref<16x32xf32, #tpu.memory_space<vmem>>, vector<2x32xf32>,
    %c0_168 = arith.constant 0 : index
    %c0_169 = arith.constant 0 : index
    %723 = vector.load %arg15[%c0_168, %c0_169] : memref<16x32xf32, #tpu.memory_space<vmem>>, vector<16x32xf32>
    %c0_170 = arith.constant 0 : index
    %c0_171 = arith.constant 0 : index
    %724 = vector.load %arg10[%c0_170, %c0_171] : memref<32x16xf32, #tpu.memory_space<vmem>>, vector<32x16xf32>
    %cst_172 = arith.constant dense<0.000000e+00> : vector<16x16xf32>
    %725 = tpu.matmul %723, %724, %cst_172 {dimension_numbers = #tpu.dot_dimension_numbers<[1], [0], [0], [1], [0, 0, 1, 1], [], []>} : vector<16x32xf32>, vector<32x16xf32>, vector<16x16xf32> -> vector<16x16xf32>
    %c0_173 = arith.constant 0 : index
    %c0_174 = arith.constant 0 : index
    %726 = vector.load %arg11[%c0_173, %c0_174] : memref<1x16xf32, #tpu.memory_space<vmem>>, vector<1x16xf32>
    %727 = vector.broadcast %726 : vector<1x16xf32> to vector<16x16xf32>
    %728 = arith.addf %725, %727 : vector<16x16xf32>
    %729 = math.tanh %728 : vector<16x16xf32>
    %c0_175 = arith.constant 0 : index
    %c0_176 = arith.constant 0 : index
    %730 = vector.load %arg12[%c0_175, %c0_176] : memref<16x1xf32, #tpu.memory_space<vmem>>, vector<16x1xf32>
    %cst_177 = arith.constant dense<0.000000e+00> : vector<16x1xf32>
    %731 = tpu.matmul %729, %730, %cst_177 {dimension_numbers = #tpu.dot_dimension_numbers<[1], [0], [0], [1], [0, 0, 1, 1], [], []>} : vector<16x16xf32>, vector<16x1xf32>, vector<16x1xf32> -> vector<16x1xf32>
    %c0_178 = arith.constant 0 : index
    %c0_179 = arith.constant 0 : index
    %732 = vector.load %arg13[%c0_178, %c0_179] : memref<1x1xf32, #tpu.memory_space<vmem>>, vector<1x1xf32>
    %733 = vector.broadcast %732 : vector<1x1xf32> to vector<16x1xf32>
    %734 = arith.addf %731, %733 : vector<16x1xf32>
    %c0_180 = arith.constant 0 : index
    %c0_181 = arith.constant 0 : index
    %735 = vector.load %arg14[%c0_180, %c0_181] : memref<16x1xf32, #tpu.memory_space<vmem>>, vector<16x1xf32>
    tpu.vector_store %arg14[%c0_180, %c0_181], %734 {strides = array<i32>} : memref<16x1xf32, #tpu.memory_space<vmem>>, vector<16x1xf32>,
    return
  }
}

</mosaic_0001>

<bundles_post_ra>
// kernel: lstm_model_same_forward.1
= control target key start
LH: loop header
LB: loop body
LE: loop exit
PB: predicated region body
PF: predicated region fallthrough
CT: control target
= control target key end

     0   :  { %s2971_s0 = inlined_call_operand.vmem [shape: f32[16,15], index: 0, kind: input, shape index: {}]   ;;  %s2972_s1 = inlined_call_operand.vmem [shape: f32[15,128], index: 1, kind: input, shape index: {}]   ;;  %s2973_s2 = inlined_call_operand.vmem [shape: f32[32,128], index: 2, kind: input, shape index: {}]   ;;  %s2974_s3 = inlined_call_operand.vmem [shape: f32[1,128], index: 3, kind: input, shape index: {}]   ;;  %s2975_s4 = inlined_call_operand.vmem [shape: f32[32,128], index: 4, kind: input, shape index: {}]   ;;  %s2976_s5 = inlined_call_operand.hbm [shape: f32[32,128], index: 5, kind: input, shape index: {}]   ;;  %s2977_s6 = inlined_call_operand.vmem [shape: f32[1,128], index: 6, kind: input, shape index: {}]   ;;  %s2978_s7 = inlined_call_operand.hbm [shape: f32[32,128], index: 7, kind: input, shape index: {}]   ;;  %s2979_s8 = inlined_call_operand.hbm [shape: f32[32,128], index: 8, kind: input, shape index: {}]   ;;  %s2980_s9 = inlined_call_operand.vmem [shape: f32[1,128], index: 9, kind: input, shape index: {}]   ;;  %s2981_s10 = inlined_call_operand.vmem [shape: f32[32,16], index: 10, kind: input, shape index: {}]   ;;  %s2982_s11 = inlined_call_operand.hbm [shape: f32[1,16], index: 11, kind: input, shape index: {}]   ;;  %s2983_s12 = inlined_call_operand.vmem [shape: f32[16,1], index: 12, kind: input, shape index: {}]   ;;  %s2984_s13 = inlined_call_operand.<no memory space> [shape: f32[1,1], index: 13, kind: input, shape index: {}]   ;;  %s2985_s14 = inlined_call_operand.vmem [shape: f32[16,1], index: 14, kind: output, shape index: {}]  }
   0x1   :  { %v19_v0 = vstv %s2984_s13 }
   0x2   :  { %20 = vst [vmem:[#allocation3] sm:$0x1] %v19_v0 }
   0x3   :  { %21 = vsyncpa [#allocation5], 0 }
   0x4   :  { %22 = vsyncpa [#allocation7], 0 }
   0x5   :  { %23 = vsyncpa [#allocation10], 0  ;;  %s53_s17 = sshll.u32 %s2978_s7, 4  ;;  %s2421_s18 = smov [#allocation6]   ;;  %s54_s17 = int_to_ptr.hbm [resolvable:$true] %s53_s17 }
   0x6   :  { %s55_s19 = sshll.u32 %s2421_s18, 4  ;;  %s38_s22 = sshll.u32 %s2976_s5, 4  ;;  %s56_s19 = int_to_ptr.vmem [resolvable:$true] %s55_s19  ;;  %s39_s22 = int_to_ptr.hbm [resolvable:$true] %s38_s22 }
   0x7   :  { %s2422_s23 = smov 128   ;;  %s2423_s24 = smov 8  }
   0x8   :  { %61 = dma.hbm_to_vmem [thread:$0]  %s54_s17, 512, %s56_s19, [#allocation7], %s2422_s23, %s2422_s23, %s2423_s24  }
   0x9   :  { %s2424_s13 = smov [#allocation4]   ;;  %s66_s28 = sshll.u32 %s2979_s8, 4  ;;  %s67_s28 = int_to_ptr.hbm [resolvable:$true] %s66_s28 }
   0xa   :  { %s40_s25 = sshll.u32 %s2424_s13, 4  ;;  %s84_s30 = sshll.u32 %s2982_s11, 4  ;;  %s41_s25 = int_to_ptr.vmem [resolvable:$true] %s40_s25  ;;  %s85_s30 = int_to_ptr.hbm [resolvable:$true] %s84_s30 }
   0xb   :  { %46 = dma.hbm_to_vmem [thread:$0]  %s39_s22, 512, %s41_s25, [#allocation5], %s2422_s23, %s2422_s23, %s2423_s24  }
   0xc   :  { %s2425_s15 = smov [#allocation8]   ;;  %s2426_s5 = smov [#allocation9]  }
   0xd   :  { %s68_s16 = sshll.u32 %s2425_s15, 4  ;;  %s86_s17 = sshll.u32 %s2426_s5, 4  ;;  %s69_s16 = int_to_ptr.vmem [resolvable:$true] %s68_s16  ;;  %s87_s17 = int_to_ptr.vmem [resolvable:$true] %s86_s17 }
   0xe   :  { %74 = dma.hbm_to_vmem [thread:$0]  %s67_s28, 512, %s69_s16, [#allocation7], %s2422_s23, %s2422_s23, %s2423_s24  }
   0xf   :  { %89 = dma.hbm_to_vmem [thread:$0]  %s85_s30, 16, %s87_s17, [#allocation10]  }
  0x10   :  { %2415 = dma.done.wait [#allocation5], 512  }
  0x11   :  { %2416 = vsyncadd [#allocation5], 4294966784 }
  0x12   :  { %2417 = dma.done.wait [#allocation7], 1024  }
  0x13   :  { %2418 = vsyncadd [#allocation7], 4294966272 }
  0x14   :  { %2419 = dma.done.wait [#allocation10], 16  }
  0x15   :  { %2420 = vsyncadd [#allocation10], 4294967280  ;;  %vm125_vm0 = vcmask 1046528   ;;  %v155_v1 = vld [vmem:[%s2973_s2 + $0x18] sm:$0xff]  ;;  %v113_v2 = vld [vmem:[%s2972_s1 + $0x8] sm:$0x7f] }
  0x16   :  { %v154_v3 = vld [vmem:[%s2973_s2 + $0x10] sm:$0xff]  ;;  %172 = vmatpush.msra.mxu1 %v155_v1  ;;  %2053 = vmatpush.msk.msra.mxu0 %vm125_vm0, %v113_v2  ;;  %v112_v4 = vld [vmem:[%s2972_s1] sm:$0xff]  ;;  %vm118_vm1 = vcmask 121856   ;;  %v153_v6 = vld [vmem:[%s2973_s2 + $0x8] sm:$0xff]  ;;  %v2427_v8 = vmov 0.0   ;;  %s2428_s7 = smov 64  }
  0x17   :  { %v110_v5 = vld [vmem:[%s2971_s0] sm:$0xff]  ;;  %313 = vmatpush.msra.mxu3 %v155_v1  ;;  %463 = vmatpush.msra.mxu2 %v155_v1  ;;  %v111_v34 = vld [vmem:[%s2971_s0 + $0x8] sm:$0xff]  ;;  %vm222_vm6 = vcmask 254976   ;;  %vm156_vm7 = vcmask 261120  }
  0x18   :  { %173 = vmatpush.msra.mxu1 %v154_v3  ;;  %144 = vmatpush.msra.mxu0 %v112_v4  ;;  %v152_v7 = vld [vmem:[%s2973_s2] sm:$0xff] }
  0x19   :  { %2054 = vmatmul.msk.f32.vlgmr.msra.gmra.mxu0 %vm118_vm1, %v110_v5  ;;  %314 = vmatpush.msra.mxu3 %v154_v3  ;;  %v2546_v9 = vld [vmem:[%s2974_s3] ss:$0 sm:$0xff]  ;;  %s2429_s3 = smov 32  }
  0x1a   :  { %174 = vmatpush.msra.mxu1 %v153_v6  ;;  %238 = vmatpush.msrb.mxu0 %v155_v1 }
  0x1b   :  { %315 = vmatpush.msra.mxu3 %v153_v6  ;;  %464 = vmatpush.msra.mxu2 %v154_v3 }
  0x1c   :  { %175 = vmatpush.msra.mxu1 %v152_v7  ;;  %239 = vmatpush.msrb.mxu0 %v154_v3 }
  0x1d   :  { %176 = vmatmul.f32.vlgmr.msra.gmra.mxu1 %v2427_v8  ;;  %316 = vmatpush.msra.mxu3 %v152_v7 }
  0x1e   :  { %240 = vmatpush.msrb.mxu0 %v153_v6  ;;  %388 = vmatpush.msrb.mxu1 %v155_v1 }
  0x1f   :  { %465 = vmatpush.msra.mxu2 %v153_v6  ;;  %531 = vmatpush.msrb.mxu3 %v155_v1 }
  0x20   :  { %241 = vmatpush.msrb.mxu0 %v152_v7  ;;  %389 = vmatpush.msrb.mxu1 %v154_v3 }
  0x21   :  { %466 = vmatpush.msra.mxu2 %v152_v7  ;;  %532 = vmatpush.msrb.mxu3 %v154_v3 }
  0x22   :  { %390 = vmatpush.msrb.mxu1 %v153_v6  ;;  %605 = vmatpush.msra.mxu0 %v155_v1 }
  0x23   :  { %533 = vmatpush.msrb.mxu3 %v153_v6  ;;  %2055 = vmatmul.msk.f32.gmra.mxu0 %vm118_vm1, %v111_v34 }
  0x24   :  { %391 = vmatpush.msrb.mxu1 %v152_v7  ;;  %606 = vmatpush.msra.mxu0 %v154_v3 }
  0x25   :  { %534 = vmatpush.msrb.mxu3 %v152_v7 }
  0x26   :  { %679 = vmatpush.msra.mxu1 %v155_v1  ;;  %607 = vmatpush.msra.mxu0 %v153_v6 }
  0x28   :  { %680 = vmatpush.msra.mxu1 %v154_v3  ;;  %608 = vmatpush.msra.mxu0 %v152_v7 }
  0x2a   :  { %681 = vmatpush.msra.mxu1 %v153_v6 }
  0x2c   :  { %682 = vmatpush.msra.mxu1 %v152_v7 }
  0x96   :  { %v146_v10 = vpop.f32.mrf.mxu0 }
  0x97   :  { %v2549_v11 = vadd.f32 %v2546_v9, %v146_v10 }
  0x9a   :  { %v177_v12 = vpop.f32.mrf.mxu1 }
  0x9b   :  { %v180_v13 = vadd.f32 %v177_v12, %v2549_v11 }
  0x9d   :  { %2123 = vtanh.f32 %v180_v13  ;;  %v2056_v15 = vmul.f32 -1.442695, %v180_v13 }
  0x9f   :  { %2125 = vpow2.f32 %v2056_v15 }
  0xa0   :  { %v2562_v38 = vpop.f32.mrf.mxu0 }
  0xa3   :  { %v2124_v14 = vpop.eup %2123 }
  0xa4   :  { %203 = vrot.lane.b32.xlu0 %v2124_v14, %s2428_s7 }
  0xa5   :  { %v2126_v16 = vpop.eup %2125 }
  0xa6   :  { %v184_v17 = vadd.f32 1.0, %v2126_v16 }
  0xa8   :  { %2127 = vrcp.f32 %v184_v17  ;;  %v196_v23 = vand.u32 2147483648, %v184_v17  ;;  %vm190_vm3 = vweird.f32 %v184_v17  ;;  %v194_v24 = vand.u32 2147483647, %v184_v17 }
  0xaa   :  { %v197_v26 = vor.u32 1.1754944e-38, %v196_v23  ;;  %vm195_vm5 = vcmp.eq.f32.partialorder %v194_v24, 8.507059e+37 }
  0xae   :  { %v2128_v18 = vpop.eup %2127 }
  0xaf   :  { %v186_v19 = vmul.f32 %v2128_v18, %v184_v17  ;;  %vm191_vm2 = vweird.f32 %v2128_v18 }
  0xb0   :  { %vm192_vm4 = vmor %vm190_vm3, %vm191_vm2 }
  0xb1   :  { %v187_v20 = vsub.f32 1.0, %v186_v19 }
  0xb3   :  { %v188_v21 = vmul.f32 %v2128_v18, %v187_v20 }
  0xb5   :  { %v189_v22 = vadd.f32 %v2128_v18, %v188_v21 }
  0xb7   :  { %v193_v25 = vsel %vm192_vm4, %v2128_v18, %v189_v22 }
  0xb8   :  { %v198_v28 = vsel %vm195_vm5, %v197_v26, %v193_v25 }
  0xb9   :  { %v201_v30 = vmul.f32 0.0, %v198_v28 }
 0x116   :  { %v204_v27 = vpop.permute.xlu0 %203 }
 0x117   :  { %v206_v29 = vmul.f32 %v204_v27, %v198_v28 }
 0x119   :  { %208 = vrot.lane.b32.xlu0 %v206_v29, %s2429_s3 }
 0x18b   :  { %v209_v31 = vpop.permute.xlu0 %208 }
 0x18c   :  { %v211_v32 = vadd.f32 %v209_v31, %v201_v30 }
 0x18e   :  { %2129 = vtanh.f32 %v211_v32  ;;  %v271_v58 = vrot.slane %v211_v32, 6 }
 0x194   :  { %v2130_v33 = vpop.eup %2129 }
 0x195   :  { %214 = vrot.lane.b32.xlu1 %v2130_v33, %s2428_s7 }
 0x207   :  { %v215_v35 = vpop.permute.xlu1 %214 }
 0x208   :  { %v217_v36 = vmul.f32 %v215_v35, %v198_v28 }
 0x20a   :  { %219 = vrot.lane.b32.xlu1 %v217_v36, %s2429_s3 }
 0x27c   :  { %v220_v37 = vpop.permute.xlu1 %219 }
 0x27d   :  { %223 = vst.msk [vmem:[#allocation2] sm:$0x3] %vm222_vm6, %v220_v37  ;;  %2057 = vmatmul.msk.f32.vlgmr.msrb.gmra.mxu0 %vm156_vm7, %v220_v37 }
 0x2fa   :  { %v243_v39 = vpop.f32.mrf.mxu0 }
 0x2fb   :  { %v247_v40 = vrot.slane %v243_v39, 6 }
 0x2fd   :  { %v249_v41 = vadd.f32 %v247_v40, %v2549_v11 }
 0x2ff   :  { %2131 = vtanh.f32 %v249_v41  ;;  %v2058_v43 = vmul.f32 -1.442695, %v249_v41 }
 0x301   :  { %2133 = vpow2.f32 %v2058_v43 }
 0x305   :  { %v2132_v42 = vpop.eup %2131 }
 0x306   :  { %275 = vrot.lane.b32.xlu2 %v2132_v42, %s2428_s7 }
 0x307   :  { %v2134_v44 = vpop.eup %2133 }
 0x308   :  { %v253_v45 = vadd.f32 1.0, %v2134_v44 }
 0x30a   :  { %2135 = vrcp.f32 %v253_v45  ;;  %v265_v51 = vand.u32 2147483648, %v253_v45  ;;  %vm259_vm9 = vweird.f32 %v253_v45  ;;  %v263_v52 = vand.u32 2147483647, %v253_v45 }
 0x30c   :  { %v266_v54 = vor.u32 1.1754944e-38, %v265_v51  ;;  %vm264_vm11 = vcmp.eq.f32.partialorder %v263_v52, 8.507059e+37 }
 0x310   :  { %v2136_v46 = vpop.eup %2135 }
 0x311   :  { %v255_v47 = vmul.f32 %v2136_v46, %v253_v45  ;;  %vm260_vm8 = vweird.f32 %v2136_v46 }
 0x312   :  { %vm261_vm10 = vmor %vm259_vm9, %vm260_vm8 }
 0x313   :  { %v256_v48 = vsub.f32 1.0, %v255_v47 }
 0x315   :  { %v257_v49 = vmul.f32 %v2136_v46, %v256_v48 }
 0x317   :  { %v258_v50 = vadd.f32 %v2136_v46, %v257_v49 }
 0x319   :  { %v262_v53 = vsel %vm261_vm10, %v2136_v46, %v258_v50  ;;  %vm294_vm10 = vcmask 257026  }
 0x31a   :  { %v267_v56 = vsel %vm264_vm11, %v266_v54, %v262_v53  ;;  %vm369_vm11 = vcmask 259076  }
 0x31b   :  { %v273_v59 = vmul.f32 %v271_v58, %v267_v56 }
 0x360   :  { %v276_v55 = vpop.permute.xlu2 %275 }
 0x361   :  { %v278_v57 = vmul.f32 %v276_v55, %v267_v56 }
 0x363   :  { %280 = vrot.lane.b32.xlu2 %v278_v57, %s2429_s3 }
 0x3bd   :  { %v281_v60 = vpop.permute.xlu2 %280 }
 0x3be   :  { %v283_v61 = vadd.f32 %v281_v60, %v273_v59 }
 0x3c0   :  { %2137 = vtanh.f32 %v283_v61  ;;  %v346_v25 = vrot.slane %v283_v61, 6 }
 0x3c6   :  { %v2138_v62 = vpop.eup %2137 }
 0x3c7   :  { %286 = vrot.lane.b32.xlu0 %v2138_v62, %s2428_s7  ;;  %v2590_v62 = vadd.f32 %v2546_v9, %v2562_v38 }
 0x439   :  { %v287_v63 = vpop.permute.xlu0 %286 }
 0x43a   :  { %v2568_v0 = vmul.f32 %v287_v63, %v267_v56 }
 0x43c   :  { %v296_v1 = vrot.slane %v2568_v0, 2 }
 0x43e   :  { %297 = vrot.lane.b32.xlu1 %v296_v1, %s2429_s3 }
 0x4b0   :  { %v298_v2 = vpop.permute.xlu1 %297 }
 0x4b1   :  { %2059 = vmatmul.msk.f32.vlgmr.msra.gmra.mxu3 %vm156_vm7, %v298_v2 }
 0x534   :  { %v318_v3 = vpop.f32.mrf.mxu3 }
 0x535   :  { %v322_v4 = vrot.slane %v318_v3, 4 }
 0x537   :  { %v324_v5 = vadd.f32 %v322_v4, %v2549_v11 }
 0x539   :  { %2139 = vtanh.f32 %v324_v5  ;;  %v2060_v7 = vmul.f32 -1.442695, %v324_v5 }
 0x53b   :  { %2141 = vpow2.f32 %v2060_v7 }
 0x53f   :  { %v2140_v6 = vpop.eup %2139 }
 0x540   :  { %350 = vrot.lane.b32.xlu2 %v2140_v6, %s2428_s7 }
 0x541   :  { %v2142_v10 = vpop.eup %2141 }
 0x542   :  { %v328_v12 = vadd.f32 1.0, %v2142_v10 }
 0x544   :  { %2143 = vrcp.f32 %v328_v12  ;;  %v340_v18 = vand.u32 2147483648, %v328_v12  ;;  %vm334_vm13 = vweird.f32 %v328_v12  ;;  %v338_v19 = vand.u32 2147483647, %v328_v12 }
 0x546   :  { %v341_v21 = vor.u32 1.1754944e-38, %v340_v18  ;;  %vm339_vm15 = vcmp.eq.f32.partialorder %v338_v19, 8.507059e+37 }
 0x54a   :  { %v2144_v13 = vpop.eup %2143 }
 0x54b   :  { %v330_v14 = vmul.f32 %v2144_v13, %v328_v12  ;;  %vm335_vm12 = vweird.f32 %v2144_v13 }
 0x54c   :  { %vm336_vm14 = vmor %vm334_vm13, %vm335_vm12  ;;  %vm444_vm12 = vcmask 261126  }
 0x54d   :  { %v331_v15 = vsub.f32 1.0, %v330_v14 }
 0x54f   :  { %v332_v16 = vmul.f32 %v2144_v13, %v331_v15 }
 0x551   :  { %v333_v17 = vadd.f32 %v2144_v13, %v332_v16 }
 0x553   :  { %v337_v20 = vsel %vm336_vm14, %v2144_v13, %v333_v17 }
 0x554   :  { %v342_v23 = vsel %vm339_vm15, %v341_v21, %v337_v20 }
 0x555   :  { %v348_v26 = vmul.f32 %v346_v25, %v342_v23 }
 0x59a   :  { %v351_v22 = vpop.permute.xlu2 %350 }
 0x59b   :  { %v353_v24 = vmul.f32 %v351_v22, %v342_v23 }
 0x59d   :  { %355 = vrot.lane.b32.xlu0 %v353_v24, %s2429_s3 }
 0x60f   :  { %v356_v27 = vpop.permute.xlu0 %355 }
 0x610   :  { %v358_v28 = vadd.f32 %v356_v27, %v348_v26  ;;  %v741_v27 = vld [vmem:[%s2975_s4 + $0x18] sm:$0xff] }
 0x611   :  { %764 = vmatpush.msrb.mxu2 %v741_v27 }
 0x612   :  { %2145 = vtanh.f32 %v358_v28  ;;  %v421_v53 = vrot.slane %v358_v28, 6  ;;  %v740_v28 = vld [vmem:[%s2975_s4 + $0x10] sm:$0xff] }
 0x613   :  { %765 = vmatpush.msrb.mxu2 %v740_v28 }
 0x618   :  { %v2146_v29 = vpop.eup %2145 }
 0x619   :  { %361 = vrot.lane.b32.xlu1 %v2146_v29, %s2428_s7  ;;  %v2613_v29 = vld [vmem:[#allocation4 + $0x18] sm:$0xff] }
 0x61a   :  { %791 = vmatpush.msra.mxu3 %v2613_v29  ;;  %856 = vmatpush.msrb.mxu0 %v2613_v29 }
 0x68b   :  { %v362_v30 = vpop.permute.xlu1 %361 }
 0x68c   :  { %v2577_v31 = vmul.f32 %v362_v30, %v342_v23  ;;  %v2616_v30 = vld [vmem:[#allocation4 + $0x10] sm:$0xff] }
 0x68d   :  { %792 = vmatpush.msra.mxu3 %v2616_v30  ;;  %857 = vmatpush.msrb.mxu0 %v2616_v30 }
 0x68e   :  { %v371_v32 = vrot.slane %v2577_v31, 4 }
 0x690   :  { %372 = vrot.lane.b32.xlu2 %v371_v32, %s2429_s3  ;;  %v2621_v32 = vld [vmem:[#allocation4 + $0x8] sm:$0xff] }
 0x691   :  { %793 = vmatpush.msra.mxu3 %v2621_v32  ;;  %858 = vmatpush.msrb.mxu0 %v2621_v32 }
 0x6ea   :  { %v373_v33 = vpop.permute.xlu2 %372 }
 0x6eb   :  { %2061 = vmatmul.msk.f32.vlgmr.msrb.gmra.mxu1 %vm156_vm7, %v373_v33  ;;  %v738_v33 = vld [vmem:[%s2975_s4] sm:$0xff] }
 0x6ec   :  { %930 = vmatpush.msrb.mxu1 %v2613_v29 }
 0x6ee   :  { %931 = vmatpush.msrb.mxu1 %v2616_v30 }
 0x6f0   :  { %932 = vmatpush.msrb.mxu1 %v2621_v32 }
 0x768   :  { %v393_v34 = vpop.f32.mrf.mxu1 }
 0x769   :  { %v397_v35 = vrot.slane %v393_v34, 2  ;;  %v2634_v34 = vld [vmem:[#allocation4] sm:$0xff] }
 0x76a   :  { %794 = vmatpush.msra.mxu3 %v2634_v34  ;;  %859 = vmatpush.msrb.mxu0 %v2634_v34 }
 0x76b   :  { %v399_v36 = vadd.f32 %v397_v35, %v2549_v11  ;;  %933 = vmatpush.msrb.mxu1 %v2634_v34 }
 0x76d   :  { %2147 = vtanh.f32 %v399_v36  ;;  %v2062_v39 = vmul.f32 -1.442695, %v399_v36 }
 0x76f   :  { %2149 = vpow2.f32 %v2062_v39 }
 0x773   :  { %v2148_v37 = vpop.eup %2147 }
 0x774   :  { %425 = vrot.lane.b32.xlu0 %v2148_v37, %s2428_s7 }
 0x775   :  { %v2150_v40 = vpop.eup %2149 }
 0x776   :  { %v403_v41 = vadd.f32 1.0, %v2150_v40 }
 0x778   :  { %2151 = vrcp.f32 %v403_v41  ;;  %v415_v47 = vand.u32 2147483648, %v403_v41  ;;  %vm409_vm1 = vweird.f32 %v403_v41  ;;  %v413_v48 = vand.u32 2147483647, %v403_v41 }
 0x77a   :  { %v416_v49 = vor.u32 1.1754944e-38, %v415_v47  ;;  %vm414_vm3 = vcmp.eq.f32.partialorder %v413_v48, 8.507059e+37 }
 0x77e   :  { %v2152_v42 = vpop.eup %2151 }
 0x77f   :  { %v405_v43 = vmul.f32 %v2152_v42, %v403_v41  ;;  %vm410_vm0 = vweird.f32 %v2152_v42 }
 0x780   :  { %vm411_vm2 = vmor %vm409_vm1, %vm410_vm0 }
 0x781   :  { %v406_v44 = vsub.f32 1.0, %v405_v43  ;;  %v2661_v43 = vld [vmem:[%s2977_s6] ss:$0 sm:$0xff] }
 0x783   :  { %v407_v45 = vmul.f32 %v2152_v42, %v406_v44 }
 0x785   :  { %v408_v46 = vadd.f32 %v2152_v42, %v407_v45 }
 0x787   :  { %v412_v11 = vsel %vm411_vm2, %v2152_v42, %v408_v46 }
 0x788   :  { %v417_v51 = vsel %vm414_vm3, %v416_v49, %v412_v11 }
 0x789   :  { %v423_v54 = vmul.f32 %v421_v53, %v417_v51 }
 0x7e6   :  { %v426_v50 = vpop.permute.xlu0 %425 }
 0x7e7   :  { %v428_v52 = vmul.f32 %v426_v50, %v417_v51 }
 0x7e9   :  { %430 = vrot.lane.b32.xlu1 %v428_v52, %s2429_s3 }
 0x85b   :  { %v431_v55 = vpop.permute.xlu1 %430 }
 0x85c   :  { %v433_v56 = vadd.f32 %v431_v55, %v423_v54 }
 0x85e   :  { %2153 = vtanh.f32 %v433_v56  ;;  %v493_v19 = vrot.slane %v433_v56, 6 }
 0x864   :  { %v2154_v57 = vpop.eup %2153 }
 0x865   :  { %436 = vrot.lane.b32.xlu2 %v2154_v57, %s2428_s7 }
 0x8bf   :  { %v437_v58 = vpop.permute.xlu2 %436 }
 0x8c0   :  { %v439_v59 = vmul.f32 %v437_v58, %v417_v51 }
 0x8c2   :  { %v446_v60 = vrot.slane %v439_v59, 6 }
 0x8c4   :  { %447 = vrot.lane.b32.xlu0 %v446_v60, %s2429_s3 }
 0x936   :  { %v448_v61 = vpop.permute.xlu0 %447 }
 0x937   :  { %2063 = vmatmul.msk.f32.vlgmr.msra.gmra.mxu2 %vm156_vm7, %v448_v61 }
 0x9ba   :  { %v468_v63 = vpop.f32.mrf.mxu2 }
 0x9bb   :  { %v471_v1 = vadd.f32 %v468_v63, %v2590_v62 }
 0x9bd   :  { %2155 = vtanh.f32 %v471_v1  ;;  %v2064_v3 = vmul.f32 -1.442695, %v471_v1 }
 0x9bf   :  { %2157 = vpow2.f32 %v2064_v3 }
 0x9c3   :  { %v2156_v2 = vpop.eup %2155 }
 0x9c4   :  { %497 = vrot.lane.b32.xlu1 %v2156_v2, %s2428_s7 }
 0x9c5   :  { %v2158_v4 = vpop.eup %2157 }
 0x9c6   :  { %v475_v5 = vadd.f32 1.0, %v2158_v4 }
 0x9c8   :  { %2159 = vrcp.f32 %v475_v5  ;;  %v487_v9 = vand.u32 2147483648, %v475_v5  ;;  %vm481_vm5 = vweird.f32 %v475_v5  ;;  %v485_v38 = vand.u32 2147483647, %v475_v5 }
 0x9ca   :  { %v488_v15 = vor.u32 1.1754944e-38, %v487_v9  ;;  %vm486_vm9 = vcmp.eq.f32.partialorder %v485_v38, 8.507059e+37 }
 0x9ce   :  { %v2160_v6 = vpop.eup %2159 }
 0x9cf   :  { %v477_v7 = vmul.f32 %v2160_v6, %v475_v5  ;;  %vm482_vm4 = vweird.f32 %v2160_v6 }
 0x9d0   :  { %vm483_vm8 = vmor %vm481_vm5, %vm482_vm4 }
 0x9d1   :  { %v478_v10 = vsub.f32 1.0, %v477_v7 }
 0x9d3   :  { %v479_v12 = vmul.f32 %v2160_v6, %v478_v10 }
 0x9d5   :  { %v480_v13 = vadd.f32 %v2160_v6, %v479_v12 }
 0x9d7   :  { %v484_v14 = vsel %vm483_vm8, %v2160_v6, %v480_v13 }
 0x9d8   :  { %v489_v17 = vsel %vm486_vm9, %v488_v15, %v484_v14 }
 0x9d9   :  { %v495_v20 = vmul.f32 %v493_v19, %v489_v17 }
 0xa36   :  { %v498_v16 = vpop.permute.xlu1 %497 }
 0xa37   :  { %v500_v18 = vmul.f32 %v498_v16, %v489_v17 }
 0xa39   :  { %502 = vrot.lane.b32.xlu2 %v500_v18, %s2429_s3 }
 0xa41   :  { %291 = vrot.lane.b32.xlu2 %v2568_v0, %s2429_s3 }
 0xa93   :  { %v503_v21 = vpop.permute.xlu2 %502 }
 0xa94   :  { %v2597_v22 = vadd.f32 %v503_v21, %v495_v20 }
 0xa96   :  { %2161 = vtanh.f32 %v2597_v22 }
 0xa9b   :  { %v292_v23 = vpop.permute.xlu2 %291 }
 0xa9c   :  { %v2162_v24 = vpop.eup %2161  ;;  %295 = vst.msk [vmem:[#allocation2] sm:$0xc] %vm294_vm10, %v292_v23 }
 0xa9d   :  { %508 = vrot.lane.b32.xlu0 %v2162_v24, %s2428_s7 }
 0xaa5   :  { %366 = vrot.lane.b32.xlu0 %v2577_v31, %s2429_s3  ;;  %v739_v31 = vld [vmem:[%s2975_s4 + $0x8] sm:$0xff] }
 0xaa6   :  { %766 = vmatpush.msrb.mxu2 %v739_v31 }
 0xaa8   :  { %767 = vmatpush.msrb.mxu2 %v738_v33 }
 0xaaa   :  { %1220 = vmatpush.msra.mxu2 %v2613_v29 }
 0xaac   :  { %1221 = vmatpush.msra.mxu2 %v2616_v30 }
 0xaae   :  { %1222 = vmatpush.msra.mxu2 %v2621_v32 }
 0xab0   :  { %1223 = vmatpush.msra.mxu2 %v2634_v34 }
 0xb0f   :  { %v509_v25 = vpop.permute.xlu0 %508 }
 0xb10   :  { %v511_v26 = vmul.f32 %v509_v25, %v489_v17  ;;  %v564_v17 = vrot.slane %v2597_v22, 6 }
 0xb12   :  { %513 = vrot.lane.b32.xlu1 %v511_v26, %s2429_s3 }
 0xb17   :  { %v367_v0 = vpop.permute.xlu0 %366 }
 0xb18   :  { %370 = vst.msk [vmem:[#allocation2] sm:$0x30] %vm369_vm11, %v367_v0 }
 0xb1a   :  { %441 = vrot.lane.b32.xlu1 %v439_v59, %s2429_s3 }
 0xb84   :  { %v514_v35 = vpop.permute.xlu1 %513 }
 0xb85   :  { %516 = vst.msk [vmem:[#allocation2 + $0x8] sm:$0x3] %vm222_vm6, %v514_v35  ;;  %2065 = vmatmul.msk.f32.vlgmr.msrb.gmra.mxu3 %vm156_vm7, %v514_v35 }
 0xb86   :  { %1004 = vmatpush.msrb.mxu3 %v2613_v29 }
 0xb88   :  { %1005 = vmatpush.msrb.mxu3 %v2616_v30 }
 0xb8a   :  { %1006 = vmatpush.msrb.mxu3 %v2621_v32 }
 0xb8c   :  { %v442_v36 = vpop.permute.xlu1 %441  ;;  %1007 = vmatpush.msrb.mxu3 %v2634_v34 }
 0xb8d   :  { %445 = vst.msk [vmem:[#allocation2] sm:$0xc0] %vm444_vm12, %v442_v36  ;;  %795 = vmatmul.f32.vlgmr.msra.gmra.mxu3 %v2427_v8 }
 0xb8e   :  { %1294 = vmatpush.msra.mxu3 %v2613_v29 }
 0xb90   :  { %1295 = vmatpush.msra.mxu3 %v2616_v30 }
 0xb92   :  { %1296 = vmatpush.msra.mxu3 %v2621_v32 }
 0xb94   :  { %v736_v37 = vld [vmem:[#allocation2] sm:$0xff]  ;;  %1297 = vmatpush.msra.mxu3 %v2634_v34 }
 0xb95   :  { %2071 = vmatmul.msk.f32.vlgmr.msrb.gmra.mxu2 %vm156_vm7, %v736_v37 }
 0xc08   :  { %v536_v39 = vpop.f32.mrf.mxu3 }
 0xc09   :  { %v540_v40 = vrot.slane %v536_v39, 6 }
 0xc0b   :  { %v542_v41 = vadd.f32 %v540_v40, %v2590_v62 }
 0xc0d   :  { %2163 = vtanh.f32 %v542_v41  ;;  %v2066_v11 = vmul.f32 -1.442695, %v542_v41 }
 0xc10   :  { %v796_v45 = vpop.f32.mrf.mxu3 }
 0xc13   :  { %v2164_v42 = vpop.eup %2163 }
 0xc14   :  { %568 = vrot.lane.b32.xlu2 %v2164_v42, %s2428_s7 }
 0xc18   :  { %v769_v44 = vpop.f32.mrf.mxu2 }
 0xc19   :  { %v2664_v46 = vadd.f32 %v2661_v43, %v769_v44 }
 0xc1b   :  { %v799_v47 = vadd.f32 %v796_v45, %v2664_v46 }
 0xc1d   :  { %2165 = vtanh.f32 %v799_v47  ;;  %v2073_v57 = vmul.f32 -1.442695, %v799_v47 }
 0xc1e   :  { %2167 = vpow2.f32 %v2066_v11 }
 0xc23   :  { %v2166_v48 = vpop.eup %2165 }
 0xc24   :  { %822 = vrot.lane.b32.xlu0 %v2166_v48, %s2428_s7  ;;  %v2168_v49 = vpop.eup %2167 }
 0xc25   :  { %v546_v50 = vadd.f32 1.0, %v2168_v49 }
 0xc27   :  { %2169 = vrcp.f32 %v546_v50  ;;  %v558_v56 = vand.u32 2147483648, %v546_v50  ;;  %vm552_vm14 = vweird.f32 %v546_v50  ;;  %v556_v58 = vand.u32 2147483647, %v546_v50 }
 0xc28   :  { %2171 = vpow2.f32 %v2073_v57 }
 0xc29   :  { %v559_v60 = vor.u32 1.1754944e-38, %v558_v56  ;;  %vm557_vm0 = vcmp.eq.f32.partialorder %v556_v58, 8.507059e+37 }
 0xc2d   :  { %v2170_v51 = vpop.eup %2169 }
 0xc2e   :  { %v548_v52 = vmul.f32 %v2170_v51, %v546_v50  ;;  %vm553_vm13 = vweird.f32 %v2170_v51  ;;  %v2172_v2 = vpop.eup %2171 }
 0xc2f   :  { %vm554_vm15 = vmor %vm552_vm14, %vm553_vm13  ;;  %v803_v3 = vadd.f32 1.0, %v2172_v2 }
 0xc30   :  { %v549_v53 = vsub.f32 1.0, %v548_v52 }
 0xc31   :  { %2173 = vrcp.f32 %v803_v3  ;;  %v815_v12 = vand.u32 2147483648, %v803_v3  ;;  %vm809_vm2 = vweird.f32 %v803_v3  ;;  %v813_v13 = vand.u32 2147483647, %v803_v3 }
 0xc32   :  { %v550_v54 = vmul.f32 %v2170_v51, %v549_v53 }
 0xc33   :  { %v816_v38 = vor.u32 1.1754944e-38, %v815_v12  ;;  %vm814_vm4 = vcmp.eq.f32.partialorder %v813_v13, 8.507059e+37 }
 0xc34   :  { %v551_v55 = vadd.f32 %v2170_v51, %v550_v54 }
 0xc36   :  { %v555_v59 = vsel %vm554_vm15, %v2170_v51, %v551_v55 }
 0xc37   :  { %v560_v63 = vsel %vm557_vm0, %v559_v60, %v555_v59  ;;  %v2174_v4 = vpop.eup %2173 }
 0xc38   :  { %v805_v5 = vmul.f32 %v2174_v4, %v803_v3  ;;  %vm810_vm1 = vweird.f32 %v2174_v4  ;;  %v566_v18 = vmul.f32 %v564_v17, %v560_v63 }
 0xc39   :  { %vm811_vm3 = vmor %vm809_vm2, %vm810_vm1 }
 0xc3a   :  { %v806_v6 = vsub.f32 1.0, %v805_v5 }
 0xc3c   :  { %v807_v7 = vmul.f32 %v2174_v4, %v806_v6 }
 0xc3e   :  { %v808_v10 = vadd.f32 %v2174_v4, %v807_v7 }
 0xc40   :  { %v812_v9 = vsel %vm811_vm3, %v2174_v4, %v808_v10 }
 0xc41   :  { %v817_v15 = vsel %vm814_vm4, %v816_v38, %v812_v9 }
 0xc42   :  { %v820_v23 = vmul.f32 0.0, %v817_v15 }
 0xc6e   :  { %v569_v61 = vpop.permute.xlu2 %568 }
 0xc6f   :  { %v571_v1 = vmul.f32 %v569_v61, %v560_v63 }
 0xc71   :  { %573 = vrot.lane.b32.xlu1 %v571_v1, %s2429_s3 }
 0xc96   :  { %v823_v14 = vpop.permute.xlu0 %822 }
 0xc97   :  { %v825_v16 = vmul.f32 %v823_v14, %v817_v15 }
 0xc99   :  { %827 = vrot.lane.b32.xlu2 %v825_v16, %s2429_s3 }
 0xce3   :  { %v574_v19 = vpop.permute.xlu1 %573 }
 0xce4   :  { %v2671_v20 = vadd.f32 %v574_v19, %v566_v18 }
 0xce6   :  { %2175 = vtanh.f32 %v2671_v20 }
 0xcec   :  { %v2176_v21 = vpop.eup %2175 }
 0xced   :  { %579 = vrot.lane.b32.xlu0 %v2176_v21, %s2428_s7 }
 0xcf3   :  { %v828_v24 = vpop.permute.xlu2 %827 }
 0xcf4   :  { %v2675_v25 = vadd.f32 %v828_v24, %v820_v23 }
 0xcf6   :  { %2177 = vtanh.f32 %v2675_v25  ;;  %v889_v21 = vrot.slane %v2675_v25, 6 }
 0xcfc   :  { %v2178_v26 = vpop.eup %2177 }
 0xcfd   :  { %833 = vrot.lane.b32.xlu1 %v2178_v26, %s2428_s7 }
 0xd5f   :  { %v580_v0 = vpop.permute.xlu0 %579 }
 0xd60   :  { %v2679_v22 = vmul.f32 %v580_v0, %v560_v63 }
 0xd62   :  { %v588_v27 = vrot.slane %v2679_v22, 2 }
 0xd64   :  { %589 = vrot.lane.b32.xlu2 %v588_v27, %s2429_s3 }
 0xd6f   :  { %v834_v28 = vpop.permute.xlu1 %833 }
 0xd70   :  { %v836_v31 = vmul.f32 %v834_v28, %v817_v15  ;;  %v638_v15 = vrot.slane %v2671_v20, 6 }
 0xd72   :  { %838 = vrot.lane.b32.xlu0 %v836_v31, %s2429_s3 }
 0xdbe   :  { %v590_v33 = vpop.permute.xlu2 %589 }
 0xdbf   :  { %2067 = vmatmul.msk.f32.vlgmr.msra.gmra.mxu0 %vm156_vm7, %v590_v33 }
 0xdc0   :  { %1078 = vmatpush.msra.mxu0 %v2613_v29 }
 0xdc2   :  { %1079 = vmatpush.msra.mxu0 %v2616_v30 }
 0xdc4   :  { %1080 = vmatpush.msra.mxu0 %v2621_v32 }
 0xdc6   :  { %1081 = vmatpush.msra.mxu0 %v2634_v34 }
 0xde4   :  { %v839_v35 = vpop.permute.xlu0 %838 }
 0xde5   :  { %841 = vst.msk [vmem:[#allocation2] sm:$0x3] %vm222_vm6, %v839_v35  ;;  %2074 = vmatmul.msk.f32.vlgmr.msrb.gmra.mxu0 %vm156_vm7, %v839_v35 }
 0xe3c   :  { %v610_v36 = vpop.f32.mrf.mxu0 }
 0xe3d   :  { %v614_v37 = vrot.slane %v610_v36, 4 }
 0xe3f   :  { %v616_v39 = vadd.f32 %v614_v37, %v2590_v62 }
 0xe41   :  { %2179 = vtanh.f32 %v616_v39  ;;  %v2068_v47 = vmul.f32 -1.442695, %v616_v39 }
 0xe47   :  { %v2180_v40 = vpop.eup %2179 }
 0xe48   :  { %642 = vrot.lane.b32.xlu1 %v2180_v40, %s2428_s7 }
 0xe62   :  { %v861_v41 = vpop.f32.mrf.mxu0 }
 0xe63   :  { %v865_v42 = vrot.slane %v861_v41, 6 }
 0xe65   :  { %v867_v44 = vadd.f32 %v865_v42, %v2664_v46 }
 0xe67   :  { %2181 = vtanh.f32 %v867_v44  ;;  %v2075_v49 = vmul.f32 -1.442695, %v867_v44 }
 0xe68   :  { %2183 = vpow2.f32 %v2068_v47 }
 0xe6d   :  { %v2182_v45 = vpop.eup %2181 }
 0xe6e   :  { %893 = vrot.lane.b32.xlu2 %v2182_v45, %s2428_s7  ;;  %v2184_v48 = vpop.eup %2183 }
 0xe6f   :  { %v620_v11 = vadd.f32 1.0, %v2184_v48 }
 0xe71   :  { %2185 = vrcp.f32 %v620_v11  ;;  %v632_v58 = vand.u32 2147483648, %v620_v11  ;;  %vm626_vm8 = vweird.f32 %v620_v11  ;;  %v630_v59 = vand.u32 2147483647, %v620_v11 }
 0xe72   :  { %2187 = vpow2.f32 %v2075_v49 }
 0xe73   :  { %v633_v63 = vor.u32 1.1754944e-38, %v632_v58  ;;  %vm631_vm13 = vcmp.eq.f32.partialorder %v630_v59, 8.507059e+37 }
 0xe77   :  { %v2186_v50 = vpop.eup %2185 }
 0xe78   :  { %v2188_v51 = vpop.eup %2187  ;;  %v622_v52 = vmul.f32 %v2186_v50, %v620_v11  ;;  %vm627_vm5 = vweird.f32 %v2186_v50 }
 0xe79   :  { %v871_v53 = vadd.f32 1.0, %v2188_v51  ;;  %vm628_vm9 = vmor %vm626_vm8, %vm627_vm5 }
 0xe7a   :  { %v623_v54 = vsub.f32 1.0, %v622_v52 }
 0xe7b   :  { %2189 = vrcp.f32 %v871_v53  ;;  %v883_v7 = vand.u32 2147483648, %v871_v53  ;;  %vm877_vm15 = vweird.f32 %v871_v53  ;;  %v881_v10 = vand.u32 2147483647, %v871_v53 }
 0xe7c   :  { %v624_v55 = vmul.f32 %v2186_v50, %v623_v54 }
 0xe7d   :  { %v884_v13 = vor.u32 1.1754944e-38, %v883_v7  ;;  %vm882_vm1 = vcmp.eq.f32.partialorder %v881_v10, 8.507059e+37 }
 0xe7e   :  { %v625_v57 = vadd.f32 %v2186_v50, %v624_v55 }
 0xe80   :  { %v629_v61 = vsel %vm628_vm9, %v2186_v50, %v625_v57 }
 0xe81   :  { %v2190_v56 = vpop.eup %2189  ;;  %v634_v2 = vsel %vm631_vm13, %v633_v63, %v629_v61 }
 0xe82   :  { %v873_v60 = vmul.f32 %v2190_v56, %v871_v53  ;;  %vm878_vm14 = vweird.f32 %v2190_v56  ;;  %v640_v16 = vmul.f32 %v638_v15, %v634_v2 }
 0xe83   :  { %vm879_vm0 = vmor %vm877_vm15, %vm878_vm14 }
 0xe84   :  { %v874_v1 = vsub.f32 1.0, %v873_v60 }
 0xe86   :  { %v875_v5 = vmul.f32 %v2190_v56, %v874_v1 }
 0xe88   :  { %v876_v6 = vadd.f32 %v2190_v56, %v875_v5 }
 0xe8a   :  { %v880_v12 = vsel %vm879_vm0, %v2190_v56, %v876_v6 }
 0xe8b   :  { %v885_v38 = vsel %vm882_vm1, %v884_v13, %v880_v12 }
 0xe8c   :  { %v891_v23 = vmul.f32 %v889_v21, %v885_v38 }
 0xeba   :  { %v643_v3 = vpop.permute.xlu1 %642 }
 0xebb   :  { %v645_v4 = vmul.f32 %v643_v3, %v634_v2 }
 0xebd   :  { %647 = vrot.lane.b32.xlu0 %v645_v4, %s2429_s3 }
 0xec8   :  { %v894_v9 = vpop.permute.xlu2 %893 }
 0xec9   :  { %v896_v14 = vmul.f32 %v894_v9, %v885_v38 }
 0xecb   :  { %898 = vrot.lane.b32.xlu1 %v896_v14, %s2429_s3 }
 0xf2f   :  { %v648_v17 = vpop.permute.xlu0 %647 }
 0xf30   :  { %v2698_v18 = vadd.f32 %v648_v17, %v640_v16 }
 0xf32   :  { %2191 = vtanh.f32 %v2698_v18 }
 0xf38   :  { %v2192_v19 = vpop.eup %2191 }
 0xf39   :  { %653 = vrot.lane.b32.xlu2 %v2192_v19, %s2428_s7 }
 0xf3d   :  { %v899_v24 = vpop.permute.xlu1 %898 }
 0xf3e   :  { %v901_v26 = vadd.f32 %v899_v24, %v891_v23 }
 0xf40   :  { %2193 = vtanh.f32 %v901_v26  ;;  %v963_v58 = vrot.slane %v901_v26, 6 }
 0xf46   :  { %v2194_v0 = vpop.eup %2193 }
 0xf47   :  { %904 = vrot.lane.b32.xlu0 %v2194_v0, %s2428_s7  ;;  %v712_v0 = vrot.slane %v2698_v18, 6 }
 0xf93   :  { %v654_v27 = vpop.permute.xlu2 %653 }
 0xf94   :  { %v2704_v20 = vmul.f32 %v654_v27, %v634_v2 }
 0xf96   :  { %v662_v28 = vrot.slane %v2704_v20, 4 }
 0xf98   :  { %663 = vrot.lane.b32.xlu1 %v662_v28, %s2429_s3 }
 0xfb9   :  { %v905_v31 = vpop.permute.xlu0 %904 }
 0xfba   :  { %v2708_v33 = vmul.f32 %v905_v31, %v885_v38 }
 0xfbc   :  { %v913_v35 = vrot.slane %v2708_v33, 2 }
 0xfbe   :  { %914 = vrot.lane.b32.xlu2 %v913_v35, %s2429_s3 }
0x100a   :  { %v664_v25 = vpop.permute.xlu1 %663 }
0x100b   :  { %2069 = vmatmul.msk.f32.vlgmr.msra.gmra.mxu1 %vm156_vm7, %v664_v25 }
0x100c   :  { %1146 = vmatpush.msra.mxu1 %v2613_v29 }
0x100e   :  { %1147 = vmatpush.msra.mxu1 %v2616_v30 }
0x1010   :  { %1148 = vmatpush.msra.mxu1 %v2621_v32 }
0x1012   :  { %1149 = vmatpush.msra.mxu1 %v2634_v34 }
0x1018   :  { %v915_v36 = vpop.permute.xlu2 %914 }
0x1019   :  { %2076 = vmatmul.msk.f32.vlgmr.msrb.gmra.mxu1 %vm156_vm7, %v915_v36 }
0x1088   :  { %v684_v37 = vpop.f32.mrf.mxu1 }
0x1089   :  { %v688_v50 = vrot.slane %v684_v37, 2 }
0x108b   :  { %v690_v53 = vadd.f32 %v688_v50, %v2590_v62 }
0x108d   :  { %v2070_v62 = vmul.f32 -1.442695, %v690_v53 }
0x1096   :  { %v935_v39 = vpop.f32.mrf.mxu1 }
0x1097   :  { %v939_v40 = vrot.slane %v935_v39, 4 }
0x1099   :  { %v941_v41 = vadd.f32 %v939_v40, %v2664_v46 }
0x109b   :  { %2195 = vtanh.f32 %v941_v41  ;;  %v2077_v44 = vmul.f32 -1.442695, %v941_v41 }
0x109d   :  { %2197 = vpow2.f32 %v2077_v44 }
0x10a1   :  { %v2196_v42 = vpop.eup %2195 }
0x10a2   :  { %967 = vrot.lane.b32.xlu0 %v2196_v42, %s2428_s7 }
0x10a3   :  { %v2198_v29 = vpop.eup %2197 }
0x10a4   :  { %v945_v30 = vadd.f32 1.0, %v2198_v29 }
0x10a6   :  { %2199 = vrcp.f32 %v945_v30  ;;  %v957_v11 = vand.u32 2147483648, %v945_v30  ;;  %vm951_vm3 = vweird.f32 %v945_v30  ;;  %v955_v49 = vand.u32 2147483647, %v945_v30 }
0x10a7   :  { %2201 = vtanh.f32 %v690_v53 }
0x10a8   :  { %v958_v52 = vor.u32 1.1754944e-38, %v957_v11  ;;  %vm956_vm5 = vcmp.eq.f32.partialorder %v955_v49, 8.507059e+37 }
0x10ac   :  { %v2200_v32 = vpop.eup %2199 }
0x10ad   :  { %v947_v45 = vmul.f32 %v2200_v32, %v945_v30  ;;  %vm952_vm2 = vweird.f32 %v2200_v32  ;;  %v2202_v57 = vpop.eup %2201 }
0x10ae   :  { %vm953_vm4 = vmor %vm951_vm3, %vm952_vm2 }
0x10af   :  { %v948_v34 = vsub.f32 1.0, %v947_v45 }
0x10b1   :  { %v949_v47 = vmul.f32 %v2200_v32, %v948_v34 }
0x10b3   :  { %v950_v48 = vadd.f32 %v2200_v32, %v949_v47 }
0x10b5   :  { %v954_v51 = vsel %vm953_vm4, %v2200_v32, %v950_v48 }
0x10b6   :  { %v959_v55 = vsel %vm956_vm5, %v958_v52, %v954_v51 }
0x10b7   :  { %v965_v59 = vmul.f32 %v963_v58, %v959_v55 }
0x1114   :  { %v968_v54 = vpop.permute.xlu0 %967 }
0x1115   :  { %v970_v56 = vmul.f32 %v968_v54, %v959_v55 }
0x1117   :  { %972 = vrot.lane.b32.xlu1 %v970_v56, %s2429_s3 }
0x111f   :  { %716 = vrot.lane.b32.xlu1 %v2202_v57, %s2428_s7 }
0x1189   :  { %v973_v60 = vpop.permute.xlu1 %972 }
0x118a   :  { %v2723_v61 = vadd.f32 %v973_v60, %v965_v59 }
0x118c   :  { %2203 = vtanh.f32 %v2723_v61  ;;  %v1037_v11 = vrot.slane %v2723_v61, 6 }
0x118d   :  { %2205 = vpow2.f32 %v2070_v62 }
0x1191   :  { %v717_v15 = vpop.permute.xlu1 %716 }
0x1192   :  { %v2204_v63 = vpop.eup %2203 }
0x1193   :  { %978 = vrot.lane.b32.xlu2 %v2204_v63, %s2428_s7  ;;  %v2206_v1 = vpop.eup %2205 }
0x1194   :  { %v694_v2 = vadd.f32 1.0, %v2206_v1 }
0x1196   :  { %2207 = vrcp.f32 %v694_v2  ;;  %v706_v9 = vand.u32 2147483648, %v694_v2  ;;  %vm700_vm9 = vweird.f32 %v694_v2  ;;  %v704_v38 = vand.u32 2147483647, %v694_v2 }
0x1198   :  { %v707_v16 = vor.u32 1.1754944e-38, %v706_v9  ;;  %vm705_vm14 = vcmp.eq.f32.partialorder %v704_v38, 8.507059e+37 }
0x119c   :  { %v2208_v3 = vpop.eup %2207 }
0x119d   :  { %v696_v4 = vmul.f32 %v2208_v3, %v694_v2  ;;  %vm701_vm8 = vweird.f32 %v2208_v3 }
0x119e   :  { %vm702_vm13 = vmor %vm700_vm9, %vm701_vm8 }
0x119f   :  { %v697_v5 = vsub.f32 1.0, %v696_v4 }
0x11a1   :  { %v698_v6 = vmul.f32 %v2208_v3, %v697_v5 }
0x11a3   :  { %v699_v12 = vadd.f32 %v2208_v3, %v698_v6 }
0x11a5   :  { %v703_v14 = vsel %vm702_vm13, %v2208_v3, %v699_v12 }
0x11a6   :  { %v708_v17 = vsel %vm705_vm14, %v707_v16, %v703_v14 }
0x11a7   :  { %v719_v19 = vmul.f32 %v717_v15, %v708_v17  ;;  %v714_v28 = vmul.f32 %v712_v0, %v708_v17 }
0x11ed   :  { %v979_v7 = vpop.permute.xlu2 %978 }
0x11ee   :  { %v2727_v10 = vmul.f32 %v979_v7, %v959_v55 }
0x11f0   :  { %v987_v13 = vrot.slane %v2727_v10, 4 }
0x11f2   :  { %988 = vrot.lane.b32.xlu0 %v987_v13, %s2429_s3 }
0x11fa   :  { %721 = vrot.lane.b32.xlu0 %v719_v19, %s2429_s3 }
0x1264   :  { %v989_v21 = vpop.permute.xlu0 %988 }
0x1265   :  { %2078 = vmatmul.msk.f32.vlgmr.msrb.gmra.mxu3 %vm156_vm7, %v989_v21 }
0x126c   :  { %v722_v27 = vpop.permute.xlu0 %721 }
0x126d   :  { %v724_v31 = vadd.f32 %v722_v27, %v714_v28 }
0x12e8   :  { %v1009_v23 = vpop.f32.mrf.mxu3 }
0x12e9   :  { %v1013_v24 = vrot.slane %v1009_v23, 2 }
0x12eb   :  { %v1015_v26 = vadd.f32 %v1013_v24, %v2664_v46 }
0x12ed   :  { %2209 = vtanh.f32 %v1015_v26  ;;  %v2079_v36 = vmul.f32 -1.442695, %v1015_v26 }
0x12ee   :  { %2211 = vtanh.f32 %v724_v31  ;;  %v1356_v31 = vld [vmem:[#allocation6 + $0x18] sm:$0xff] }
0x12ef   :  { %2213 = vpow2.f32 %v2079_v36  ;;  %1379 = vmatpush.msrb.mxu0 %v1356_v31  ;;  %v2772_v36 = vld [vmem:[#allocation8 + $0x10] sm:$0xff] }
0x12f3   :  { %v2210_v35 = vpop.eup %2209 }
0x12f4   :  { %1041 = vrot.lane.b32.xlu2 %v2210_v35, %s2428_s7  ;;  %v2212_v25 = vpop.eup %2211  ;;  %v1355_v35 = vld [vmem:[#allocation6 + $0x10] sm:$0xff] }
0x12f5   :  { %v2214_v37 = vpop.eup %2213  ;;  %1380 = vmatpush.msrb.mxu0 %v1355_v35 }
0x12f6   :  { %v1019_v46 = vadd.f32 1.0, %v2214_v37  ;;  %v1354_v37 = vld [vmem:[#allocation6 + $0x8] sm:$0xff] }
0x12f7   :  { %1381 = vmatpush.msrb.mxu0 %v1354_v37 }
0x12f8   :  { %2215 = vrcp.f32 %v1019_v46  ;;  %v1031_v44 = vand.u32 2147483648, %v1019_v46  ;;  %vm1025_vm0 = vweird.f32 %v1019_v46  ;;  %v1029_v29 = vand.u32 2147483647, %v1019_v46 }
0x12fa   :  { %v1032_v32 = vor.u32 1.1754944e-38, %v1031_v44  ;;  %vm1030_vm2 = vcmp.eq.f32.partialorder %v1029_v29, 8.507059e+37 }
0x12fc   :  { %727 = vrot.lane.b32.xlu2 %v2212_v25, %s2428_s7  ;;  %v2769_v25 = vld [vmem:[#allocation8 + $0x18] sm:$0xff] }
0x12fd   :  { %1406 = vmatpush.msrb.mxu1 %v2769_v25  ;;  %1471 = vmatpush.msrb.mxu2 %v2769_v25 }
0x12fe   :  { %v2216_v18 = vpop.eup %2215  ;;  %1545 = vmatpush.msrb.mxu3 %v2769_v25 }
0x12ff   :  { %v1021_v39 = vmul.f32 %v2216_v18, %v1019_v46  ;;  %vm1026_vm15 = vweird.f32 %v2216_v18  ;;  %1407 = vmatpush.msrb.mxu1 %v2772_v36  ;;  %v1353_v46 = vld [vmem:[#allocation6] sm:$0xff]  ;;  %1472 = vmatpush.msrb.mxu2 %v2772_v36 }
0x1300   :  { %vm1027_vm1 = vmor %vm1025_vm0, %vm1026_vm15  ;;  %1546 = vmatpush.msrb.mxu3 %v2772_v36  ;;  %1382 = vmatpush.msrb.mxu0 %v1353_v46 }
0x1301   :  { %v1022_v40 = vsub.f32 1.0, %v1021_v39 }
0x1303   :  { %v1023_v41 = vmul.f32 %v2216_v18, %v1022_v40 }
0x1304   :  { %658 = vrot.lane.b32.xlu2 %v2704_v20, %s2429_s3 }
0x1305   :  { %v1024_v42 = vadd.f32 %v2216_v18, %v1023_v41 }
0x1307   :  { %v1028_v30 = vsel %vm1027_vm1, %v2216_v18, %v1024_v42  ;;  %v2784_v18 = vld [vmem:[#allocation8] sm:$0xff] }
0x1308   :  { %v1033_v20 = vsel %vm1030_vm2, %v1032_v32, %v1028_v30 }
0x1309   :  { %v1039_v49 = vmul.f32 %v1037_v11, %v1033_v20 }
0x134e   :  { %v1042_v45 = vpop.permute.xlu2 %1041 }
0x134f   :  { %v1044_v34 = vmul.f32 %v1042_v45, %v1033_v20 }
0x1351   :  { %1046 = vrot.lane.b32.xlu1 %v1044_v34, %s2429_s3 }
0x1356   :  { %v728_v47 = vpop.permute.xlu2 %727 }
0x1357   :  { %v730_v54 = vmul.f32 %v728_v47, %v708_v17 }
0x1359   :  { %584 = vrot.lane.b32.xlu1 %v2679_v22, %s2429_s3 }
0x135e   :  { %v659_v48 = vpop.permute.xlu2 %658 }
0x135f   :  { %661 = vst.msk [vmem:[#allocation2 + $0x8] sm:$0x30] %vm369_vm11, %v659_v48 }
0x13c3   :  { %v1047_v50 = vpop.permute.xlu1 %1046 }
0x13c4   :  { %v1049_v51 = vadd.f32 %v1047_v50, %v1039_v49 }
0x13c6   :  { %2217 = vtanh.f32 %v1049_v51  ;;  %v1108_v19 = vrot.slane %v1049_v51, 6 }
0x13cb   :  { %v585_v52 = vpop.permute.xlu1 %584 }
0x13cc   :  { %v2218_v53 = vpop.eup %2217  ;;  %587 = vst.msk [vmem:[#allocation2 + $0x8] sm:$0xc] %vm294_vm10, %v585_v52 }
0x13cd   :  { %1052 = vrot.lane.b32.xlu0 %v2218_v53, %s2428_s7 }
0x13d5   :  { %732 = vrot.lane.b32.xlu0 %v730_v54, %s2429_s3 }
0x143f   :  { %v1053_v55 = vpop.permute.xlu0 %1052 }
0x1440   :  { %v1055_v22 = vmul.f32 %v1053_v55, %v1033_v20 }
0x1442   :  { %v1061_v56 = vrot.slane %v1055_v22, 6 }
0x1444   :  { %1062 = vrot.lane.b32.xlu1 %v1061_v56, %s2429_s3 }
0x1447   :  { %v733_v57 = vpop.permute.xlu0 %732 }
0x1448   :  { %735 = vst.msk [vmem:[#allocation2 + $0x8] sm:$0xc0] %vm444_vm12, %v733_v57 }
0x144f   :  { %v737_v58 = vld [vmem:[#allocation2 + $0x8] sm:$0xff] }
0x1450   :  { %2072 = vmatmul.msk.f32.gmra.mxu2 %vm156_vm7, %v737_v58 }
0x14b6   :  { %v1063_v59 = vpop.permute.xlu1 %1062 }
0x14b7   :  { %2080 = vmatmul.msk.f32.vlgmr.msra.gmra.mxu0 %vm156_vm7, %v1063_v59 }
0x14b8   :  { %1835 = vmatpush.msra.mxu0 %v2769_v25 }
0x14ba   :  { %1836 = vmatpush.msra.mxu0 %v2772_v36 }
0x14d3   :  { %v772_v60 = vpop.f32.mrf.mxu2 }
0x14d4   :  { %v2752_v61 = vadd.f32 %v2661_v43, %v772_v60 }
0x1534   :  { %v1083_v63 = vpop.f32.mrf.mxu0 }
0x1535   :  { %v1086_v62 = vadd.f32 %v1083_v63, %v2752_v61 }
0x1537   :  { %2219 = vtanh.f32 %v1086_v62  ;;  %v2081_v2 = vmul.f32 -1.442695, %v1086_v62 }
0x1539   :  { %2221 = vpow2.f32 %v2081_v2 }
0x153d   :  { %v2220_v1 = vpop.eup %2219 }
0x153e   :  { %1112 = vrot.lane.b32.xlu2 %v2220_v1, %s2428_s7 }
0x153f   :  { %v2222_v3 = vpop.eup %2221 }
0x1540   :  { %v1090_v4 = vadd.f32 1.0, %v2222_v3 }
0x1542   :  { %2223 = vrcp.f32 %v1090_v4  ;;  %v1102_v43 = vand.u32 2147483648, %v1090_v4  ;;  %vm1096_vm4 = vweird.f32 %v1090_v4  ;;  %v1100_v9 = vand.u32 2147483647, %v1090_v4 }
0x1544   :  { %v1103_v14 = vor.u32 1.1754944e-38, %v1102_v43  ;;  %vm1101_vm8 = vcmp.eq.f32.partialorder %v1100_v9, 8.507059e+37 }
0x1548   :  { %v2224_v5 = vpop.eup %2223 }
0x1549   :  { %v1092_v6 = vmul.f32 %v2224_v5, %v1090_v4  ;;  %vm1097_vm3 = vweird.f32 %v2224_v5 }
0x154a   :  { %vm1098_vm5 = vmor %vm1096_vm4, %vm1097_vm3 }
0x154b   :  { %v1093_v7 = vsub.f32 1.0, %v1092_v6 }
0x154d   :  { %v1094_v12 = vmul.f32 %v2224_v5, %v1093_v7 }
0x154f   :  { %v1095_v13 = vadd.f32 %v2224_v5, %v1094_v12 }
0x1551   :  { %v1099_v38 = vsel %vm1098_vm5, %v2224_v5, %v1095_v13 }
0x1552   :  { %v1104_v16 = vsel %vm1101_vm8, %v1103_v14, %v1099_v38 }
0x1553   :  { %v1110_v21 = vmul.f32 %v1108_v19, %v1104_v16 }
0x1598   :  { %v1113_v15 = vpop.permute.xlu2 %1112 }
0x1599   :  { %v1115_v17 = vmul.f32 %v1113_v15, %v1104_v16 }
0x159b   :  { %1117 = vrot.lane.b32.xlu0 %v1115_v17, %s2429_s3 }
0x15a3   :  { %909 = vrot.lane.b32.xlu0 %v2708_v33, %s2429_s3 }
0x160d   :  { %v1118_v23 = vpop.permute.xlu0 %1117 }
0x160e   :  { %v2759_v24 = vadd.f32 %v1118_v23, %v1110_v21 }
0x1610   :  { %2225 = vtanh.f32 %v2759_v24  ;;  %v1179_v15 = vrot.slane %v2759_v24, 6 }
0x1615   :  { %v910_v26 = vpop.permute.xlu0 %909 }
0x1616   :  { %v2226_v0 = vpop.eup %2225  ;;  %912 = vst.msk [vmem:[#allocation2] sm:$0xc] %vm294_vm10, %v910_v26 }
0x1617   :  { %1123 = vrot.lane.b32.xlu1 %v2226_v0, %s2428_s7 }
0x161f   :  { %983 = vrot.lane.b32.xlu1 %v2727_v10, %s2429_s3  ;;  %v2774_v10 = vld [vmem:[#allocation8 + $0x8] sm:$0xff] }
0x1620   :  { %1408 = vmatpush.msrb.mxu1 %v2774_v10  ;;  %1473 = vmatpush.msrb.mxu2 %v2774_v10 }
0x1621   :  { %1547 = vmatpush.msrb.mxu3 %v2774_v10  ;;  %1837 = vmatpush.msra.mxu0 %v2774_v10 }
0x1622   :  { %1409 = vmatpush.msrb.mxu1 %v2784_v18  ;;  %1474 = vmatpush.msrb.mxu2 %v2784_v18 }
0x1623   :  { %1548 = vmatpush.msrb.mxu3 %v2784_v18  ;;  %1838 = vmatpush.msra.mxu0 %v2784_v18 }
0x1689   :  { %v1124_v27 = vpop.permute.xlu1 %1123 }
0x168a   :  { %v1126_v28 = vmul.f32 %v1124_v27, %v1104_v16 }
0x168c   :  { %1128 = vrot.lane.b32.xlu2 %v1126_v28, %s2429_s3 }
0x1691   :  { %v984_v33 = vpop.permute.xlu1 %983 }
0x1692   :  { %986 = vst.msk [vmem:[#allocation2] sm:$0x30] %vm369_vm11, %v984_v33 }
0x1694   :  { %1057 = vrot.lane.b32.xlu2 %v1055_v22, %s2429_s3 }
0x16e6   :  { %v1129_v39 = vpop.permute.xlu2 %1128 }
0x16e7   :  { %1131 = vst.msk [vmem:[#allocation2 + $0x8] sm:$0x3] %vm222_vm6, %v1129_v39  ;;  %2082 = vmatmul.msk.f32.vlgmr.msra.gmra.mxu1 %vm156_vm7, %v1129_v39 }
0x16e8   :  { %1619 = vmatpush.msra.mxu1 %v2769_v25 }
0x16ea   :  { %1620 = vmatpush.msra.mxu1 %v2772_v36 }
0x16ec   :  { %1621 = vmatpush.msra.mxu1 %v2774_v10 }
0x16ee   :  { %v1058_v40 = vpop.permute.xlu2 %1057  ;;  %1622 = vmatpush.msra.mxu1 %v2784_v18 }
0x16ef   :  { %1060 = vst.msk [vmem:[#allocation2] sm:$0xc0] %vm444_vm12, %v1058_v40  ;;  %1410 = vmatmul.f32.vlgmr.msrb.gmra.mxu1 %v2427_v8  ;;  %v2811_v8 = vld [vmem:[%s2980_s9] ss:$0 sm:$0xff] }
0x16f0   :  { %1909 = vmatpush.msrb.mxu1 %v2769_v25 }
0x16f2   :  { %1910 = vmatpush.msrb.mxu1 %v2772_v36 }
0x16f4   :  { %1911 = vmatpush.msrb.mxu1 %v2774_v10 }
0x16f6   :  { %v1351_v41 = vld [vmem:[#allocation2] sm:$0xff]  ;;  %1912 = vmatpush.msrb.mxu1 %v2784_v18 }
0x16f7   :  { %2088 = vmatmul.msk.f32.vlgmr.msrb.gmra.mxu0 %vm156_vm7, %v1351_v41 }
0x1764   :  { %v1151_v42 = vpop.f32.mrf.mxu1 }
0x1765   :  { %v1155_v44 = vrot.slane %v1151_v42, 6 }
0x1767   :  { %v1157_v29 = vadd.f32 %v1155_v44, %v2752_v61 }
0x1769   :  { %2227 = vtanh.f32 %v1157_v29  ;;  %v2083_v48 = vmul.f32 -1.442695, %v1157_v29 }
0x176c   :  { %v1411_v45 = vpop.f32.mrf.mxu1 }
0x176f   :  { %v2228_v30 = vpop.eup %2227 }
0x1770   :  { %1183 = vrot.lane.b32.xlu0 %v2228_v30, %s2428_s7 }
0x1774   :  { %v1384_v32 = vpop.f32.mrf.mxu0 }
0x1775   :  { %v2814_v20 = vadd.f32 %v2811_v8, %v1384_v32 }
0x1777   :  { %v1414_v34 = vadd.f32 %v1411_v45, %v2814_v20 }
0x1779   :  { %2229 = vtanh.f32 %v1414_v34  ;;  %v2090_v50 = vmul.f32 -1.442695, %v1414_v34 }
0x177a   :  { %2231 = vpow2.f32 %v2083_v48 }
0x177f   :  { %v2230_v47 = vpop.eup %2229 }
0x1780   :  { %1437 = vrot.lane.b32.xlu1 %v2230_v47, %s2428_s7  ;;  %v2232_v11 = vpop.eup %2231 }
0x1781   :  { %v1161_v49 = vadd.f32 1.0, %v2232_v11 }
0x1783   :  { %2233 = vrcp.f32 %v1161_v49  ;;  %v1173_v58 = vand.u32 2147483648, %v1161_v49  ;;  %vm1167_vm13 = vweird.f32 %v1161_v49  ;;  %v1171_v59 = vand.u32 2147483647, %v1161_v49 }
0x1784   :  { %2235 = vpow2.f32 %v2090_v50 }
0x1785   :  { %v1174_v62 = vor.u32 1.1754944e-38, %v1173_v58  ;;  %vm1172_vm15 = vcmp.eq.f32.partialorder %v1171_v59, 8.507059e+37 }
0x1789   :  { %v2234_v51 = vpop.eup %2233 }
0x178a   :  { %v2236_v52 = vpop.eup %2235  ;;  %v1163_v53 = vmul.f32 %v2234_v51, %v1161_v49  ;;  %vm1168_vm9 = vweird.f32 %v2234_v51 }
0x178b   :  { %v1418_v54 = vadd.f32 1.0, %v2236_v52  ;;  %vm1169_vm14 = vmor %vm1167_vm13, %vm1168_vm9 }
0x178c   :  { %v1164_v55 = vsub.f32 1.0, %v1163_v53 }
0x178d   :  { %2237 = vrcp.f32 %v1418_v54  ;;  %v1430_v7 = vand.u32 2147483648, %v1418_v54  ;;  %vm1424_vm1 = vweird.f32 %v1418_v54  ;;  %v1428_v12 = vand.u32 2147483647, %v1418_v54 }
0x178e   :  { %v1165_v22 = vmul.f32 %v2234_v51, %v1164_v55 }
0x178f   :  { %v1431_v43 = vor.u32 1.1754944e-38, %v1430_v7  ;;  %vm1429_vm3 = vcmp.eq.f32.partialorder %v1428_v12, 8.507059e+37 }
0x1790   :  { %v1166_v56 = vadd.f32 %v2234_v51, %v1165_v22 }
0x1792   :  { %v1170_v60 = vsel %vm1169_vm14, %v2234_v51, %v1166_v56 }
0x1793   :  { %v2238_v57 = vpop.eup %2237  ;;  %v1175_v2 = vsel %vm1172_vm15, %v1174_v62, %v1170_v60 }
0x1794   :  { %v1420_v63 = vmul.f32 %v2238_v57, %v1418_v54  ;;  %vm1425_vm0 = vweird.f32 %v2238_v57  ;;  %v1181_v16 = vmul.f32 %v1179_v15, %v1175_v2 }
0x1795   :  { %vm1426_vm2 = vmor %vm1424_vm1, %vm1425_vm0 }
0x1796   :  { %v1421_v4 = vsub.f32 1.0, %v1420_v63 }
0x1798   :  { %v1422_v5 = vmul.f32 %v2238_v57, %v1421_v4 }
0x179a   :  { %v1423_v6 = vadd.f32 %v2238_v57, %v1422_v5 }
0x179c   :  { %v1427_v13 = vsel %vm1426_vm2, %v2238_v57, %v1423_v6 }
0x179d   :  { %v1432_v38 = vsel %vm1429_vm3, %v1431_v43, %v1427_v13 }
0x179e   :  { %v1435_v23 = vmul.f32 0.0, %v1432_v38 }
0x17e2   :  { %v1184_v1 = vpop.permute.xlu0 %1183 }
0x17e3   :  { %v1186_v3 = vmul.f32 %v1184_v1, %v1175_v2 }
0x17e5   :  { %1188 = vrot.lane.b32.xlu2 %v1186_v3, %s2429_s3 }
0x17f2   :  { %v1438_v9 = vpop.permute.xlu1 %1437 }
0x17f3   :  { %v1440_v14 = vmul.f32 %v1438_v9, %v1432_v38 }
0x17f5   :  { %1442 = vrot.lane.b32.xlu0 %v1440_v14, %s2429_s3 }
0x183f   :  { %v1189_v17 = vpop.permute.xlu2 %1188 }
0x1840   :  { %v2821_v19 = vadd.f32 %v1189_v17, %v1181_v16 }
0x1842   :  { %2239 = vtanh.f32 %v2821_v19  ;;  %v1253_v9 = vrot.slane %v2821_v19, 6 }
0x1848   :  { %v2240_v21 = vpop.eup %2239 }
0x1849   :  { %1194 = vrot.lane.b32.xlu1 %v2240_v21, %s2428_s7 }
0x1867   :  { %v1443_v26 = vpop.permute.xlu0 %1442 }
0x1868   :  { %v2825_v0 = vadd.f32 %v1443_v26, %v1435_v23 }
0x186a   :  { %2241 = vtanh.f32 %v2825_v0  ;;  %v1504_v17 = vrot.slane %v2825_v0, 6 }
0x1870   :  { %v2242_v27 = vpop.eup %2241 }
0x1871   :  { %1448 = vrot.lane.b32.xlu2 %v2242_v27, %s2428_s7 }
0x18bb   :  { %v1195_v28 = vpop.permute.xlu1 %1194 }
0x18bc   :  { %v2829_v24 = vmul.f32 %v1195_v28, %v1175_v2 }
0x18be   :  { %v1203_v33 = vrot.slane %v2829_v24, 2 }
0x18c0   :  { %1204 = vrot.lane.b32.xlu0 %v1203_v33, %s2429_s3 }
0x18cb   :  { %v1449_v31 = vpop.permute.xlu2 %1448 }
0x18cc   :  { %v1451_v35 = vmul.f32 %v1449_v31, %v1432_v38 }
0x18ce   :  { %1453 = vrot.lane.b32.xlu1 %v1451_v35, %s2429_s3 }
0x1932   :  { %v1205_v37 = vpop.permute.xlu0 %1204 }
0x1933   :  { %2084 = vmatmul.msk.f32.vlgmr.msra.gmra.mxu2 %vm156_vm7, %v1205_v37 }
0x1934   :  { %1693 = vmatpush.msra.mxu2 %v2769_v25 }
0x1936   :  { %1694 = vmatpush.msra.mxu2 %v2772_v36 }
0x1938   :  { %1695 = vmatpush.msra.mxu2 %v2774_v10 }
0x193a   :  { %1696 = vmatpush.msra.mxu2 %v2784_v18 }
0x1940   :  { %v1454_v46 = vpop.permute.xlu1 %1453 }
0x1941   :  { %1456 = vst.msk [vmem:[#allocation2] sm:$0x3] %vm222_vm6, %v1454_v46  ;;  %2091 = vmatmul.msk.f32.vlgmr.msrb.gmra.mxu2 %vm156_vm7, %v1454_v46 }
0x19b6   :  { %v1225_v39 = vpop.f32.mrf.mxu2 }
0x19b7   :  { %v1229_v40 = vrot.slane %v1225_v39, 4 }
0x19b9   :  { %v1231_v41 = vadd.f32 %v1229_v40, %v2752_v61 }
0x19bb   :  { %2243 = vtanh.f32 %v1231_v41  ;;  %v2085_v45 = vmul.f32 -1.442695, %v1231_v41 }
0x19c1   :  { %v2244_v42 = vpop.eup %2243 }
0x19c2   :  { %1257 = vrot.lane.b32.xlu2 %v2244_v42, %s2428_s7 }
0x19c4   :  { %v1476_v44 = vpop.f32.mrf.mxu2 }
0x19c5   :  { %v1480_v29 = vrot.slane %v1476_v44, 6 }
0x19c7   :  { %v1482_v30 = vadd.f32 %v1480_v29, %v2814_v20 }
0x19c9   :  { %2245 = vtanh.f32 %v1482_v30  ;;  %v2092_v51 = vmul.f32 -1.442695, %v1482_v30 }
0x19ca   :  { %2247 = vpow2.f32 %v2085_v45 }
0x19cf   :  { %v2246_v32 = vpop.eup %2245 }
0x19d0   :  { %1508 = vrot.lane.b32.xlu0 %v2246_v32, %s2428_s7  ;;  %v2248_v34 = vpop.eup %2247 }
0x19d1   :  { %v1235_v47 = vadd.f32 1.0, %v2248_v34 }
0x19d3   :  { %2249 = vrcp.f32 %v1235_v47  ;;  %v1247_v53 = vand.u32 2147483648, %v1235_v47  ;;  %vm1241_vm5 = vweird.f32 %v1235_v47  ;;  %v1245_v54 = vand.u32 2147483647, %v1235_v47 }
0x19d4   :  { %2251 = vpow2.f32 %v2092_v51 }
0x19d5   :  { %v1248_v22 = vor.u32 1.1754944e-38, %v1247_v53  ;;  %vm1246_vm9 = vcmp.eq.f32.partialorder %v1245_v54, 8.507059e+37 }
0x19d9   :  { %v2250_v48 = vpop.eup %2249 }
0x19da   :  { %v1237_v11 = vmul.f32 %v2250_v48, %v1235_v47  ;;  %vm1242_vm4 = vweird.f32 %v2250_v48  ;;  %v2252_v59 = vpop.eup %2251 }
0x19db   :  { %vm1243_vm8 = vmor %vm1241_vm5, %vm1242_vm4  ;;  %v1486_v60 = vadd.f32 1.0, %v2252_v59 }
0x19dc   :  { %v1238_v49 = vsub.f32 1.0, %v1237_v11 }
0x19dd   :  { %2253 = vrcp.f32 %v1486_v60  ;;  %v1498_v4 = vand.u32 2147483648, %v1486_v60  ;;  %vm1492_vm14 = vweird.f32 %v1486_v60  ;;  %v1496_v5 = vand.u32 2147483647, %v1486_v60 }
0x19de   :  { %v1239_v50 = vmul.f32 %v2250_v48, %v1238_v49 }
0x19df   :  { %v1499_v7 = vor.u32 1.1754944e-38, %v1498_v4  ;;  %vm1497_vm0 = vcmp.eq.f32.partialorder %v1496_v5, 8.507059e+37 }
0x19e0   :  { %v1240_v52 = vadd.f32 %v2250_v48, %v1239_v50 }
0x19e2   :  { %v1244_v55 = vsel %vm1243_vm8, %v2250_v48, %v1240_v52 }
0x19e3   :  { %v1249_v56 = vsel %vm1246_vm9, %v1248_v22, %v1244_v55  ;;  %v2254_v63 = vpop.eup %2253 }
0x19e4   :  { %v1488_v62 = vmul.f32 %v2254_v63, %v1486_v60  ;;  %vm1493_vm13 = vweird.f32 %v2254_v63  ;;  %v1255_v38 = vmul.f32 %v1253_v9, %v1249_v56 }
0x19e5   :  { %vm1494_vm15 = vmor %vm1492_vm14, %vm1493_vm13 }
0x19e6   :  { %v1489_v1 = vsub.f32 1.0, %v1488_v62 }
0x19e8   :  { %v1490_v2 = vmul.f32 %v2254_v63, %v1489_v1 }
0x19ea   :  { %v1491_v3 = vadd.f32 %v2254_v63, %v1490_v2 }
0x19ec   :  { %v1495_v6 = vsel %vm1494_vm15, %v2254_v63, %v1491_v3 }
0x19ed   :  { %v1500_v13 = vsel %vm1497_vm0, %v1499_v7, %v1495_v6 }
0x19ee   :  { %v1506_v21 = vmul.f32 %v1504_v17, %v1500_v13 }
0x1a1c   :  { %v1258_v57 = vpop.permute.xlu2 %1257 }
0x1a1d   :  { %v1260_v58 = vmul.f32 %v1258_v57, %v1249_v56 }
0x1a1f   :  { %1262 = vrot.lane.b32.xlu1 %v1260_v58, %s2429_s3 }
0x1a42   :  { %v1509_v12 = vpop.permute.xlu0 %1508 }
0x1a43   :  { %v1511_v43 = vmul.f32 %v1509_v12, %v1500_v13 }
0x1a45   :  { %1513 = vrot.lane.b32.xlu2 %v1511_v43, %s2429_s3 }
0x1a91   :  { %v1263_v14 = vpop.permute.xlu1 %1262 }
0x1a92   :  { %v2848_v15 = vadd.f32 %v1263_v14, %v1255_v38 }
0x1a94   :  { %2255 = vtanh.f32 %v2848_v15 }
0x1a9a   :  { %v2256_v16 = vpop.eup %2255 }
0x1a9b   :  { %1268 = vrot.lane.b32.xlu0 %v2256_v16, %s2428_s7 }
0x1a9f   :  { %v1514_v23 = vpop.permute.xlu2 %1513 }
0x1aa0   :  { %v1516_v26 = vadd.f32 %v1514_v23, %v1506_v21 }
0x1aa2   :  { %2257 = vtanh.f32 %v1516_v26  ;;  %v1578_v55 = vrot.slane %v1516_v26, 6  ;;  %v1327_v26 = vrot.slane %v2848_v15, 6 }
0x1aa8   :  { %v2258_v27 = vpop.eup %2257 }
0x1aa9   :  { %1519 = vrot.lane.b32.xlu1 %v2258_v27, %s2428_s7 }
0x1b0d   :  { %v1269_v28 = vpop.permute.xlu0 %1268 }
0x1b0e   :  { %v2854_v19 = vmul.f32 %v1269_v28, %v1249_v56 }
0x1b10   :  { %v1277_v33 = vrot.slane %v2854_v19, 4 }
0x1b12   :  { %1278 = vrot.lane.b32.xlu2 %v1277_v33, %s2429_s3 }
0x1b1b   :  { %v1520_v31 = vpop.permute.xlu1 %1519 }
0x1b1c   :  { %v2858_v35 = vmul.f32 %v1520_v31, %v1500_v13 }
0x1b1e   :  { %v1528_v37 = vrot.slane %v2858_v35, 2 }
0x1b20   :  { %1529 = vrot.lane.b32.xlu0 %v1528_v37, %s2429_s3 }
0x1b6c   :  { %v1279_v0 = vpop.permute.xlu2 %1278 }
0x1b6d   :  { %2086 = vmatmul.msk.f32.vlgmr.msra.gmra.mxu3 %vm156_vm7, %v1279_v0 }
0x1b6e   :  { %1761 = vmatpush.msra.mxu3 %v2769_v25 }
0x1b70   :  { %1762 = vmatpush.msra.mxu3 %v2772_v36 }
0x1b72   :  { %1763 = vmatpush.msra.mxu3 %v2774_v10 }
0x1b74   :  { %1764 = vmatpush.msra.mxu3 %v2784_v18 }
0x1b92   :  { %v1530_v46 = vpop.permute.xlu0 %1529 }
0x1b93   :  { %2093 = vmatmul.msk.f32.vlgmr.msrb.gmra.mxu3 %vm156_vm7, %v1530_v46 }
0x1bf0   :  { %v1299_v39 = vpop.f32.mrf.mxu3 }
0x1bf1   :  { %v1303_v48 = vrot.slane %v1299_v39, 2 }
0x1bf3   :  { %v1305_v50 = vadd.f32 %v1303_v48, %v2752_v61 }
0x1bf5   :  { %v2087_v61 = vmul.f32 -1.442695, %v1305_v50 }
0x1c16   :  { %v1550_v40 = vpop.f32.mrf.mxu3 }
0x1c17   :  { %v1554_v41 = vrot.slane %v1550_v40, 4 }
0x1c19   :  { %v1556_v42 = vadd.f32 %v1554_v41, %v2814_v20 }
0x1c1b   :  { %2259 = vtanh.f32 %v1556_v42  ;;  %v2094_v29 = vmul.f32 -1.442695, %v1556_v42 }
0x1c1d   :  { %2261 = vpow2.f32 %v2094_v29 }
0x1c21   :  { %v2260_v44 = vpop.eup %2259 }
0x1c22   :  { %1582 = vrot.lane.b32.xlu1 %v2260_v44, %s2428_s7 }
0x1c23   :  { %v2262_v25 = vpop.eup %2261 }
0x1c24   :  { %v1560_v36 = vadd.f32 1.0, %v2262_v25 }
0x1c26   :  { %2263 = vrcp.f32 %v1560_v36  ;;  %v1572_v34 = vand.u32 2147483648, %v1560_v36  ;;  %vm1566_vm2 = vweird.f32 %v1560_v36  ;;  %v1570_v47 = vand.u32 2147483647, %v1560_v36 }
0x1c27   :  { %2265 = vtanh.f32 %v1305_v50 }
0x1c28   :  { %v1573_v49 = vor.u32 1.1754944e-38, %v1572_v34  ;;  %vm1571_vm4 = vcmp.eq.f32.partialorder %v1570_v47, 8.507059e+37 }
0x1c2c   :  { %v2264_v10 = vpop.eup %2263 }
0x1c2d   :  { %v1562_v30 = vmul.f32 %v2264_v10, %v1560_v36  ;;  %vm1567_vm1 = vweird.f32 %v2264_v10  ;;  %v2266_v54 = vpop.eup %2265 }
0x1c2e   :  { %vm1568_vm3 = vmor %vm1566_vm2, %vm1567_vm1 }
0x1c2f   :  { %v1563_v18 = vsub.f32 1.0, %v1562_v30 }
0x1c31   :  { %v1564_v32 = vmul.f32 %v2264_v10, %v1563_v18 }
0x1c33   :  { %v1565_v45 = vadd.f32 %v2264_v10, %v1564_v32 }
0x1c35   :  { %v1569_v11 = vsel %vm1568_vm3, %v2264_v10, %v1565_v45 }
0x1c36   :  { %v1574_v52 = vsel %vm1571_vm4, %v1573_v49, %v1569_v11 }
0x1c37   :  { %v1580_v22 = vmul.f32 %v1578_v55, %v1574_v52 }
0x1c94   :  { %v1583_v51 = vpop.permute.xlu1 %1582 }
0x1c95   :  { %v1585_v53 = vmul.f32 %v1583_v51, %v1574_v52 }
0x1c97   :  { %1587 = vrot.lane.b32.xlu2 %v1585_v53, %s2429_s3 }
0x1c9f   :  { %1331 = vrot.lane.b32.xlu2 %v2266_v54, %s2428_s7 }
0x1cf1   :  { %v1588_v56 = vpop.permute.xlu2 %1587 }
0x1cf2   :  { %v2873_v57 = vadd.f32 %v1588_v56, %v1580_v22 }
0x1cf4   :  { %2267 = vtanh.f32 %v2873_v57  ;;  %v1652_v45 = vrot.slane %v2873_v57, 6 }
0x1cf5   :  { %2269 = vpow2.f32 %v2087_v61 }
0x1cf9   :  { %v1332_v43 = vpop.permute.xlu2 %1331 }
0x1cfa   :  { %v2268_v58 = vpop.eup %2267 }
0x1cfb   :  { %1593 = vrot.lane.b32.xlu0 %v2268_v58, %s2428_s7  ;;  %v2270_v59 = vpop.eup %2269 }
0x1cfc   :  { %v1309_v60 = vadd.f32 1.0, %v2270_v59 }
0x1cfe   :  { %2271 = vrcp.f32 %v1309_v60  ;;  %v1321_v7 = vand.u32 2147483648, %v1309_v60  ;;  %vm1315_vm8 = vweird.f32 %v1309_v60  ;;  %v1319_v12 = vand.u32 2147483647, %v1309_v60 }
0x1d00   :  { %v1322_v9 = vor.u32 1.1754944e-38, %v1321_v7  ;;  %vm1320_vm13 = vcmp.eq.f32.partialorder %v1319_v12, 8.507059e+37 }
0x1d04   :  { %v2272_v63 = vpop.eup %2271 }
0x1d05   :  { %v1311_v62 = vmul.f32 %v2272_v63, %v1309_v60  ;;  %vm1316_vm5 = vweird.f32 %v2272_v63 }
0x1d06   :  { %vm1317_vm9 = vmor %vm1315_vm8, %vm1316_vm5 }
0x1d07   :  { %v1312_v1 = vsub.f32 1.0, %v1311_v62 }
0x1d09   :  { %v1313_v2 = vmul.f32 %v2272_v63, %v1312_v1 }
0x1d0b   :  { %v1314_v5 = vadd.f32 %v2272_v63, %v1313_v2 }
0x1d0d   :  { %v1318_v13 = vsel %vm1317_vm9, %v2272_v63, %v1314_v5 }
0x1d0e   :  { %v1323_v38 = vsel %vm1320_vm13, %v1322_v9, %v1318_v13 }
0x1d0f   :  { %v1334_v14 = vmul.f32 %v1332_v43, %v1323_v38  ;;  %v1329_v28 = vmul.f32 %v1327_v26, %v1323_v38 }
0x1d6d   :  { %v1594_v3 = vpop.permute.xlu0 %1593 }
0x1d6e   :  { %v2877_v4 = vmul.f32 %v1594_v3, %v1574_v52 }
0x1d70   :  { %v1602_v6 = vrot.slane %v2877_v4, 4 }
0x1d72   :  { %1603 = vrot.lane.b32.xlu1 %v1602_v6, %s2429_s3 }
0x1d7a   :  { %1336 = vrot.lane.b32.xlu1 %v1334_v14, %s2429_s3 }
0x1de4   :  { %v1604_v16 = vpop.permute.xlu1 %1603 }
0x1de5   :  { %2095 = vmatmul.msk.f32.vlgmr.msra.gmra.mxu1 %vm156_vm7, %v1604_v16 }
0x1dec   :  { %v1337_v27 = vpop.permute.xlu1 %1336 }
0x1ded   :  { %v1339_v33 = vadd.f32 %v1337_v27, %v1329_v28 }
0x1e62   :  { %v1624_v17 = vpop.f32.mrf.mxu1 }
0x1e63   :  { %v1628_v21 = vrot.slane %v1624_v17, 2 }
0x1e65   :  { %v1630_v23 = vadd.f32 %v1628_v21, %v2814_v20 }
0x1e67   :  { %2273 = vtanh.f32 %v1630_v23  ;;  %v2096_v0 = vmul.f32 -1.442695, %v1630_v23 }
0x1e68   :  { %2275 = vtanh.f32 %v1339_v33 }
0x1e69   :  { %2277 = vpow2.f32 %v2096_v0 }
0x1e6d   :  { %v2274_v31 = vpop.eup %2273 }
0x1e6e   :  { %1656 = vrot.lane.b32.xlu0 %v2274_v31, %s2428_s7  ;;  %v2276_v37 = vpop.eup %2275 }
0x1e6f   :  { %v2278_v46 = vpop.eup %2277 }
0x1e70   :  { %v1634_v20 = vadd.f32 1.0, %v2278_v46 }
0x1e72   :  { %2279 = vrcp.f32 %v1634_v20  ;;  %v1646_v44 = vand.u32 2147483648, %v1634_v20  ;;  %vm1640_vm15 = vweird.f32 %v1634_v20  ;;  %v1644_v29 = vand.u32 2147483647, %v1634_v20 }
0x1e74   :  { %v1647_v36 = vor.u32 1.1754944e-38, %v1646_v44  ;;  %vm1645_vm1 = vcmp.eq.f32.partialorder %v1644_v29, 8.507059e+37 }
0x1e76   :  { %1342 = vrot.lane.b32.xlu0 %v2276_v37, %s2428_s7 }
0x1e78   :  { %v2280_v15 = vpop.eup %2279 }
0x1e79   :  { %v1636_v39 = vmul.f32 %v2280_v15, %v1634_v20  ;;  %vm1641_vm14 = vweird.f32 %v2280_v15 }
0x1e7a   :  { %vm1642_vm0 = vmor %vm1640_vm15, %vm1641_vm14 }
0x1e7b   :  { %v1637_v40 = vsub.f32 1.0, %v1636_v39 }
0x1e7d   :  { %v1638_v41 = vmul.f32 %v2280_v15, %v1637_v40 }
0x1e7e   :  { %1273 = vrot.lane.b32.xlu0 %v2854_v19, %s2429_s3 }
0x1e7f   :  { %v1639_v42 = vadd.f32 %v2280_v15, %v1638_v41 }
0x1e81   :  { %v1643_v25 = vsel %vm1642_vm0, %v2280_v15, %v1639_v42 }
0x1e82   :  { %v1648_v19 = vsel %vm1645_vm1, %v1647_v36, %v1643_v25 }
0x1e83   :  { %v1654_v34 = vmul.f32 %v1652_v45, %v1648_v19 }
0x1ee0   :  { %v1657_v10 = vpop.permute.xlu0 %1656 }
0x1ee1   :  { %v1659_v30 = vmul.f32 %v1657_v10, %v1648_v19 }
0x1ee3   :  { %1661 = vrot.lane.b32.xlu2 %v1659_v30, %s2429_s3 }
0x1ee8   :  { %v1343_v18 = vpop.permute.xlu0 %1342 }
0x1ee9   :  { %v1345_v50 = vmul.f32 %v1343_v18, %v1323_v38 }
0x1eeb   :  { %1199 = vrot.lane.b32.xlu2 %v2829_v24, %s2429_s3 }
0x1ef0   :  { %v1274_v32 = vpop.permute.xlu0 %1273 }
0x1ef1   :  { %1276 = vst.msk [vmem:[#allocation2 + $0x8] sm:$0x30] %vm369_vm11, %v1274_v32 }
0x1f3d   :  { %v1662_v47 = vpop.permute.xlu2 %1661 }
0x1f3e   :  { %v1664_v48 = vadd.f32 %v1662_v47, %v1654_v34 }
0x1f40   :  { %2281 = vtanh.f32 %v1664_v48  ;;  %v1723_v38 = vrot.slane %v1664_v48, 6 }
0x1f45   :  { %v1200_v11 = vpop.permute.xlu2 %1199 }
0x1f46   :  { %v2282_v49 = vpop.eup %2281  ;;  %1202 = vst.msk [vmem:[#allocation2 + $0x8] sm:$0xc] %vm294_vm10, %v1200_v11 }
0x1f47   :  { %1667 = vrot.lane.b32.xlu1 %v2282_v49, %s2428_s7 }
0x1f4f   :  { %1347 = vrot.lane.b32.xlu1 %v1345_v50, %s2429_s3 }
0x1fb9   :  { %v1668_v51 = vpop.permute.xlu1 %1667 }
0x1fba   :  { %v2897_v24 = vmul.f32 %v1668_v51, %v1648_v19 }
0x1fbc   :  { %v1676_v52 = vrot.slane %v2897_v24, 6 }
0x1fbe   :  { %1677 = vrot.lane.b32.xlu2 %v1676_v52, %s2429_s3 }
0x1fc1   :  { %v1348_v53 = vpop.permute.xlu1 %1347 }
0x1fc2   :  { %1350 = vst.msk [vmem:[#allocation2 + $0x8] sm:$0xc0] %vm444_vm12, %v1348_v53 }
0x1fc9   :  { %v1352_v54 = vld [vmem:[#allocation2 + $0x8] sm:$0xff] }
0x1fca   :  { %2089 = vmatmul.msk.f32.gmra.mxu0 %vm156_vm7, %v1352_v54 }
0x2018   :  { %v1678_v55 = vpop.permute.xlu2 %1677 }
0x2019   :  { %2097 = vmatmul.msk.f32.vlgmr.msra.gmra.mxu2 %vm156_vm7, %v1678_v55 }
0x2047   :  { %v1387_v22 = vpop.f32.mrf.mxu0 }
0x2048   :  { %v2905_v56 = vadd.f32 %v2811_v8, %v1387_v22 }
0x209c   :  { %v1698_v57 = vpop.f32.mrf.mxu2 }
0x209d   :  { %v1701_v58 = vadd.f32 %v1698_v57, %v2905_v56 }
0x209f   :  { %2283 = vtanh.f32 %v1701_v58  ;;  %v2098_v59 = vmul.f32 -1.442695, %v1701_v58 }
0x20a1   :  { %2285 = vpow2.f32 %v2098_v59 }
0x20a5   :  { %v2284_v61 = vpop.eup %2283 }
0x20a6   :  { %1727 = vrot.lane.b32.xlu0 %v2284_v61, %s2428_s7 }
0x20a7   :  { %v2286_v60 = vpop.eup %2285 }
0x20a8   :  { %v1705_v63 = vadd.f32 1.0, %v2286_v60 }
0x20aa   :  { %2287 = vrcp.f32 %v1705_v63  ;;  %v1717_v8 = vand.u32 2147483648, %v1705_v63  ;;  %vm1711_vm3 = vweird.f32 %v1705_v63  ;;  %v1715_v6 = vand.u32 2147483647, %v1705_v63 }
0x20ac   :  { %v1718_v12 = vor.u32 1.1754944e-38, %v1717_v8  ;;  %vm1716_vm5 = vcmp.eq.f32.partialorder %v1715_v6, 8.507059e+37 }
0x20b0   :  { %v2288_v62 = vpop.eup %2287 }
0x20b1   :  { %v1707_v1 = vmul.f32 %v2288_v62, %v1705_v63  ;;  %vm1712_vm2 = vweird.f32 %v2288_v62 }
0x20b2   :  { %vm1713_vm4 = vmor %vm1711_vm3, %vm1712_vm2 }
0x20b3   :  { %v1708_v2 = vsub.f32 1.0, %v1707_v1 }
0x20b5   :  { %v1709_v3 = vmul.f32 %v2288_v62, %v1708_v2 }
0x20b7   :  { %v1710_v5 = vadd.f32 %v2288_v62, %v1709_v3 }
0x20b9   :  { %v1714_v7 = vsel %vm1713_vm4, %v2288_v62, %v1710_v5 }
0x20ba   :  { %v1719_v43 = vsel %vm1716_vm5, %v1718_v12, %v1714_v7 }
0x20bb   :  { %v1725_v14 = vmul.f32 %v1723_v38, %v1719_v43 }
0x2118   :  { %v1728_v13 = vpop.permute.xlu0 %1727 }
0x2119   :  { %v1730_v9 = vmul.f32 %v1728_v13, %v1719_v43 }
0x211b   :  { %1732 = vrot.lane.b32.xlu1 %v1730_v9, %s2429_s3 }
0x218d   :  { %v1733_v16 = vpop.permute.xlu1 %1732 }
0x218e   :  { %v1735_v17 = vadd.f32 %v1733_v16, %v1725_v14 }
0x2190   :  { %2289 = vtanh.f32 %v1735_v17  ;;  %v1794_v18 = vrot.slane %v1735_v17, 6 }
0x2196   :  { %v2290_v21 = vpop.eup %2289 }
0x2197   :  { %1738 = vrot.lane.b32.xlu2 %v2290_v21, %s2428_s7 }
0x21f1   :  { %v1739_v23 = vpop.permute.xlu2 %1738 }
0x21f2   :  { %v1741_v26 = vmul.f32 %v1739_v23, %v1719_v43 }
0x21f4   :  { %1743 = vrot.lane.b32.xlu0 %v1741_v26, %s2429_s3 }
0x2266   :  { %v1744_v27 = vpop.permute.xlu0 %1743 }
0x2267   :  { %1746 = vst.msk [vmem:[#allocation2 + $0x8] sm:$0x3] %vm222_vm6, %v1744_v27  ;;  %2099 = vmatmul.msk.f32.vlgmr.msra.gmra.mxu3 %vm156_vm7, %v1744_v27 }
0x22ea   :  { %v1766_v28 = vpop.f32.mrf.mxu3 }
0x22eb   :  { %v1770_v33 = vrot.slane %v1766_v28, 6 }
0x22ed   :  { %v1772_v31 = vadd.f32 %v1770_v33, %v2905_v56 }
0x22ef   :  { %2291 = vtanh.f32 %v1772_v31  ;;  %v2100_v0 = vmul.f32 -1.442695, %v1772_v31 }
0x22f1   :  { %2293 = vpow2.f32 %v2100_v0 }
0x22f5   :  { %v2292_v37 = vpop.eup %2291 }
0x22f6   :  { %1798 = vrot.lane.b32.xlu1 %v2292_v37, %s2428_s7 }
0x22f7   :  { %v2294_v46 = vpop.eup %2293 }
0x22f8   :  { %v1776_v20 = vadd.f32 1.0, %v2294_v46 }
0x22fa   :  { %2295 = vrcp.f32 %v1776_v20  ;;  %v1788_v44 = vand.u32 2147483648, %v1776_v20  ;;  %vm1782_vm8 = vweird.f32 %v1776_v20  ;;  %v1786_v29 = vand.u32 2147483647, %v1776_v20 }
0x22fc   :  { %v1789_v36 = vor.u32 1.1754944e-38, %v1788_v44  ;;  %vm1787_vm13 = vcmp.eq.f32.partialorder %v1786_v29, 8.507059e+37 }
0x2300   :  { %v2296_v15 = vpop.eup %2295 }
0x2301   :  { %v1778_v39 = vmul.f32 %v2296_v15, %v1776_v20  ;;  %vm1783_vm6 = vweird.f32 %v2296_v15 }
0x2302   :  { %vm1784_vm9 = vmor %vm1782_vm8, %vm1783_vm6 }
0x2303   :  { %v1779_v40 = vsub.f32 1.0, %v1778_v39 }
0x2305   :  { %v1780_v41 = vmul.f32 %v2296_v15, %v1779_v40 }
0x2307   :  { %v1781_v42 = vadd.f32 %v2296_v15, %v1780_v41 }
0x2309   :  { %v1785_v25 = vsel %vm1784_vm9, %v2296_v15, %v1781_v42 }
0x230a   :  { %v1790_v19 = vsel %vm1787_vm13, %v1789_v36, %v1785_v25 }
0x230b   :  { %v1796_v32 = vmul.f32 %v1794_v18, %v1790_v19 }
0x2368   :  { %v1799_v10 = vpop.permute.xlu1 %1798 }
0x2369   :  { %v1801_v30 = vmul.f32 %v1799_v10, %v1790_v19 }
0x236b   :  { %1803 = vrot.lane.b32.xlu2 %v1801_v30, %s2429_s3 }
0x23c5   :  { %v1804_v45 = vpop.permute.xlu2 %1803 }
0x23c6   :  { %v1806_v34 = vadd.f32 %v1804_v45, %v1796_v32 }
0x23c8   :  { %2297 = vtanh.f32 %v1806_v34  ;;  %v1868_v7 = vrot.slane %v1806_v34, 6  ;;  %v1970_v34 = vld [vmem:[%s2981_s10 + $0x10] sm:$0xff] }
0x23ce   :  { %v2298_v47 = vpop.eup %2297 }
0x23cf   :  { %1809 = vrot.lane.b32.xlu0 %v2298_v47, %s2428_s7  ;;  %v1969_v47 = vld [vmem:[%s2981_s10 + $0x8] sm:$0xff] }
0x2441   :  { %v1810_v48 = vpop.permute.xlu0 %1809 }
0x2442   :  { %v1812_v11 = vmul.f32 %v1810_v48, %v1790_v19  ;;  %v1968_v48 = vld [vmem:[%s2981_s10] sm:$0xff] }
0x2444   :  { %v1818_v49 = vrot.slane %v1812_v11, 2 }
0x2446   :  { %1819 = vrot.lane.b32.xlu1 %v1818_v49, %s2429_s3 }
0x24b8   :  { %v1820_v50 = vpop.permute.xlu1 %1819 }
0x24b9   :  { %2101 = vmatmul.msk.f32.vlgmr.msra.gmra.mxu0 %vm156_vm7, %v1820_v50 }
0x2536   :  { %v1840_v51 = vpop.f32.mrf.mxu0 }
0x2537   :  { %v1844_v52 = vrot.slane %v1840_v51, 4 }
0x2539   :  { %v1846_v53 = vadd.f32 %v1844_v52, %v2905_v56 }
0x253b   :  { %2299 = vtanh.f32 %v1846_v53  ;;  %v2102_v55 = vmul.f32 -1.442695, %v1846_v53  ;;  %v2008_v53 = vld [vmem:[%s2983_s12 + $0x8] sm:$0xff] }
0x253c   :  { %2034 = vmatpush.msrb.mxu3 %v2008_v53 }
0x253d   :  { %2301 = vpow2.f32 %v2102_v55  ;;  %v2121_v55 = vld [vmem:[#allocation9] ss:$0 sm:$0xff] }
0x2541   :  { %v2300_v54 = vpop.eup %2299 }
0x2542   :  { %1872 = vrot.lane.b32.xlu2 %v2300_v54, %s2428_s7  ;;  %v2007_v54 = vld [vmem:[%s2983_s12] sm:$0xff] }
0x2543   :  { %v2302_v22 = vpop.eup %2301  ;;  %2035 = vmatpush.msrb.mxu3 %v2007_v54 }
0x2544   :  { %v1850_v57 = vadd.f32 1.0, %v2302_v22 }
0x2546   :  { %2303 = vrcp.f32 %v1850_v57  ;;  %v1862_v62 = vand.u32 2147483648, %v1850_v57  ;;  %vm1856_vm15 = vweird.f32 %v1850_v57  ;;  %v1860_v1 = vand.u32 2147483647, %v1850_v57 }
0x2548   :  { %v1863_v3 = vor.u32 1.1754944e-38, %v1862_v62  ;;  %vm1861_vm1 = vcmp.eq.f32.partialorder %v1860_v1, 8.507059e+37 }
0x254c   :  { %v2304_v58 = vpop.eup %2303 }
0x254d   :  { %v1852_v61 = vmul.f32 %v2304_v58, %v1850_v57  ;;  %vm1857_vm14 = vweird.f32 %v2304_v58 }
0x254e   :  { %vm1858_vm0 = vmor %vm1856_vm15, %vm1857_vm14 }
0x254f   :  { %v1853_v59 = vsub.f32 1.0, %v1852_v61 }
0x2551   :  { %v1854_v60 = vmul.f32 %v2304_v58, %v1853_v59 }
0x2553   :  { %v1855_v63 = vadd.f32 %v2304_v58, %v1854_v60 }
0x2555   :  { %v1859_v2 = vsel %vm1858_vm0, %v2304_v58, %v1855_v63  ;;  %v2122_v63 = vld [vmem:[#allocation3] ss:$0 sm:$0xff] }
0x2556   :  { %v1864_v8 = vsel %vm1861_vm1, %v1863_v3, %v1859_v2 }
0x2557   :  { %v1870_v12 = vmul.f32 %v1868_v7, %v1864_v8 }
0x259c   :  { %v1873_v5 = vpop.permute.xlu2 %1872 }
0x259d   :  { %v1875_v6 = vmul.f32 %v1873_v5, %v1864_v8 }
0x259f   :  { %1877 = vrot.lane.b32.xlu0 %v1875_v6, %s2429_s3 }
0x2611   :  { %v1878_v13 = vpop.permute.xlu0 %1877 }
0x2612   :  { %v1880_v43 = vadd.f32 %v1878_v13, %v1870_v12 }
0x2614   :  { %2305 = vtanh.f32 %v1880_v43  ;;  %v1942_v36 = vrot.slane %v1880_v43, 6 }
0x261a   :  { %v2306_v9 = vpop.eup %2305 }
0x261b   :  { %1883 = vrot.lane.b32.xlu1 %v2306_v9, %s2428_s7 }
0x268d   :  { %v1884_v38 = vpop.permute.xlu1 %1883 }
0x268e   :  { %v1886_v14 = vmul.f32 %v1884_v38, %v1864_v8 }
0x2690   :  { %v1892_v16 = vrot.slane %v1886_v14, 4 }
0x2692   :  { %1893 = vrot.lane.b32.xlu2 %v1892_v16, %s2429_s3 }
0x26ec   :  { %v1894_v17 = vpop.permute.xlu2 %1893 }
0x26ed   :  { %2103 = vmatmul.msk.f32.vlgmr.msrb.gmra.mxu1 %vm156_vm7, %v1894_v17 }
0x276a   :  { %v1914_v21 = vpop.f32.mrf.mxu1 }
0x276b   :  { %v1918_v23 = vrot.slane %v1914_v21, 2 }
0x276d   :  { %v1920_v26 = vadd.f32 %v1918_v23, %v2905_v56 }
0x276f   :  { %2307 = vtanh.f32 %v1920_v26  ;;  %v2104_v28 = vmul.f32 -1.442695, %v1920_v26 }
0x2771   :  { %2309 = vpow2.f32 %v2104_v28 }
0x2775   :  { %v2308_v27 = vpop.eup %2307 }
0x2776   :  { %1946 = vrot.lane.b32.xlu0 %v2308_v27, %s2428_s7 }
0x2777   :  { %v2310_v33 = vpop.eup %2309 }
0x2778   :  { %v1924_v31 = vadd.f32 1.0, %v2310_v33 }
0x277a   :  { %2311 = vrcp.f32 %v1924_v31  ;;  %v1936_v56 = vand.u32 2147483648, %v1924_v31  ;;  %vm1930_vm3 = vweird.f32 %v1924_v31  ;;  %v1934_v39 = vand.u32 2147483647, %v1924_v31 }
0x277c   :  { %v1937_v41 = vor.u32 1.1754944e-38, %v1936_v56  ;;  %vm1935_vm5 = vcmp.eq.f32.partialorder %v1934_v39, 8.507059e+37 }
0x277e   :  { %1524 = vrot.lane.b32.xlu0 %v2858_v35, %s2429_s3 }
0x2780   :  { %v2312_v37 = vpop.eup %2311 }
0x2781   :  { %v1926_v0 = vmul.f32 %v2312_v37, %v1924_v31  ;;  %vm1931_vm2 = vweird.f32 %v2312_v37 }
0x2782   :  { %vm1932_vm4 = vmor %vm1930_vm3, %vm1931_vm2 }
0x2783   :  { %v1927_v46 = vsub.f32 1.0, %v1926_v0 }
0x2785   :  { %v1928_v20 = vmul.f32 %v2312_v37, %v1927_v46 }
0x2786   :  { %1814 = vrot.lane.b32.xlu0 %v1812_v11, %s2429_s3 }
0x2787   :  { %v1929_v15 = vadd.f32 %v2312_v37, %v1928_v20 }
0x2789   :  { %v1933_v40 = vsel %vm1932_vm4, %v2312_v37, %v1929_v15 }
0x278a   :  { %v1938_v42 = vsel %vm1935_vm5, %v1937_v41, %v1933_v40 }
0x278b   :  { %v1944_v10 = vmul.f32 %v1942_v36, %v1938_v42 }
0x27e8   :  { %v1947_v35 = vpop.permute.xlu0 %1946 }
0x27e9   :  { %v1949_v44 = vmul.f32 %v1947_v35, %v1938_v42 }
0x27eb   :  { %1951 = vrot.lane.b32.xlu1 %v1949_v44, %s2429_s3 }
0x27f0   :  { %v1525_v29 = vpop.permute.xlu0 %1524 }
0x27f1   :  { %1527 = vst.msk [vmem:[#allocation2] sm:$0xc] %vm294_vm10, %v1525_v29 }
0x27f3   :  { %1598 = vrot.lane.b32.xlu1 %v2877_v4, %s2429_s3  ;;  %v1971_v4 = vld [vmem:[%s2981_s10 + $0x18] sm:$0xff] }
0x27f4   :  { %1994 = vmatpush.msrb.mxu2 %v1971_v4 }
0x27f6   :  { %1995 = vmatpush.msrb.mxu2 %v1970_v34 }
0x27f8   :  { %v1815_v25 = vpop.permute.xlu0 %1814  ;;  %1996 = vmatpush.msrb.mxu2 %v1969_v47 }
0x27f9   :  { %1817 = vst.msk [vmem:[#allocation2 + $0x8] sm:$0xc] %vm294_vm10, %v1815_v25  ;;  %vm2013_vm10 = vcmask 130048  }
0x27fa   :  { %1997 = vmatpush.msrb.mxu2 %v1968_v48 }
0x27fb   :  { %1888 = vrot.lane.b32.xlu1 %v1886_v14, %s2429_s3 }
0x285d   :  { %v1952_v19 = vpop.permute.xlu1 %1951 }
0x285e   :  { %v1954_v30 = vadd.f32 %v1952_v19, %v1944_v10 }
0x2860   :  { %2313 = vtanh.f32 %v1954_v30 }
0x2865   :  { %v1599_v18 = vpop.permute.xlu1 %1598 }
0x2866   :  { %v2314_v32 = vpop.eup %2313  ;;  %1601 = vst.msk [vmem:[#allocation2] sm:$0x30] %vm369_vm11, %v1599_v18 }
0x2867   :  { %1957 = vrot.lane.b32.xlu2 %v2314_v32, %s2428_s7 }
0x286d   :  { %v1889_v45 = vpop.permute.xlu1 %1888 }
0x286e   :  { %1891 = vst.msk [vmem:[#allocation2 + $0x8] sm:$0x30] %vm369_vm11, %v1889_v45 }
0x286f   :  { %1672 = vrot.lane.b32.xlu2 %v2897_v24, %s2429_s3 }
0x28c1   :  { %v1958_v24 = vpop.permute.xlu2 %1957 }
0x28c2   :  { %v1960_v11 = vmul.f32 %v1958_v24, %v1938_v42 }
0x28c4   :  { %1962 = vrot.lane.b32.xlu2 %v1960_v11, %s2429_s3 }
0x28c9   :  { %v1673_v49 = vpop.permute.xlu2 %1672 }
0x28ca   :  { %1675 = vst.msk [vmem:[#allocation2] sm:$0xc0] %vm444_vm12, %v1673_v49 }
0x28d1   :  { %v1966_v50 = vld [vmem:[#allocation2] sm:$0xff] }
0x28d2   :  { %2105 = vmatmul.msk.f32.vlgmr.msrb.gmra.mxu2 %vm156_vm7, %v1966_v50 }
0x291e   :  { %v1963_v51 = vpop.permute.xlu2 %1962 }
0x291f   :  { %1965 = vst.msk [vmem:[#allocation2 + $0x8] sm:$0xc0] %vm444_vm12, %v1963_v51 }
0x2926   :  { %v1967_v52 = vld [vmem:[#allocation2 + $0x8] sm:$0xff] }
0x2927   :  { %2106 = vmatmul.msk.f32.gmra.mxu2 %vm156_vm7, %v1967_v52  ;;  %vm2043_vm7 = vcmask 7168  }
0x2955   :  { %v1999_v22 = vpop.f32.mrf.mxu2 }
0x2956   :  { %v2000_v57 = vadd.f32 %v2121_v55, %v1999_v22 }
0x2958   :  { %2315 = vtanh.f32 %v2000_v57 }
0x295e   :  { %v2316_v58 = vpop.eup %2315 }
0x295f   :  { %2107 = vmatmul.msk.f32.vlgmr.msrb.gmra.mxu3 %vm2013_vm10, %v2316_v58 }
0x29aa   :  { %v2002_v61 = vpop.f32.mrf.mxu2 }
0x29ab   :  { %v2003_v59 = vadd.f32 %v2121_v55, %v2002_v61 }
0x29ad   :  { %2317 = vtanh.f32 %v2003_v59 }
0x29b3   :  { %v2318_v60 = vpop.eup %2317 }
0x29b4   :  { %2108 = vmatmul.msk.f32.gmra.mxu3 %vm2013_vm10, %v2318_v60 }
0x29e2   :  { %v2037_v62 = vpop.f32.mrf.mxu3 }
0x29e3   :  { %v2038_v1 = vadd.f32 %v2122_v63, %v2037_v62 }
0x29e5   :  { %2044 = vst.msk [vmem:[%s2985_s14] sm:$0xff] %vm2043_vm7, %v2038_v1 }
0x2a37   :  { %v2040_v2 = vpop.f32.mrf.mxu3 }
0x2a38   :  { %v2041_v3 = vadd.f32 %v2122_v63, %v2040_v2 }
0x2a3a   :  { %2045 = vst.msk [vmem:[%s2985_s14 + $0x8] sm:$0xff] %vm2043_vm7, %v2041_v3 }
0x2a3b   :  { %2050 = vsyncpa [#allocation5], 1 }
0x2a3c   :  { %2051 = vsyncpa [#allocation7], 1 }
0x2a3d   :  { %2052 = vsyncpa [#allocation10], 1 }

</bundles_post_ra>
